<compile_context>
chip_gen: v7x
topology: tpu7x:2x2x1
jax: 0.10.0
libtpu: 0.0.40
codegen_flags: <defaults>
</compile_context>

<pallas_src>
import math
import numpy as np
import jax
import jax.numpy as jnp
from jax import lax
from jax.experimental import pallas as pl
from jax.experimental.pallas import tpu as pltpu

# ---- model hyper-parameters (dim == dim_inner is required by the reference broadcast
#      in selective_scan: x.unsqueeze(-1) vs deltaB) --------------------------------------
DIM = 32
DT_RANK = 8
DIM_INNER = 32
D_STATE = 8
SEQ = 16
NUM_TOKENS = 8
BATCH = 2
LN_EPS = 1e-5
DBC_OUT = DIM_INNER + 2 * D_STATE        # fused delta / B / C projection width


def _softplus(x):
    # numerically stable log(1 + exp(x)); matches torch.nn.functional.softplus
    return jnp.maximum(x, 0.0) + jnp.log1p(jnp.exp(-jnp.abs(x)))


def _silu(x):
    return x * jax.nn.sigmoid(x)


# =============================================================================
# Fused kernel: LayerNorm -> proj1/proj2 -> fwd scan -> bwd scan -> pooled combine
# (one grid step per batch element)
# =============================================================================
def _mamba_block_kernel(x_ref, ln_g_ref, ln_b_ref, w12_ref, b12_ref,
                        conv_w_ref, conv_b_ref, wdbc_ref, bdbc_ref,
                        at_ref, dvec_ref, pool_ref, out_ref, y_s):
    x = x_ref[...]                                               # (s, d)

    # ---- LayerNorm + fused proj1/proj2 --------------------------------------
    mean = jnp.mean(x, axis=-1, keepdims=True)
    var = jnp.mean((x - mean) ** 2, axis=-1, keepdims=True)
    xn = (x - mean) * lax.rsqrt(var + LN_EPS) * ln_g_ref[...] + ln_b_ref[...]
    zx = jnp.dot(xn, w12_ref[...], preferred_element_type=jnp.float32) + b12_ref[...]
    z = zx[:, :DIM]                                              # proj1 output
    xp = zx[:, DIM:]                                             # proj2 output

    # ---- one SSM direction (reverse=True  <=>  flip / scan / flip-back) -----
    def run_direction(idx, reverse):
        # pointwise conv1d (kernel_size=1) + softplus
        xc = _softplus(jnp.dot(xp, conv_w_ref[idx],
                               preferred_element_type=jnp.float32) + conv_b_ref[idx])
        # fused deltaBC_layer + dt_proj projection -> (s, dim_inner + 2*d_state)
        dbc = jnp.dot(xc, wdbc_ref[idx],
                      preferred_element_type=jnp.float32) + bdbc_ref[idx]
        delta = _softplus(dbc[:, :DIM_INNER])                    # (s, di)
        BT = dbc[:, DIM_INNER:DIM_INNER + D_STATE].T             # (n, s)
        CT = dbc[:, DIM_INNER + D_STATE:].T                      # (n, s)
        AT = at_ref[idx]                                         # (n, di) == (-exp(A_log)).T
        dxc = delta * xc                                         # (s, di)

        h = jnp.zeros((D_STATE, DIM_INNER), jnp.float32)
        steps = range(SEQ - 1, -1, -1) if reverse else range(SEQ)
        for t in steps:                      # fully unrolled; state h stays in vregs
            dA_t = jnp.exp(delta[t:t + 1, :] * AT)               # (n, di)
            bx_t = BT[:, t:t + 1] * dxc[t:t + 1, :]              # (n, di)
            h = dA_t * h + bx_t
            y_s[t:t + 1, :] = jnp.sum(h * CT[:, t:t + 1], axis=0, keepdims=True)
        return y_s[...] + dvec_ref[idx] * xc                     # (s, di)

    y1 = run_direction(0, reverse=False)
    y2 = run_direction(1, reverse=True)

    # ---- adaptive-avg-pool of [skip, z, y1, y2] as ONE block-diagonal matmul --
    cat = jnp.concatenate([x, z, y1, y2], axis=0)                # (4s, d)
    pooled = jnp.dot(pool_ref[...], cat,
                     preferred_element_type=jnp.float32)         # (4*nt, d)
    pskip = pooled[:NUM_TOKENS]
    pz = _silu(pooled[NUM_TOKENS:2 * NUM_TOKENS])
    p1 = _silu(pooled[2 * NUM_TOKENS:3 * NUM_TOKENS])
    p2 = _silu(pooled[3 * NUM_TOKENS:])
    out_ref[...] = pz * p1 + pz * p2 + pskip


# =============================================================================
# pallas_call wrapper
# =============================================================================
def _full_spec(shape):
    return pl.BlockSpec(shape, lambda i: (0,) * len(shape))


def _mamba_block_call(x, p):
    b, s, d = x.shape
    return pl.pallas_call(
        _mamba_block_kernel,
        grid=(b,),
        in_specs=[
            pl.BlockSpec((None, s, d), lambda i: (i, 0, 0)),     # x (per batch element)
            _full_spec((1, d)), _full_spec((1, d)),              # layernorm gamma / beta
            _full_spec((d, 2 * d)), _full_spec((1, 2 * d)),      # fused proj1|proj2
            _full_spec((2, d, d)), _full_spec((2, 1, d)),        # conv weight/bias (fwd,bwd)
            _full_spec((2, d, DBC_OUT)), _full_spec((2, 1, DBC_OUT)),  # fused deltaBC+dt_proj
            _full_spec((2, D_STATE, DIM_INNER)),                 # (-exp(A_log)).T
            _full_spec((2, 1, DIM_INNER)),                       # D
            _full_spec((4 * NUM_TOKENS, 4 * s)),                 # block-diag pooling matrix
        ],
        out_specs=pl.BlockSpec((None, NUM_TOKENS, d), lambda i: (i, 0, 0)),
        out_shape=jax.ShapeDtypeStruct((b, NUM_TOKENS, d), jnp.float32),
        scratch_shapes=[pltpu.VMEM((s, DIM_INNER), jnp.float32)],
        compiler_params=pltpu.CompilerParams(dimension_semantics=("parallel",)),
    )(x, p["ln_g"], p["ln_b"], p["w12_t"], p["b12"],
      p["conv_w_t"], p["conv_b"], p["wdbc_t"], p["bdbc"],
      p["A_neg_t"], p["Dvec"], p["pool_block"])


@jax.jit
def vision_encoder_mamba_block(x, params):
    return _mamba_block_call(x, params)


# =============================================================================
# deterministic parameter construction + pure-JAX reference for validation
# =============================================================================
def adaptive_pool_matrix(s, nt):
    # exact torch.nn.AdaptiveAvgPool1d index arithmetic
    P = np.zeros((nt, s), dtype=np.float32)
    for i in range(nt):
        start = (i * s) // nt
        end = -((-(i + 1) * s) // nt)
        P[i, start:end] = 1.0 / (end - start)
    return P


def _uniform(key, shape, fan_in):
    bound = 1.0 / math.sqrt(fan_in)
    return jax.random.uniform(key, shape, jnp.float32, -bound, bound)


def _ssm_dir_params(key):
    k1, k2, k3, k4, k5 = jax.random.split(key, 5)
    conv_w = _uniform(k1, (DIM, DIM), DIM)          # Conv1d weight (out,in,1)->(out,in)
    conv_b = _uniform(k2, (DIM,), DIM)
    w_dbc = _uniform(k3, (DT_RANK + 2 * D_STATE, DIM), DIM)   # no bias
    w_dtp = _uniform(k4, (DIM_INNER, DT_RANK), DT_RANK)
    b_dtp = _uniform(k5, (DIM_INNER,), DT_RANK)
    A_log = jnp.log(jnp.tile(jnp.arange(1, D_STATE + 1, dtype=jnp.float32),
                             (DIM_INNER, 1)))
    Dvec = jnp.ones((DIM_INNER,), jnp.float32)
    w_delta = w_dbc[:DT_RANK]
    w_B = w_dbc[DT_RANK:DT_RANK + D_STATE]
    w_C = w_dbc[DT_RANK + D_STATE:]
    # fold dt_proj into the delta columns (no nonlinearity between the two linears)
    w_delta_fused = w_delta.T @ w_dtp.T                                    # (d, dim_inner)
    wdbc_t = jnp.concatenate([w_delta_fused, w_B.T, w_C.T], axis=1)        # (d, DBC_OUT)
    bdbc = jnp.concatenate([b_dtp,
                            jnp.zeros((2 * D_STATE,), jnp.float32)]).reshape(1, DBC_OUT)
    return {
        # kernel-facing (fused / pre-transposed)
        "conv_w_t": conv_w.T, "conv_b": conv_b.reshape(1, DIM),
        "wdbc_t": wdbc_t, "bdbc": bdbc,
        "A_neg_t": (-jnp.exp(A_log)).T, "D": Dvec.reshape(1, DIM_INNER),
        # raw copies for the pure-JAX reference
        "conv_w": conv_w, "conv_b_raw": conv_b, "w_dbc": w_dbc,
        "w_dtp": w_dtp, "b_dtp_raw": b_dtp, "A_log": A_log, "D_raw": Dvec,
    }


def init_params(key):
    k1, k2, k3, k4, k5, k6 = jax.random.split(key, 6)
    w1 = _uniform(k1, (DIM, DIM), DIM)
    b1 = _uniform(k2, (DIM,), DIM)
    w2 = _uniform(k3, (DIM, DIM), DIM)
    b2 = _uniform(k4, (DIM,), DIM)
    fwd = _ssm_dir_params(k5)
    bwd = _ssm_dir_params(k6)
    stack = lambda name: jnp.stack([fwd[name], bwd[name]], axis=0)
    P = adaptive_pool_matrix(SEQ, NUM_TOKENS)
    # NOTE: proj3 of the PyTorch module is never used in forward() -> omitted.
    return {
        # kernel-facing (fused / pre-transposed / direction-stacked)
        "ln_g": jnp.ones((1, DIM), jnp.float32),
        "ln_b": jnp.zeros((1, DIM), jnp.float32),
        "w12_t": jnp.concatenate([w1.T, w2.T], axis=1),           # (d, 2d)
        "b12": jnp.concatenate([b1, b2]).reshape(1, 2 * DIM),
        "conv_w_t": stack("conv_w_t"), "conv_b": stack("conv_b"),
        "wdbc_t": stack("wdbc_t"), "bdbc": stack("bdbc"),
        "A_neg_t": stack("A_neg_t"), "Dvec": stack("D"),
        "pool_block": jnp.asarray(np.kron(np.eye(4, dtype=np.float32), P)),
        # reference-facing (raw)
        "pool": jnp.asarray(P),
        "w1": w1, "b1_raw": b1, "w2": w2, "b2_raw": b2,
        "fwd": fwd, "bwd": bwd,
    }


def reference_forward(x, p):
    P = p["pool"]
    pool = lambda t: jnp.einsum("ns,bsd->bnd", P, t)

    skip = pool(x)
    mean = x.mean(-1, keepdims=True)
    var = ((x - mean) ** 2).mean(-1, keepdims=True)
    xn = (x - mean) / jnp.sqrt(var + LN_EPS) * p["ln_g"][0] + p["ln_b"][0]
    z = xn @ p["w1"].T + p["b1_raw"]
    xp = xn @ p["w2"].T + p["b2_raw"]

    def direction(xin, dp):
        xc = _softplus(jnp.einsum("bsd,od->bso", xin, dp["conv_w"]) + dp["conv_b_raw"])
        dbc = xc @ dp["w_dbc"].T
        delta_r = dbc[..., :DT_RANK]
        B = dbc[..., DT_RANK:DT_RANK + D_STATE]
        C = dbc[..., DT_RANK + D_STATE:]
        delta = _softplus(delta_r @ dp["w_dtp"].T + dp["b_dtp_raw"])
        A = -jnp.exp(dp["A_log"])
        dA = jnp.exp(delta[..., None] * A)                         # (b,s,di,n)
        BX = (delta[..., None] * B[:, :, None, :]) * xc[..., None]

        def step(h, inp):
            da, bx = inp
            h = da * h + bx
            return h, h

        def per_batch(da_b, bx_b):
            h0 = jnp.zeros((DIM_INNER, D_STATE), jnp.float32)
            _, hs = lax.scan(step, h0, (da_b, bx_b))
            return hs

        hs = jax.vmap(per_batch)(dA, BX)                           # (b,s,di,n)
        return jnp.einsum("bsin,bsn->bsi", hs, C) + dp["D_raw"] * xc

    y1 = direction(xp, p["fwd"])
    y2 = jnp.flip(direction(jnp.flip(xp, axis=1), p["bwd"]), axis=1)
    x1 = _silu(pool(y1))
    x2 = _silu(pool(y2))
    zp = _silu(pool(z))
    return zp * x1 + zp * x2 + skip


if __name__ == "__main__":
    key = jax.random.PRNGKey(0)
    pkey, xkey = jax.random.split(key)
    params = init_params(pkey)
    x = jax.random.normal(xkey, (BATCH, SEQ, DIM), jnp.float32)

    out = jax.block_until_ready(vision_encoder_mamba_block(x, params))
    assert out.shape == (BATCH, NUM_TOKENS, DIM)

    ref = reference_forward(x, params)
    np.testing.assert_allclose(np.asarray(out), np.asarray(ref),
                               rtol=2e-2, atol=2e-2)
    print("KERNEL_OK")
</pallas_src>

<mosaic_0001>
module attributes {stable_mosaic.version = 11 : i64} {
  func.func @_mamba_block_kernel(%arg0: i32, %arg1: memref<1x16x32xf32, #tpu.memory_space<vmem>>, %arg2: memref<1x32xf32, #tpu.memory_space<vmem>>, %arg3: memref<1x32xf32, #tpu.memory_space<vmem>>, %arg4: memref<32x64xf32, #tpu.memory_space<vmem>>, %arg5: memref<1x64xf32, #tpu.memory_space<vmem>>, %arg6: memref<2x32x32xf32, #tpu.memory_space<vmem>>, %arg7: memref<2x1x32xf32, #tpu.memory_space<vmem>>, %arg8: memref<2x32x48xf32, #tpu.memory_space<vmem>>, %arg9: memref<2x1x48xf32, #tpu.memory_space<vmem>>, %arg10: memref<2x8x32xf32, #tpu.memory_space<vmem>>, %arg11: memref<2x1x32xf32, #tpu.memory_space<vmem>>, %arg12: memref<32x64xf32, #tpu.memory_space<vmem>>, %arg13: memref<1x8x32xf32, #tpu.memory_space<vmem>>, %arg14: memref<16x32xf32, #tpu.memory_space<vmem>>) attributes {dimension_semantics = [#tpu.dimension_semantics<parallel>], iteration_bounds = array<i64: 2>, scalar_prefetch = 0 : i64, scratch_operands = 1 : i64, tpu.core_type = #tpu.core_type<tc>, window_params = [{transform_indices = @transform_0, window_bounds = array<i64: 1, 16, 32>}, {pipeline_mode = #tpu.pipeline_mode<synchronous>, transform_indices = @transform_1, window_bounds = array<i64: 1, 32>}, {pipeline_mode = #tpu.pipeline_mode<synchronous>, transform_indices = @transform_2, window_bounds = array<i64: 1, 32>}, {pipeline_mode = #tpu.pipeline_mode<synchronous>, transform_indices = @transform_3, window_bounds = array<i64: 32, 64>}, {pipeline_mode = #tpu.pipeline_mode<synchronous>, transform_indices = @transform_4, window_bounds = array<i64: 1, 64>}, {pipeline_mode = #tpu.pipeline_mode<synchronous>, transform_indices = @transform_5, window_bounds = array<i64: 2, 32, 32>}, {pipeline_mode = #tpu.pipeline_mode<synchronous>, transform_indices = @transform_6, window_bounds = array<i64: 2, 1, 32>}, {pipeline_mode = #tpu.pipeline_mode<synchronous>, transform_indices = @transform_7, window_bounds = array<i64: 2, 32, 48>}, {pipeline_mode = #tpu.pipeline_mode<synchronous>, transform_indices = @transform_8, window_bounds = array<i64: 2, 1, 48>}, {pipeline_mode = #tpu.pipeline_mode<synchronous>, transform_indices = @transform_9, window_bounds = array<i64: 2, 8, 32>}, {pipeline_mode = #tpu.pipeline_mode<synchronous>, transform_indices = @transform_10, window_bounds = array<i64: 2, 1, 32>}, {pipeline_mode = #tpu.pipeline_mode<synchronous>, transform_indices = @transform_11, window_bounds = array<i64: 32, 64>}, {transform_indices = @transform_12, window_bounds = array<i64: 1, 8, 32>}]} {
    %c0 = arith.constant 0 : index
    %c0_0 = arith.constant 0 : index
    %c0_1 = arith.constant 0 : index
    %0 = vector.load %arg1[%c0, %c0_0, %c0_1] : memref<1x16x32xf32, #tpu.memory_space<vmem>>, vector<1x16x32xf32>
    %1 = vector.shape_cast %0 : vector<1x16x32xf32> to vector<16x32xf32>
    %cst = arith.constant dense<0.000000e+00> : vector<16xf32>
    %2 = vector.multi_reduction <add>, %1, %cst [1] : vector<16x32xf32> to vector<16xf32>
    %3 = vector.shape_cast %2 : vector<16xf32> to vector<16x1xf32>
    %cst_2 = arith.constant 3.200000e+01 : f32
    %4 = vector.broadcast %cst_2 : f32 to vector<16x1xf32>
    %5 = arith.divf %3, %4 : vector<16x1xf32>
    %6 = vector.broadcast %5 : vector<16x1xf32> to vector<16x32xf32>
    %7 = arith.subf %1, %6 : vector<16x32xf32>
    %8 = arith.mulf %7, %7 : vector<16x32xf32>
    %cst_3 = arith.constant dense<0.000000e+00> : vector<16xf32>
    %9 = vector.multi_reduction <add>, %8, %cst_3 [1] : vector<16x32xf32> to vector<16xf32>
    %10 = vector.shape_cast %9 : vector<16xf32> to vector<16x1xf32>
    %cst_4 = arith.constant 3.200000e+01 : f32
    %11 = vector.broadcast %cst_4 : f32 to vector<16x1xf32>
    %12 = arith.divf %10, %11 : vector<16x1xf32>
    %13 = vector.broadcast %5 : vector<16x1xf32> to vector<16x32xf32>
    %14 = arith.subf %1, %13 : vector<16x32xf32>
    %cst_5 = arith.constant 9.99999974E-6 : f32
    %15 = vector.broadcast %cst_5 : f32 to vector<16x1xf32>
    %16 = arith.addf %12, %15 : vector<16x1xf32>
    %17 = math.rsqrt %16 : vector<16x1xf32>
    %18 = vector.broadcast %17 : vector<16x1xf32> to vector<16x32xf32>
    %19 = arith.mulf %14, %18 : vector<16x32xf32>
    %c0_6 = arith.constant 0 : index
    %c0_7 = arith.constant 0 : index
    %20 = vector.load %arg2[%c0_6, %c0_7] : memref<1x32xf32, #tpu.memory_space<vmem>>, vector<1x32xf32>
    %21 = vector.broadcast %20 : vector<1x32xf32> to vector<16x32xf32>
    %22 = arith.mulf %19, %21 : vector<16x32xf32>
    %c0_8 = arith.constant 0 : index
    %c0_9 = arith.constant 0 : index
    %23 = vector.load %arg3[%c0_8, %c0_9] : memref<1x32xf32, #tpu.memory_space<vmem>>, vector<1x32xf32>
    %24 = vector.broadcast %23 : vector<1x32xf32> to vector<16x32xf32>
    %25 = arith.addf %22, %24 : vector<16x32xf32>
    %c0_10 = arith.constant 0 : index
    %c0_11 = arith.constant 0 : index
    %26 = vector.load %arg4[%c0_10, %c0_11] : memref<32x64xf32, #tpu.memory_space<vmem>>, vector<32x64xf32>
    %cst_12 = arith.constant dense<0.000000e+00> : vector<16x64xf32>
    %27 = tpu.matmul %25, %26, %cst_12 {dimension_numbers = #tpu.dot_dimension_numbers<[1], [0], [0], [1], [0, 0, 1, 1], [], []>} : vector<16x32xf32>, vector<32x64xf32>, vector<16x64xf32> -> vector<16x64xf32>
    %c0_13 = arith.constant 0 : index
    %c0_14 = arith.constant 0 : index
    %28 = vector.load %arg5[%c0_13, %c0_14] : memref<1x64xf32, #tpu.memory_space<vmem>>, vector<1x64xf32>
    %29 = vector.broadcast %28 : vector<1x64xf32> to vector<16x64xf32>
    %30 = arith.addf %27, %29 : vector<16x64xf32>
    %31 = vector.extract_strided_slice %30 {offsets = [0, 0], sizes = [16, 32], strides = [1, 1]} : vector<16x64xf32> to vector<16x32xf32>
    %32 = vector.extract_strided_slice %30 {offsets = [0, 32], sizes = [16, 32], strides = [1, 1]} : vector<16x64xf32> to vector<16x32xf32>
    %c0_15 = arith.constant 0 : index
    %c0_16 = arith.constant 0 : index
    %c0_17 = arith.constant 0 : index
    %33 = vector.load %arg6[%c0_15, %c0_16, %c0_17] : memref<2x32x32xf32, #tpu.memory_space<vmem>>, vector<1x32x32xf32>
    %34 = vector.shape_cast %33 : vector<1x32x32xf32> to vector<32x32xf32>
    %cst_18 = arith.constant dense<0.000000e+00> : vector<16x32xf32>
    %35 = tpu.matmul %32, %34, %cst_18 {dimension_numbers = #tpu.dot_dimension_numbers<[1], [0], [0], [1], [0, 0, 1, 1], [], []>} : vector<16x32xf32>, vector<32x32xf32>, vector<16x32xf32> -> vector<16x32xf32>
    %c0_19 = arith.constant 0 : index
    %c0_20 = arith.constant 0 : index
    %c0_21 = arith.constant 0 : index
    %36 = vector.load %arg7[%c0_19, %c0_20, %c0_21] : memref<2x1x32xf32, #tpu.memory_space<vmem>>, vector<1x1x32xf32>
    %37 = vector.shape_cast %36 : vector<1x1x32xf32> to vector<1x32xf32>
    %38 = vector.broadcast %37 : vector<1x32xf32> to vector<16x32xf32>
    %39 = arith.addf %35, %38 : vector<16x32xf32>
    %cst_22 = arith.constant 0.000000e+00 : f32
    %40 = vector.broadcast %cst_22 : f32 to vector<16x32xf32>
    %41 = arith.maximumf %39, %40 : vector<16x32xf32>
    %42 = math.absf %39 : vector<16x32xf32>
    %cst_23 = arith.constant 0.000000e+00 : f32
    %43 = vector.broadcast %cst_23 : f32 to vector<16x32xf32>
    %44 = arith.subf %43, %42 : vector<16x32xf32>
    %45 = math.exp %44 : vector<16x32xf32>
    %46 = math.log1p %45 : vector<16x32xf32>
    %47 = arith.addf %41, %46 : vector<16x32xf32>
    %c0_24 = arith.constant 0 : index
    %c0_25 = arith.constant 0 : index
    %c0_26 = arith.constant 0 : index
    %48 = vector.load %arg8[%c0_24, %c0_25, %c0_26] : memref<2x32x48xf32, #tpu.memory_space<vmem>>, vector<1x32x48xf32>
    %49 = vector.shape_cast %48 : vector<1x32x48xf32> to vector<32x48xf32>
    %cst_27 = arith.constant dense<0.000000e+00> : vector<16x48xf32>
    %50 = tpu.matmul %47, %49, %cst_27 {dimension_numbers = #tpu.dot_dimension_numbers<[1], [0], [0], [1], [0, 0, 1, 1], [], []>} : vector<16x32xf32>, vector<32x48xf32>, vector<16x48xf32> -> vector<16x48xf32>
    %c0_28 = arith.constant 0 : index
    %c0_29 = arith.constant 0 : index
    %c0_30 = arith.constant 0 : index
    %51 = vector.load %arg9[%c0_28, %c0_29, %c0_30] : memref<2x1x48xf32, #tpu.memory_space<vmem>>, vector<1x1x48xf32>
    %52 = vector.shape_cast %51 : vector<1x1x48xf32> to vector<1x48xf32>
    %53 = vector.broadcast %52 : vector<1x48xf32> to vector<16x48xf32>
    %54 = arith.addf %50, %53 : vector<16x48xf32>
    %55 = vector.extract_strided_slice %54 {offsets = [0, 0], sizes = [16, 32], strides = [1, 1]} : vector<16x48xf32> to vector<16x32xf32>
    %cst_31 = arith.constant 0.000000e+00 : f32
    %56 = vector.broadcast %cst_31 : f32 to vector<16x32xf32>
    %57 = arith.maximumf %55, %56 : vector<16x32xf32>
    %58 = math.absf %55 : vector<16x32xf32>
    %cst_32 = arith.constant 0.000000e+00 : f32
    %59 = vector.broadcast %cst_32 : f32 to vector<16x32xf32>
    %60 = arith.subf %59, %58 : vector<16x32xf32>
    %61 = math.exp %60 : vector<16x32xf32>
    %62 = math.log1p %61 : vector<16x32xf32>
    %63 = arith.addf %57, %62 : vector<16x32xf32>
    %64 = vector.extract_strided_slice %54 {offsets = [0, 32], sizes = [16, 8], strides = [1, 1]} : vector<16x48xf32> to vector<16x8xf32>
    %65 = tpu.transpose %64, [1, 0] : vector<16x8xf32> -> vector<8x16xf32>
    %66 = vector.extract_strided_slice %54 {offsets = [0, 40], sizes = [16, 8], strides = [1, 1]} : vector<16x48xf32> to vector<16x8xf32>
    %67 = tpu.transpose %66, [1, 0] : vector<16x8xf32> -> vector<8x16xf32>
    %c0_33 = arith.constant 0 : index
    %c0_34 = arith.constant 0 : index
    %c0_35 = arith.constant 0 : index
    %68 = vector.load %arg10[%c0_33, %c0_34, %c0_35] : memref<2x8x32xf32, #tpu.memory_space<vmem>>, vector<1x8x32xf32>
    %69 = vector.shape_cast %68 : vector<1x8x32xf32> to vector<8x32xf32>
    %70 = arith.mulf %63, %47 : vector<16x32xf32>
    %cst_36 = arith.constant 0.000000e+00 : f32
    %71 = vector.broadcast %cst_36 : f32 to vector<8x32xf32>
    %72 = vector.extract_strided_slice %63 {offsets = [0, 0], sizes = [1, 32], strides = [1, 1]} : vector<16x32xf32> to vector<1x32xf32>
    %73 = vector.broadcast %72 : vector<1x32xf32> to vector<8x32xf32>
    %74 = arith.mulf %73, %69 : vector<8x32xf32>
    %75 = math.exp %74 : vector<8x32xf32>
    %76 = vector.extract_strided_slice %65 {offsets = [0, 0], sizes = [8, 1], strides = [1, 1]} : vector<8x16xf32> to vector<8x1xf32>
    %77 = vector.extract_strided_slice %70 {offsets = [0, 0], sizes = [1, 32], strides = [1, 1]} : vector<16x32xf32> to vector<1x32xf32>
    %78 = vector.broadcast %76 : vector<8x1xf32> to vector<8x32xf32>
    %79 = vector.broadcast %77 : vector<1x32xf32> to vector<8x32xf32>
    %80 = arith.mulf %78, %79 : vector<8x32xf32>
    %81 = arith.mulf %75, %71 : vector<8x32xf32>
    %82 = arith.addf %81, %80 : vector<8x32xf32>
    %83 = vector.extract_strided_slice %67 {offsets = [0, 0], sizes = [8, 1], strides = [1, 1]} : vector<8x16xf32> to vector<8x1xf32>
    %84 = vector.broadcast %83 : vector<8x1xf32> to vector<8x32xf32>
    %85 = arith.mulf %82, %84 : vector<8x32xf32>
    %cst_37 = arith.constant dense<0.000000e+00> : vector<32xf32>
    %86 = vector.multi_reduction <add>, %85, %cst_37 [0] : vector<8x32xf32> to vector<32xf32>
    %87 = vector.shape_cast %86 : vector<32xf32> to vector<1x32xf32>
    %c0_38 = arith.constant 0 : index
    %c0_39 = arith.constant 0 : index
    %88 = vector.load %arg14[%c0_38, %c0_39] : memref<16x32xf32, #tpu.memory_space<vmem>>, vector<1x32xf32>
    tpu.vector_store %arg14[%c0_38, %c0_39], %87 {strides = array<i32>} : memref<16x32xf32, #tpu.memory_space<vmem>>, vector<1x32xf32>,
    %89 = vector.extract_strided_slice %63 {offsets = [1, 0], sizes = [1, 32], strides = [1, 1]} : vector<16x32xf32> to vector<1x32xf32>
    %90 = vector.broadcast %89 : vector<1x32xf32> to vector<8x32xf32>
    %91 = arith.mulf %90, %69 : vector<8x32xf32>
    %92 = math.exp %91 : vector<8x32xf32>
    %93 = vector.extract_strided_slice %65 {offsets = [0, 1], sizes = [8, 1], strides = [1, 1]} : vector<8x16xf32> to vector<8x1xf32>
    %94 = vector.extract_strided_slice %70 {offsets = [1, 0], sizes = [1, 32], strides = [1, 1]} : vector<16x32xf32> to vector<1x32xf32>
    %95 = vector.broadcast %93 : vector<8x1xf32> to vector<8x32xf32>
    %96 = vector.broadcast %94 : vector<1x32xf32> to vector<8x32xf32>
    %97 = arith.mulf %95, %96 : vector<8x32xf32>
    %98 = arith.mulf %92, %82 : vector<8x32xf32>
    %99 = arith.addf %98, %97 : vector<8x32xf32>
    %100 = vector.extract_strided_slice %67 {offsets = [0, 1], sizes = [8, 1], strides = [1, 1]} : vector<8x16xf32> to vector<8x1xf32>
    %101 = vector.broadcast %100 : vector<8x1xf32> to vector<8x32xf32>
    %102 = arith.mulf %99, %101 : vector<8x32xf32>
    %cst_40 = arith.constant dense<0.000000e+00> : vector<32xf32>
    %103 = vector.multi_reduction <add>, %102, %cst_40 [0] : vector<8x32xf32> to vector<32xf32>
    %104 = vector.shape_cast %103 : vector<32xf32> to vector<1x32xf32>
    %c1 = arith.constant 1 : index
    %c0_41 = arith.constant 0 : index
    %105 = vector.load %arg14[%c1, %c0_41] : memref<16x32xf32, #tpu.memory_space<vmem>>, vector<1x32xf32>
    tpu.vector_store %arg14[%c1, %c0_41], %104 {strides = array<i32>} : memref<16x32xf32, #tpu.memory_space<vmem>>, vector<1x32xf32>,
    %106 = vector.extract_strided_slice %63 {offsets = [2, 0], sizes = [1, 32], strides = [1, 1]} : vector<16x32xf32> to vector<1x32xf32>
    %107 = vector.broadcast %106 : vector<1x32xf32> to vector<8x32xf32>
    %108 = arith.mulf %107, %69 : vector<8x32xf32>
    %109 = math.exp %108 : vector<8x32xf32>
    %110 = vector.extract_strided_slice %65 {offsets = [0, 2], sizes = [8, 1], strides = [1, 1]} : vector<8x16xf32> to vector<8x1xf32>
    %111 = vector.extract_strided_slice %70 {offsets = [2, 0], sizes = [1, 32], strides = [1, 1]} : vector<16x32xf32> to vector<1x32xf32>
    %112 = vector.broadcast %110 : vector<8x1xf32> to vector<8x32xf32>
    %113 = vector.broadcast %111 : vector<1x32xf32> to vector<8x32xf32>
    %114 = arith.mulf %112, %113 : vector<8x32xf32>
    %115 = arith.mulf %109, %99 : vector<8x32xf32>
    %116 = arith.addf %115, %114 : vector<8x32xf32>
    %117 = vector.extract_strided_slice %67 {offsets = [0, 2], sizes = [8, 1], strides = [1, 1]} : vector<8x16xf32> to vector<8x1xf32>
    %118 = vector.broadcast %117 : vector<8x1xf32> to vector<8x32xf32>
    %119 = arith.mulf %116, %118 : vector<8x32xf32>
    %cst_42 = arith.constant dense<0.000000e+00> : vector<32xf32>
    %120 = vector.multi_reduction <add>, %119, %cst_42 [0] : vector<8x32xf32> to vector<32xf32>
    %121 = vector.shape_cast %120 : vector<32xf32> to vector<1x32xf32>
    %c2 = arith.constant 2 : index
    %c0_43 = arith.constant 0 : index
    %122 = vector.load %arg14[%c2, %c0_43] : memref<16x32xf32, #tpu.memory_space<vmem>>, vector<1x32xf32>
    tpu.vector_store %arg14[%c2, %c0_43], %121 {strides = array<i32>} : memref<16x32xf32, #tpu.memory_space<vmem>>, vector<1x32xf32>,
    %123 = vector.extract_strided_slice %63 {offsets = [3, 0], sizes = [1, 32], strides = [1, 1]} : vector<16x32xf32> to vector<1x32xf32>
    %124 = vector.broadcast %123 : vector<1x32xf32> to vector<8x32xf32>
    %125 = arith.mulf %124, %69 : vector<8x32xf32>
    %126 = math.exp %125 : vector<8x32xf32>
    %127 = vector.extract_strided_slice %65 {offsets = [0, 3], sizes = [8, 1], strides = [1, 1]} : vector<8x16xf32> to vector<8x1xf32>
    %128 = vector.extract_strided_slice %70 {offsets = [3, 0], sizes = [1, 32], strides = [1, 1]} : vector<16x32xf32> to vector<1x32xf32>
    %129 = vector.broadcast %127 : vector<8x1xf32> to vector<8x32xf32>
    %130 = vector.broadcast %128 : vector<1x32xf32> to vector<8x32xf32>
    %131 = arith.mulf %129, %130 : vector<8x32xf32>
    %132 = arith.mulf %126, %116 : vector<8x32xf32>
    %133 = arith.addf %132, %131 : vector<8x32xf32>
    %134 = vector.extract_strided_slice %67 {offsets = [0, 3], sizes = [8, 1], strides = [1, 1]} : vector<8x16xf32> to vector<8x1xf32>
    %135 = vector.broadcast %134 : vector<8x1xf32> to vector<8x32xf32>
    %136 = arith.mulf %133, %135 : vector<8x32xf32>
    %cst_44 = arith.constant dense<0.000000e+00> : vector<32xf32>
    %137 = vector.multi_reduction <add>, %136, %cst_44 [0] : vector<8x32xf32> to vector<32xf32>
    %138 = vector.shape_cast %137 : vector<32xf32> to vector<1x32xf32>
    %c3 = arith.constant 3 : index
    %c0_45 = arith.constant 0 : index
    %139 = vector.load %arg14[%c3, %c0_45] : memref<16x32xf32, #tpu.memory_space<vmem>>, vector<1x32xf32>
    tpu.vector_store %arg14[%c3, %c0_45], %138 {strides = array<i32>} : memref<16x32xf32, #tpu.memory_space<vmem>>, vector<1x32xf32>,
    %140 = vector.extract_strided_slice %63 {offsets = [4, 0], sizes = [1, 32], strides = [1, 1]} : vector<16x32xf32> to vector<1x32xf32>
    %141 = vector.broadcast %140 : vector<1x32xf32> to vector<8x32xf32>
    %142 = arith.mulf %141, %69 : vector<8x32xf32>
    %143 = math.exp %142 : vector<8x32xf32>
    %144 = vector.extract_strided_slice %65 {offsets = [0, 4], sizes = [8, 1], strides = [1, 1]} : vector<8x16xf32> to vector<8x1xf32>
    %145 = vector.extract_strided_slice %70 {offsets = [4, 0], sizes = [1, 32], strides = [1, 1]} : vector<16x32xf32> to vector<1x32xf32>
    %146 = vector.broadcast %144 : vector<8x1xf32> to vector<8x32xf32>
    %147 = vector.broadcast %145 : vector<1x32xf32> to vector<8x32xf32>
    %148 = arith.mulf %146, %147 : vector<8x32xf32>
    %149 = arith.mulf %143, %133 : vector<8x32xf32>
    %150 = arith.addf %149, %148 : vector<8x32xf32>
    %151 = vector.extract_strided_slice %67 {offsets = [0, 4], sizes = [8, 1], strides = [1, 1]} : vector<8x16xf32> to vector<8x1xf32>
    %152 = vector.broadcast %151 : vector<8x1xf32> to vector<8x32xf32>
    %153 = arith.mulf %150, %152 : vector<8x32xf32>
    %cst_46 = arith.constant dense<0.000000e+00> : vector<32xf32>
    %154 = vector.multi_reduction <add>, %153, %cst_46 [0] : vector<8x32xf32> to vector<32xf32>
    %155 = vector.shape_cast %154 : vector<32xf32> to vector<1x32xf32>
    %c4 = arith.constant 4 : index
    %c0_47 = arith.constant 0 : index
    %156 = vector.load %arg14[%c4, %c0_47] : memref<16x32xf32, #tpu.memory_space<vmem>>, vector<1x32xf32>
    tpu.vector_store %arg14[%c4, %c0_47], %155 {strides = array<i32>} : memref<16x32xf32, #tpu.memory_space<vmem>>, vector<1x32xf32>,
    %157 = vector.extract_strided_slice %63 {offsets = [5, 0], sizes = [1, 32], strides = [1, 1]} : vector<16x32xf32> to vector<1x32xf32>
    %158 = vector.broadcast %157 : vector<1x32xf32> to vector<8x32xf32>
    %159 = arith.mulf %158, %69 : vector<8x32xf32>
    %160 = math.exp %159 : vector<8x32xf32>
    %161 = vector.extract_strided_slice %65 {offsets = [0, 5], sizes = [8, 1], strides = [1, 1]} : vector<8x16xf32> to vector<8x1xf32>
    %162 = vector.extract_strided_slice %70 {offsets = [5, 0], sizes = [1, 32], strides = [1, 1]} : vector<16x32xf32> to vector<1x32xf32>
    %163 = vector.broadcast %161 : vector<8x1xf32> to vector<8x32xf32>
    %164 = vector.broadcast %162 : vector<1x32xf32> to vector<8x32xf32>
    %165 = arith.mulf %163, %164 : vector<8x32xf32>
    %166 = arith.mulf %160, %150 : vector<8x32xf32>
    %167 = arith.addf %166, %165 : vector<8x32xf32>
    %168 = vector.extract_strided_slice %67 {offsets = [0, 5], sizes = [8, 1], strides = [1, 1]} : vector<8x16xf32> to vector<8x1xf32>
    %169 = vector.broadcast %168 : vector<8x1xf32> to vector<8x32xf32>
    %170 = arith.mulf %167, %169 : vector<8x32xf32>
    %cst_48 = arith.constant dense<0.000000e+00> : vector<32xf32>
    %171 = vector.multi_reduction <add>, %170, %cst_48 [0] : vector<8x32xf32> to vector<32xf32>
    %172 = vector.shape_cast %171 : vector<32xf32> to vector<1x32xf32>
    %c5 = arith.constant 5 : index
    %c0_49 = arith.constant 0 : index
    %173 = vector.load %arg14[%c5, %c0_49] : memref<16x32xf32, #tpu.memory_space<vmem>>, vector<1x32xf32>
    tpu.vector_store %arg14[%c5, %c0_49], %172 {strides = array<i32>} : memref<16x32xf32, #tpu.memory_space<vmem>>, vector<1x32xf32>,
    %174 = vector.extract_strided_slice %63 {offsets = [6, 0], sizes = [1, 32], strides = [1, 1]} : vector<16x32xf32> to vector<1x32xf32>
    %175 = vector.broadcast %174 : vector<1x32xf32> to vector<8x32xf32>
    %176 = arith.mulf %175, %69 : vector<8x32xf32>
    %177 = math.exp %176 : vector<8x32xf32>
    %178 = vector.extract_strided_slice %65 {offsets = [0, 6], sizes = [8, 1], strides = [1, 1]} : vector<8x16xf32> to vector<8x1xf32>
    %179 = vector.extract_strided_slice %70 {offsets = [6, 0], sizes = [1, 32], strides = [1, 1]} : vector<16x32xf32> to vector<1x32xf32>
    %180 = vector.broadcast %178 : vector<8x1xf32> to vector<8x32xf32>
    %181 = vector.broadcast %179 : vector<1x32xf32> to vector<8x32xf32>
    %182 = arith.mulf %180, %181 : vector<8x32xf32>
    %183 = arith.mulf %177, %167 : vector<8x32xf32>
    %184 = arith.addf %183, %182 : vector<8x32xf32>
    %185 = vector.extract_strided_slice %67 {offsets = [0, 6], sizes = [8, 1], strides = [1, 1]} : vector<8x16xf32> to vector<8x1xf32>
    %186 = vector.broadcast %185 : vector<8x1xf32> to vector<8x32xf32>
    %187 = arith.mulf %184, %186 : vector<8x32xf32>
    %cst_50 = arith.constant dense<0.000000e+00> : vector<32xf32>
    %188 = vector.multi_reduction <add>, %187, %cst_50 [0] : vector<8x32xf32> to vector<32xf32>
    %189 = vector.shape_cast %188 : vector<32xf32> to vector<1x32xf32>
    %c6 = arith.constant 6 : index
    %c0_51 = arith.constant 0 : index
    %190 = vector.load %arg14[%c6, %c0_51] : memref<16x32xf32, #tpu.memory_space<vmem>>, vector<1x32xf32>
    tpu.vector_store %arg14[%c6, %c0_51], %189 {strides = array<i32>} : memref<16x32xf32, #tpu.memory_space<vmem>>, vector<1x32xf32>,
    %191 = vector.extract_strided_slice %63 {offsets = [7, 0], sizes = [1, 32], strides = [1, 1]} : vector<16x32xf32> to vector<1x32xf32>
    %192 = vector.broadcast %191 : vector<1x32xf32> to vector<8x32xf32>
    %193 = arith.mulf %192, %69 : vector<8x32xf32>
    %194 = math.exp %193 : vector<8x32xf32>
    %195 = vector.extract_strided_slice %65 {offsets = [0, 7], sizes = [8, 1], strides = [1, 1]} : vector<8x16xf32> to vector<8x1xf32>
    %196 = vector.extract_strided_slice %70 {offsets = [7, 0], sizes = [1, 32], strides = [1, 1]} : vector<16x32xf32> to vector<1x32xf32>
    %197 = vector.broadcast %195 : vector<8x1xf32> to vector<8x32xf32>
    %198 = vector.broadcast %196 : vector<1x32xf32> to vector<8x32xf32>
    %199 = arith.mulf %197, %198 : vector<8x32xf32>
    %200 = arith.mulf %194, %184 : vector<8x32xf32>
    %201 = arith.addf %200, %199 : vector<8x32xf32>
    %202 = vector.extract_strided_slice %67 {offsets = [0, 7], sizes = [8, 1], strides = [1, 1]} : vector<8x16xf32> to vector<8x1xf32>
    %203 = vector.broadcast %202 : vector<8x1xf32> to vector<8x32xf32>
    %204 = arith.mulf %201, %203 : vector<8x32xf32>
    %cst_52 = arith.constant dense<0.000000e+00> : vector<32xf32>
    %205 = vector.multi_reduction <add>, %204, %cst_52 [0] : vector<8x32xf32> to vector<32xf32>
    %206 = vector.shape_cast %205 : vector<32xf32> to vector<1x32xf32>
    %c7 = arith.constant 7 : index
    %c0_53 = arith.constant 0 : index
    %207 = vector.load %arg14[%c7, %c0_53] : memref<16x32xf32, #tpu.memory_space<vmem>>, vector<1x32xf32>
    tpu.vector_store %arg14[%c7, %c0_53], %206 {strides = array<i32>} : memref<16x32xf32, #tpu.memory_space<vmem>>, vector<1x32xf32>,
    %208 = vector.extract_strided_slice %63 {offsets = [8, 0], sizes = [1, 32], strides = [1, 1]} : vector<16x32xf32> to vector<1x32xf32>
    %209 = vector.broadcast %208 : vector<1x32xf32> to vector<8x32xf32>
    %210 = arith.mulf %209, %69 : vector<8x32xf32>
    %211 = math.exp %210 : vector<8x32xf32>
    %212 = vector.extract_strided_slice %65 {offsets = [0, 8], sizes = [8, 1], strides = [1, 1]} : vector<8x16xf32> to vector<8x1xf32>
    %213 = vector.extract_strided_slice %70 {offsets = [8, 0], sizes = [1, 32], strides = [1, 1]} : vector<16x32xf32> to vector<1x32xf32>
    %214 = vector.broadcast %212 : vector<8x1xf32> to vector<8x32xf32>
    %215 = vector.broadcast %213 : vector<1x32xf32> to vector<8x32xf32>
    %216 = arith.mulf %214, %215 : vector<8x32xf32>
    %217 = arith.mulf %211, %201 : vector<8x32xf32>
    %218 = arith.addf %217, %216 : vector<8x32xf32>
    %219 = vector.extract_strided_slice %67 {offsets = [0, 8], sizes = [8, 1], strides = [1, 1]} : vector<8x16xf32> to vector<8x1xf32>
    %220 = vector.broadcast %219 : vector<8x1xf32> to vector<8x32xf32>
    %221 = arith.mulf %218, %220 : vector<8x32xf32>
    %cst_54 = arith.constant dense<0.000000e+00> : vector<32xf32>
    %222 = vector.multi_reduction <add>, %221, %cst_54 [0] : vector<8x32xf32> to vector<32xf32>
    %223 = vector.shape_cast %222 : vector<32xf32> to vector<1x32xf32>
    %c8 = arith.constant 8 : index
    %c0_55 = arith.constant 0 : index
    %224 = vector.load %arg14[%c8, %c0_55] : memref<16x32xf32, #tpu.memory_space<vmem>>, vector<1x32xf32>
    tpu.vector_store %arg14[%c8, %c0_55], %223 {strides = array<i32>} : memref<16x32xf32, #tpu.memory_space<vmem>>, vector<1x32xf32>,
    %225 = vector.extract_strided_slice %63 {offsets = [9, 0], sizes = [1, 32], strides = [1, 1]} : vector<16x32xf32> to vector<1x32xf32>
    %226 = vector.broadcast %225 : vector<1x32xf32> to vector<8x32xf32>
    %227 = arith.mulf %226, %69 : vector<8x32xf32>
    %228 = math.exp %227 : vector<8x32xf32>
    %229 = vector.extract_strided_slice %65 {offsets = [0, 9], sizes = [8, 1], strides = [1, 1]} : vector<8x16xf32> to vector<8x1xf32>
    %230 = vector.extract_strided_slice %70 {offsets = [9, 0], sizes = [1, 32], strides = [1, 1]} : vector<16x32xf32> to vector<1x32xf32>
    %231 = vector.broadcast %229 : vector<8x1xf32> to vector<8x32xf32>
    %232 = vector.broadcast %230 : vector<1x32xf32> to vector<8x32xf32>
    %233 = arith.mulf %231, %232 : vector<8x32xf32>
    %234 = arith.mulf %228, %218 : vector<8x32xf32>
    %235 = arith.addf %234, %233 : vector<8x32xf32>
    %236 = vector.extract_strided_slice %67 {offsets = [0, 9], sizes = [8, 1], strides = [1, 1]} : vector<8x16xf32> to vector<8x1xf32>
    %237 = vector.broadcast %236 : vector<8x1xf32> to vector<8x32xf32>
    %238 = arith.mulf %235, %237 : vector<8x32xf32>
    %cst_56 = arith.constant dense<0.000000e+00> : vector<32xf32>
    %239 = vector.multi_reduction <add>, %238, %cst_56 [0] : vector<8x32xf32> to vector<32xf32>
    %240 = vector.shape_cast %239 : vector<32xf32> to vector<1x32xf32>
    %c9 = arith.constant 9 : index
    %c0_57 = arith.constant 0 : index
    %241 = vector.load %arg14[%c9, %c0_57] : memref<16x32xf32, #tpu.memory_space<vmem>>, vector<1x32xf32>
    tpu.vector_store %arg14[%c9, %c0_57], %240 {strides = array<i32>} : memref<16x32xf32, #tpu.memory_space<vmem>>, vector<1x32xf32>,
    %242 = vector.extract_strided_slice %63 {offsets = [10, 0], sizes = [1, 32], strides = [1, 1]} : vector<16x32xf32> to vector<1x32xf32>
    %243 = vector.broadcast %242 : vector<1x32xf32> to vector<8x32xf32>
    %244 = arith.mulf %243, %69 : vector<8x32xf32>
    %245 = math.exp %244 : vector<8x32xf32>
    %246 = vector.extract_strided_slice %65 {offsets = [0, 10], sizes = [8, 1], strides = [1, 1]} : vector<8x16xf32> to vector<8x1xf32>
    %247 = vector.extract_strided_slice %70 {offsets = [10, 0], sizes = [1, 32], strides = [1, 1]} : vector<16x32xf32> to vector<1x32xf32>
    %248 = vector.broadcast %246 : vector<8x1xf32> to vector<8x32xf32>
    %249 = vector.broadcast %247 : vector<1x32xf32> to vector<8x32xf32>
    %250 = arith.mulf %248, %249 : vector<8x32xf32>
    %251 = arith.mulf %245, %235 : vector<8x32xf32>
    %252 = arith.addf %251, %250 : vector<8x32xf32>
    %253 = vector.extract_strided_slice %67 {offsets = [0, 10], sizes = [8, 1], strides = [1, 1]} : vector<8x16xf32> to vector<8x1xf32>
    %254 = vector.broadcast %253 : vector<8x1xf32> to vector<8x32xf32>
    %255 = arith.mulf %252, %254 : vector<8x32xf32>
    %cst_58 = arith.constant dense<0.000000e+00> : vector<32xf32>
    %256 = vector.multi_reduction <add>, %255, %cst_58 [0] : vector<8x32xf32> to vector<32xf32>
    %257 = vector.shape_cast %256 : vector<32xf32> to vector<1x32xf32>
    %c10 = arith.constant 10 : index
    %c0_59 = arith.constant 0 : index
    %258 = vector.load %arg14[%c10, %c0_59] : memref<16x32xf32, #tpu.memory_space<vmem>>, vector<1x32xf32>
    tpu.vector_store %arg14[%c10, %c0_59], %257 {strides = array<i32>} : memref<16x32xf32, #tpu.memory_space<vmem>>, vector<1x32xf32>,
    %259 = vector.extract_strided_slice %63 {offsets = [11, 0], sizes = [1, 32], strides = [1, 1]} : vector<16x32xf32> to vector<1x32xf32>
    %260 = vector.broadcast %259 : vector<1x32xf32> to vector<8x32xf32>
    %261 = arith.mulf %260, %69 : vector<8x32xf32>
    %262 = math.exp %261 : vector<8x32xf32>
    %263 = vector.extract_strided_slice %65 {offsets = [0, 11], sizes = [8, 1], strides = [1, 1]} : vector<8x16xf32> to vector<8x1xf32>
    %264 = vector.extract_strided_slice %70 {offsets = [11, 0], sizes = [1, 32], strides = [1, 1]} : vector<16x32xf32> to vector<1x32xf32>
    %265 = vector.broadcast %263 : vector<8x1xf32> to vector<8x32xf32>
    %266 = vector.broadcast %264 : vector<1x32xf32> to vector<8x32xf32>
    %267 = arith.mulf %265, %266 : vector<8x32xf32>
    %268 = arith.mulf %262, %252 : vector<8x32xf32>
    %269 = arith.addf %268, %267 : vector<8x32xf32>
    %270 = vector.extract_strided_slice %67 {offsets = [0, 11], sizes = [8, 1], strides = [1, 1]} : vector<8x16xf32> to vector<8x1xf32>
    %271 = vector.broadcast %270 : vector<8x1xf32> to vector<8x32xf32>
    %272 = arith.mulf %269, %271 : vector<8x32xf32>
    %cst_60 = arith.constant dense<0.000000e+00> : vector<32xf32>
    %273 = vector.multi_reduction <add>, %272, %cst_60 [0] : vector<8x32xf32> to vector<32xf32>
    %274 = vector.shape_cast %273 : vector<32xf32> to vector<1x32xf32>
    %c11 = arith.constant 11 : index
    %c0_61 = arith.constant 0 : index
    %275 = vector.load %arg14[%c11, %c0_61] : memref<16x32xf32, #tpu.memory_space<vmem>>, vector<1x32xf32>
    tpu.vector_store %arg14[%c11, %c0_61], %274 {strides = array<i32>} : memref<16x32xf32, #tpu.memory_space<vmem>>, vector<1x32xf32>,
    %276 = vector.extract_strided_slice %63 {offsets = [12, 0], sizes = [1, 32], strides = [1, 1]} : vector<16x32xf32> to vector<1x32xf32>
    %277 = vector.broadcast %276 : vector<1x32xf32> to vector<8x32xf32>
    %278 = arith.mulf %277, %69 : vector<8x32xf32>
    %279 = math.exp %278 : vector<8x32xf32>
    %280 = vector.extract_strided_slice %65 {offsets = [0, 12], sizes = [8, 1], strides = [1, 1]} : vector<8x16xf32> to vector<8x1xf32>
    %281 = vector.extract_strided_slice %70 {offsets = [12, 0], sizes = [1, 32], strides = [1, 1]} : vector<16x32xf32> to vector<1x32xf32>
    %282 = vector.broadcast %280 : vector<8x1xf32> to vector<8x32xf32>
    %283 = vector.broadcast %281 : vector<1x32xf32> to vector<8x32xf32>
    %284 = arith.mulf %282, %283 : vector<8x32xf32>
    %285 = arith.mulf %279, %269 : vector<8x32xf32>
    %286 = arith.addf %285, %284 : vector<8x32xf32>
    %287 = vector.extract_strided_slice %67 {offsets = [0, 12], sizes = [8, 1], strides = [1, 1]} : vector<8x16xf32> to vector<8x1xf32>
    %288 = vector.broadcast %287 : vector<8x1xf32> to vector<8x32xf32>
    %289 = arith.mulf %286, %288 : vector<8x32xf32>
    %cst_62 = arith.constant dense<0.000000e+00> : vector<32xf32>
    %290 = vector.multi_reduction <add>, %289, %cst_62 [0] : vector<8x32xf32> to vector<32xf32>
    %291 = vector.shape_cast %290 : vector<32xf32> to vector<1x32xf32>
    %c12 = arith.constant 12 : index
    %c0_63 = arith.constant 0 : index
    %292 = vector.load %arg14[%c12, %c0_63] : memref<16x32xf32, #tpu.memory_space<vmem>>, vector<1x32xf32>
    tpu.vector_store %arg14[%c12, %c0_63], %291 {strides = array<i32>} : memref<16x32xf32, #tpu.memory_space<vmem>>, vector<1x32xf32>,
    %293 = vector.extract_strided_slice %63 {offsets = [13, 0], sizes = [1, 32], strides = [1, 1]} : vector<16x32xf32> to vector<1x32xf32>
    %294 = vector.broadcast %293 : vector<1x32xf32> to vector<8x32xf32>
    %295 = arith.mulf %294, %69 : vector<8x32xf32>
    %296 = math.exp %295 : vector<8x32xf32>
    %297 = vector.extract_strided_slice %65 {offsets = [0, 13], sizes = [8, 1], strides = [1, 1]} : vector<8x16xf32> to vector<8x1xf32>
    %298 = vector.extract_strided_slice %70 {offsets = [13, 0], sizes = [1, 32], strides = [1, 1]} : vector<16x32xf32> to vector<1x32xf32>
    %299 = vector.broadcast %297 : vector<8x1xf32> to vector<8x32xf32>
    %300 = vector.broadcast %298 : vector<1x32xf32> to vector<8x32xf32>
    %301 = arith.mulf %299, %300 : vector<8x32xf32>
    %302 = arith.mulf %296, %286 : vector<8x32xf32>
    %303 = arith.addf %302, %301 : vector<8x32xf32>
    %304 = vector.extract_strided_slice %67 {offsets = [0, 13], sizes = [8, 1], strides = [1, 1]} : vector<8x16xf32> to vector<8x1xf32>
    %305 = vector.broadcast %304 : vector<8x1xf32> to vector<8x32xf32>
    %306 = arith.mulf %303, %305 : vector<8x32xf32>
    %cst_64 = arith.constant dense<0.000000e+00> : vector<32xf32>
    %307 = vector.multi_reduction <add>, %306, %cst_64 [0] : vector<8x32xf32> to vector<32xf32>
    %308 = vector.shape_cast %307 : vector<32xf32> to vector<1x32xf32>
    %c13 = arith.constant 13 : index
    %c0_65 = arith.constant 0 : index
    %309 = vector.load %arg14[%c13, %c0_65] : memref<16x32xf32, #tpu.memory_space<vmem>>, vector<1x32xf32>
    tpu.vector_store %arg14[%c13, %c0_65], %308 {strides = array<i32>} : memref<16x32xf32, #tpu.memory_space<vmem>>, vector<1x32xf32>,
    %310 = vector.extract_strided_slice %63 {offsets = [14, 0], sizes = [1, 32], strides = [1, 1]} : vector<16x32xf32> to vector<1x32xf32>
    %311 = vector.broadcast %310 : vector<1x32xf32> to vector<8x32xf32>
    %312 = arith.mulf %311, %69 : vector<8x32xf32>
    %313 = math.exp %312 : vector<8x32xf32>
    %314 = vector.extract_strided_slice %65 {offsets = [0, 14], sizes = [8, 1], strides = [1, 1]} : vector<8x16xf32> to vector<8x1xf32>
    %315 = vector.extract_strided_slice %70 {offsets = [14, 0], sizes = [1, 32], strides = [1, 1]} : vector<16x32xf32> to vector<1x32xf32>
    %316 = vector.broadcast %314 : vector<8x1xf32> to vector<8x32xf32>
    %317 = vector.broadcast %315 : vector<1x32xf32> to vector<8x32xf32>
    %318 = arith.mulf %316, %317 : vector<8x32xf32>
    %319 = arith.mulf %313, %303 : vector<8x32xf32>
    %320 = arith.addf %319, %318 : vector<8x32xf32>
    %321 = vector.extract_strided_slice %67 {offsets = [0, 14], sizes = [8, 1], strides = [1, 1]} : vector<8x16xf32> to vector<8x1xf32>
    %322 = vector.broadcast %321 : vector<8x1xf32> to vector<8x32xf32>
    %323 = arith.mulf %320, %322 : vector<8x32xf32>
    %cst_66 = arith.constant dense<0.000000e+00> : vector<32xf32>
    %324 = vector.multi_reduction <add>, %323, %cst_66 [0] : vector<8x32xf32> to vector<32xf32>
    %325 = vector.shape_cast %324 : vector<32xf32> to vector<1x32xf32>
    %c14 = arith.constant 14 : index
    %c0_67 = arith.constant 0 : index
    %326 = vector.load %arg14[%c14, %c0_67] : memref<16x32xf32, #tpu.memory_space<vmem>>, vector<1x32xf32>
    tpu.vector_store %arg14[%c14, %c0_67], %325 {strides = array<i32>} : memref<16x32xf32, #tpu.memory_space<vmem>>, vector<1x32xf32>,
    %327 = vector.extract_strided_slice %63 {offsets = [15, 0], sizes = [1, 32], strides = [1, 1]} : vector<16x32xf32> to vector<1x32xf32>
    %328 = vector.broadcast %327 : vector<1x32xf32> to vector<8x32xf32>
    %329 = arith.mulf %328, %69 : vector<8x32xf32>
    %330 = math.exp %329 : vector<8x32xf32>
    %331 = vector.extract_strided_slice %65 {offsets = [0, 15], sizes = [8, 1], strides = [1, 1]} : vector<8x16xf32> to vector<8x1xf32>
    %332 = vector.extract_strided_slice %70 {offsets = [15, 0], sizes = [1, 32], strides = [1, 1]} : vector<16x32xf32> to vector<1x32xf32>
    %333 = vector.broadcast %331 : vector<8x1xf32> to vector<8x32xf32>
    %334 = vector.broadcast %332 : vector<1x32xf32> to vector<8x32xf32>
    %335 = arith.mulf %333, %334 : vector<8x32xf32>
    %336 = arith.mulf %330, %320 : vector<8x32xf32>
    %337 = arith.addf %336, %335 : vector<8x32xf32>
    %338 = vector.extract_strided_slice %67 {offsets = [0, 15], sizes = [8, 1], strides = [1, 1]} : vector<8x16xf32> to vector<8x1xf32>
    %339 = vector.broadcast %338 : vector<8x1xf32> to vector<8x32xf32>
    %340 = arith.mulf %337, %339 : vector<8x32xf32>
    %cst_68 = arith.constant dense<0.000000e+00> : vector<32xf32>
    %341 = vector.multi_reduction <add>, %340, %cst_68 [0] : vector<8x32xf32> to vector<32xf32>
    %342 = vector.shape_cast %341 : vector<32xf32> to vector<1x32xf32>
    %c15 = arith.constant 15 : index
    %c0_69 = arith.constant 0 : index
    %343 = vector.load %arg14[%c15, %c0_69] : memref<16x32xf32, #tpu.memory_space<vmem>>, vector<1x32xf32>
    tpu.vector_store %arg14[%c15, %c0_69], %342 {strides = array<i32>} : memref<16x32xf32, #tpu.memory_space<vmem>>, vector<1x32xf32>,
    %c0_70 = arith.constant 0 : index
    %c0_71 = arith.constant 0 : index
    %344 = vector.load %arg14[%c0_70, %c0_71] : memref<16x32xf32, #tpu.memory_space<vmem>>, vector<16x32xf32>
    %c0_72 = arith.constant 0 : index
    %c0_73 = arith.constant 0 : index
    %c0_74 = arith.constant 0 : index
    %345 = vector.load %arg11[%c0_72, %c0_73, %c0_74] : memref<2x1x32xf32, #tpu.memory_space<vmem>>, vector<1x1x32xf32>
    %346 = vector.shape_cast %345 : vector<1x1x32xf32> to vector<1x32xf32>
    %347 = vector.broadcast %346 : vector<1x32xf32> to vector<16x32xf32>
    %348 = arith.mulf %347, %47 : vector<16x32xf32>
    %349 = arith.addf %344, %348 : vector<16x32xf32>
    %c1_75 = arith.constant 1 : index
    %c0_76 = arith.constant 0 : index
    %c0_77 = arith.constant 0 : index
    %350 = vector.load %arg6[%c1_75, %c0_76, %c0_77] : memref<2x32x32xf32, #tpu.memory_space<vmem>>, vector<1x32x32xf32>
    %351 = vector.shape_cast %350 : vector<1x32x32xf32> to vector<32x32xf32>
    %cst_78 = arith.constant dense<0.000000e+00> : vector<16x32xf32>
    %352 = tpu.matmul %32, %351, %cst_78 {dimension_numbers = #tpu.dot_dimension_numbers<[1], [0], [0], [1], [0, 0, 1, 1], [], []>} : vector<16x32xf32>, vector<32x32xf32>, vector<16x32xf32> -> vector<16x32xf32>
    %c1_79 = arith.constant 1 : index
    %c0_80 = arith.constant 0 : index
    %c0_81 = arith.constant 0 : index
    %353 = vector.load %arg7[%c1_79, %c0_80, %c0_81] : memref<2x1x32xf32, #tpu.memory_space<vmem>>, vector<1x1x32xf32>
    %354 = vector.shape_cast %353 : vector<1x1x32xf32> to vector<1x32xf32>
    %355 = vector.broadcast %354 : vector<1x32xf32> to vector<16x32xf32>
    %356 = arith.addf %352, %355 : vector<16x32xf32>
    %cst_82 = arith.constant 0.000000e+00 : f32
    %357 = vector.broadcast %cst_82 : f32 to vector<16x32xf32>
    %358 = arith.maximumf %356, %357 : vector<16x32xf32>
    %359 = math.absf %356 : vector<16x32xf32>
    %cst_83 = arith.constant 0.000000e+00 : f32
    %360 = vector.broadcast %cst_83 : f32 to vector<16x32xf32>
    %361 = arith.subf %360, %359 : vector<16x32xf32>
    %362 = math.exp %361 : vector<16x32xf32>
    %363 = math.log1p %362 : vector<16x32xf32>
    %364 = arith.addf %358, %363 : vector<16x32xf32>
    %c1_84 = arith.constant 1 : index
    %c0_85 = arith.constant 0 : index
    %c0_86 = arith.constant 0 : index
    %365 = vector.load %arg8[%c1_84, %c0_85, %c0_86] : memref<2x32x48xf32, #tpu.memory_space<vmem>>, vector<1x32x48xf32>
    %366 = vector.shape_cast %365 : vector<1x32x48xf32> to vector<32x48xf32>
    %cst_87 = arith.constant dense<0.000000e+00> : vector<16x48xf32>
    %367 = tpu.matmul %364, %366, %cst_87 {dimension_numbers = #tpu.dot_dimension_numbers<[1], [0], [0], [1], [0, 0, 1, 1], [], []>} : vector<16x32xf32>, vector<32x48xf32>, vector<16x48xf32> -> vector<16x48xf32>
    %c1_88 = arith.constant 1 : index
    %c0_89 = arith.constant 0 : index
    %c0_90 = arith.constant 0 : index
    %368 = vector.load %arg9[%c1_88, %c0_89, %c0_90] : memref<2x1x48xf32, #tpu.memory_space<vmem>>, vector<1x1x48xf32>
    %369 = vector.shape_cast %368 : vector<1x1x48xf32> to vector<1x48xf32>
    %370 = vector.broadcast %369 : vector<1x48xf32> to vector<16x48xf32>
    %371 = arith.addf %367, %370 : vector<16x48xf32>
    %372 = vector.extract_strided_slice %371 {offsets = [0, 0], sizes = [16, 32], strides = [1, 1]} : vector<16x48xf32> to vector<16x32xf32>
    %cst_91 = arith.constant 0.000000e+00 : f32
    %373 = vector.broadcast %cst_91 : f32 to vector<16x32xf32>
    %374 = arith.maximumf %372, %373 : vector<16x32xf32>
    %375 = math.absf %372 : vector<16x32xf32>
    %cst_92 = arith.constant 0.000000e+00 : f32
    %376 = vector.broadcast %cst_92 : f32 to vector<16x32xf32>
    %377 = arith.subf %376, %375 : vector<16x32xf32>
    %378 = math.exp %377 : vector<16x32xf32>
    %379 = math.log1p %378 : vector<16x32xf32>
    %380 = arith.addf %374, %379 : vector<16x32xf32>
    %381 = vector.extract_strided_slice %371 {offsets = [0, 32], sizes = [16, 8], strides = [1, 1]} : vector<16x48xf32> to vector<16x8xf32>
    %382 = tpu.transpose %381, [1, 0] : vector<16x8xf32> -> vector<8x16xf32>
    %383 = vector.extract_strided_slice %371 {offsets = [0, 40], sizes = [16, 8], strides = [1, 1]} : vector<16x48xf32> to vector<16x8xf32>
    %384 = tpu.transpose %383, [1, 0] : vector<16x8xf32> -> vector<8x16xf32>
    %c1_93 = arith.constant 1 : index
    %c0_94 = arith.constant 0 : index
    %c0_95 = arith.constant 0 : index
    %385 = vector.load %arg10[%c1_93, %c0_94, %c0_95] : memref<2x8x32xf32, #tpu.memory_space<vmem>>, vector<1x8x32xf32>
    %386 = vector.shape_cast %385 : vector<1x8x32xf32> to vector<8x32xf32>
    %387 = arith.mulf %380, %364 : vector<16x32xf32>
    %cst_96 = arith.constant 0.000000e+00 : f32
    %388 = vector.broadcast %cst_96 : f32 to vector<8x32xf32>
    %389 = vector.extract_strided_slice %380 {offsets = [15, 0], sizes = [1, 32], strides = [1, 1]} : vector<16x32xf32> to vector<1x32xf32>
    %390 = vector.broadcast %389 : vector<1x32xf32> to vector<8x32xf32>
    %391 = arith.mulf %390, %386 : vector<8x32xf32>
    %392 = math.exp %391 : vector<8x32xf32>
    %393 = vector.extract_strided_slice %382 {offsets = [0, 15], sizes = [8, 1], strides = [1, 1]} : vector<8x16xf32> to vector<8x1xf32>
    %394 = vector.extract_strided_slice %387 {offsets = [15, 0], sizes = [1, 32], strides = [1, 1]} : vector<16x32xf32> to vector<1x32xf32>
    %395 = vector.broadcast %393 : vector<8x1xf32> to vector<8x32xf32>
    %396 = vector.broadcast %394 : vector<1x32xf32> to vector<8x32xf32>
    %397 = arith.mulf %395, %396 : vector<8x32xf32>
    %398 = arith.mulf %392, %388 : vector<8x32xf32>
    %399 = arith.addf %398, %397 : vector<8x32xf32>
    %400 = vector.extract_strided_slice %384 {offsets = [0, 15], sizes = [8, 1], strides = [1, 1]} : vector<8x16xf32> to vector<8x1xf32>
    %401 = vector.broadcast %400 : vector<8x1xf32> to vector<8x32xf32>
    %402 = arith.mulf %399, %401 : vector<8x32xf32>
    %cst_97 = arith.constant dense<0.000000e+00> : vector<32xf32>
    %403 = vector.multi_reduction <add>, %402, %cst_97 [0] : vector<8x32xf32> to vector<32xf32>
    %404 = vector.shape_cast %403 : vector<32xf32> to vector<1x32xf32>
    %c15_98 = arith.constant 15 : index
    %c0_99 = arith.constant 0 : index
    %405 = vector.load %arg14[%c15_98, %c0_99] : memref<16x32xf32, #tpu.memory_space<vmem>>, vector<1x32xf32>
    tpu.vector_store %arg14[%c15_98, %c0_99], %404 {strides = array<i32>} : memref<16x32xf32, #tpu.memory_space<vmem>>, vector<1x32xf32>,
    %406 = vector.extract_strided_slice %380 {offsets = [14, 0], sizes = [1, 32], strides = [1, 1]} : vector<16x32xf32> to vector<1x32xf32>
    %407 = vector.broadcast %406 : vector<1x32xf32> to vector<8x32xf32>
    %408 = arith.mulf %407, %386 : vector<8x32xf32>
    %409 = math.exp %408 : vector<8x32xf32>
    %410 = vector.extract_strided_slice %382 {offsets = [0, 14], sizes = [8, 1], strides = [1, 1]} : vector<8x16xf32> to vector<8x1xf32>
    %411 = vector.extract_strided_slice %387 {offsets = [14, 0], sizes = [1, 32], strides = [1, 1]} : vector<16x32xf32> to vector<1x32xf32>
    %412 = vector.broadcast %410 : vector<8x1xf32> to vector<8x32xf32>
    %413 = vector.broadcast %411 : vector<1x32xf32> to vector<8x32xf32>
    %414 = arith.mulf %412, %413 : vector<8x32xf32>
    %415 = arith.mulf %409, %399 : vector<8x32xf32>
    %416 = arith.addf %415, %414 : vector<8x32xf32>
    %417 = vector.extract_strided_slice %384 {offsets = [0, 14], sizes = [8, 1], strides = [1, 1]} : vector<8x16xf32> to vector<8x1xf32>
    %418 = vector.broadcast %417 : vector<8x1xf32> to vector<8x32xf32>
    %419 = arith.mulf %416, %418 : vector<8x32xf32>
    %cst_100 = arith.constant dense<0.000000e+00> : vector<32xf32>
    %420 = vector.multi_reduction <add>, %419, %cst_100 [0] : vector<8x32xf32> to vector<32xf32>
    %421 = vector.shape_cast %420 : vector<32xf32> to vector<1x32xf32>
    %c14_101 = arith.constant 14 : index
    %c0_102 = arith.constant 0 : index
    %422 = vector.load %arg14[%c14_101, %c0_102] : memref<16x32xf32, #tpu.memory_space<vmem>>, vector<1x32xf32>
    tpu.vector_store %arg14[%c14_101, %c0_102], %421 {strides = array<i32>} : memref<16x32xf32, #tpu.memory_space<vmem>>, vector<1x32xf32>,
    %423 = vector.extract_strided_slice %380 {offsets = [13, 0], sizes = [1, 32], strides = [1, 1]} : vector<16x32xf32> to vector<1x32xf32>
    %424 = vector.broadcast %423 : vector<1x32xf32> to vector<8x32xf32>
    %425 = arith.mulf %424, %386 : vector<8x32xf32>
    %426 = math.exp %425 : vector<8x32xf32>
    %427 = vector.extract_strided_slice %382 {offsets = [0, 13], sizes = [8, 1], strides = [1, 1]} : vector<8x16xf32> to vector<8x1xf32>
    %428 = vector.extract_strided_slice %387 {offsets = [13, 0], sizes = [1, 32], strides = [1, 1]} : vector<16x32xf32> to vector<1x32xf32>
    %429 = vector.broadcast %427 : vector<8x1xf32> to vector<8x32xf32>
    %430 = vector.broadcast %428 : vector<1x32xf32> to vector<8x32xf32>
    %431 = arith.mulf %429, %430 : vector<8x32xf32>
    %432 = arith.mulf %426, %416 : vector<8x32xf32>
    %433 = arith.addf %432, %431 : vector<8x32xf32>
    %434 = vector.extract_strided_slice %384 {offsets = [0, 13], sizes = [8, 1], strides = [1, 1]} : vector<8x16xf32> to vector<8x1xf32>
    %435 = vector.broadcast %434 : vector<8x1xf32> to vector<8x32xf32>
    %436 = arith.mulf %433, %435 : vector<8x32xf32>
    %cst_103 = arith.constant dense<0.000000e+00> : vector<32xf32>
    %437 = vector.multi_reduction <add>, %436, %cst_103 [0] : vector<8x32xf32> to vector<32xf32>
    %438 = vector.shape_cast %437 : vector<32xf32> to vector<1x32xf32>
    %c13_104 = arith.constant 13 : index
    %c0_105 = arith.constant 0 : index
    %439 = vector.load %arg14[%c13_104, %c0_105] : memref<16x32xf32, #tpu.memory_space<vmem>>, vector<1x32xf32>
    tpu.vector_store %arg14[%c13_104, %c0_105], %438 {strides = array<i32>} : memref<16x32xf32, #tpu.memory_space<vmem>>, vector<1x32xf32>,
    %440 = vector.extract_strided_slice %380 {offsets = [12, 0], sizes = [1, 32], strides = [1, 1]} : vector<16x32xf32> to vector<1x32xf32>
    %441 = vector.broadcast %440 : vector<1x32xf32> to vector<8x32xf32>
    %442 = arith.mulf %441, %386 : vector<8x32xf32>
    %443 = math.exp %442 : vector<8x32xf32>
    %444 = vector.extract_strided_slice %382 {offsets = [0, 12], sizes = [8, 1], strides = [1, 1]} : vector<8x16xf32> to vector<8x1xf32>
    %445 = vector.extract_strided_slice %387 {offsets = [12, 0], sizes = [1, 32], strides = [1, 1]} : vector<16x32xf32> to vector<1x32xf32>
    %446 = vector.broadcast %444 : vector<8x1xf32> to vector<8x32xf32>
    %447 = vector.broadcast %445 : vector<1x32xf32> to vector<8x32xf32>
    %448 = arith.mulf %446, %447 : vector<8x32xf32>
    %449 = arith.mulf %443, %433 : vector<8x32xf32>
    %450 = arith.addf %449, %448 : vector<8x32xf32>
    %451 = vector.extract_strided_slice %384 {offsets = [0, 12], sizes = [8, 1], strides = [1, 1]} : vector<8x16xf32> to vector<8x1xf32>
    %452 = vector.broadcast %451 : vector<8x1xf32> to vector<8x32xf32>
    %453 = arith.mulf %450, %452 : vector<8x32xf32>
    %cst_106 = arith.constant dense<0.000000e+00> : vector<32xf32>
    %454 = vector.multi_reduction <add>, %453, %cst_106 [0] : vector<8x32xf32> to vector<32xf32>
    %455 = vector.shape_cast %454 : vector<32xf32> to vector<1x32xf32>
    %c12_107 = arith.constant 12 : index
    %c0_108 = arith.constant 0 : index
    %456 = vector.load %arg14[%c12_107, %c0_108] : memref<16x32xf32, #tpu.memory_space<vmem>>, vector<1x32xf32>
    tpu.vector_store %arg14[%c12_107, %c0_108], %455 {strides = array<i32>} : memref<16x32xf32, #tpu.memory_space<vmem>>, vector<1x32xf32>,
    %457 = vector.extract_strided_slice %380 {offsets = [11, 0], sizes = [1, 32], strides = [1, 1]} : vector<16x32xf32> to vector<1x32xf32>
    %458 = vector.broadcast %457 : vector<1x32xf32> to vector<8x32xf32>
    %459 = arith.mulf %458, %386 : vector<8x32xf32>
    %460 = math.exp %459 : vector<8x32xf32>
    %461 = vector.extract_strided_slice %382 {offsets = [0, 11], sizes = [8, 1], strides = [1, 1]} : vector<8x16xf32> to vector<8x1xf32>
    %462 = vector.extract_strided_slice %387 {offsets = [11, 0], sizes = [1, 32], strides = [1, 1]} : vector<16x32xf32> to vector<1x32xf32>
    %463 = vector.broadcast %461 : vector<8x1xf32> to vector<8x32xf32>
    %464 = vector.broadcast %462 : vector<1x32xf32> to vector<8x32xf32>
    %465 = arith.mulf %463, %464 : vector<8x32xf32>
    %466 = arith.mulf %460, %450 : vector<8x32xf32>
    %467 = arith.addf %466, %465 : vector<8x32xf32>
    %468 = vector.extract_strided_slice %384 {offsets = [0, 11], sizes = [8, 1], strides = [1, 1]} : vector<8x16xf32> to vector<8x1xf32>
    %469 = vector.broadcast %468 : vector<8x1xf32> to vector<8x32xf32>
    %470 = arith.mulf %467, %469 : vector<8x32xf32>
    %cst_109 = arith.constant dense<0.000000e+00> : vector<32xf32>
    %471 = vector.multi_reduction <add>, %470, %cst_109 [0] : vector<8x32xf32> to vector<32xf32>
    %472 = vector.shape_cast %471 : vector<32xf32> to vector<1x32xf32>
    %c11_110 = arith.constant 11 : index
    %c0_111 = arith.constant 0 : index
    %473 = vector.load %arg14[%c11_110, %c0_111] : memref<16x32xf32, #tpu.memory_space<vmem>>, vector<1x32xf32>
    tpu.vector_store %arg14[%c11_110, %c0_111], %472 {strides = array<i32>} : memref<16x32xf32, #tpu.memory_space<vmem>>, vector<1x32xf32>,
    %474 = vector.extract_strided_slice %380 {offsets = [10, 0], sizes = [1, 32], strides = [1, 1]} : vector<16x32xf32> to vector<1x32xf32>
    %475 = vector.broadcast %474 : vector<1x32xf32> to vector<8x32xf32>
    %476 = arith.mulf %475, %386 : vector<8x32xf32>
    %477 = math.exp %476 : vector<8x32xf32>
    %478 = vector.extract_strided_slice %382 {offsets = [0, 10], sizes = [8, 1], strides = [1, 1]} : vector<8x16xf32> to vector<8x1xf32>
    %479 = vector.extract_strided_slice %387 {offsets = [10, 0], sizes = [1, 32], strides = [1, 1]} : vector<16x32xf32> to vector<1x32xf32>
    %480 = vector.broadcast %478 : vector<8x1xf32> to vector<8x32xf32>
    %481 = vector.broadcast %479 : vector<1x32xf32> to vector<8x32xf32>
    %482 = arith.mulf %480, %481 : vector<8x32xf32>
    %483 = arith.mulf %477, %467 : vector<8x32xf32>
    %484 = arith.addf %483, %482 : vector<8x32xf32>
    %485 = vector.extract_strided_slice %384 {offsets = [0, 10], sizes = [8, 1], strides = [1, 1]} : vector<8x16xf32> to vector<8x1xf32>
    %486 = vector.broadcast %485 : vector<8x1xf32> to vector<8x32xf32>
    %487 = arith.mulf %484, %486 : vector<8x32xf32>
    %cst_112 = arith.constant dense<0.000000e+00> : vector<32xf32>
    %488 = vector.multi_reduction <add>, %487, %cst_112 [0] : vector<8x32xf32> to vector<32xf32>
    %489 = vector.shape_cast %488 : vector<32xf32> to vector<1x32xf32>
    %c10_113 = arith.constant 10 : index
    %c0_114 = arith.constant 0 : index
    %490 = vector.load %arg14[%c10_113, %c0_114] : memref<16x32xf32, #tpu.memory_space<vmem>>, vector<1x32xf32>
    tpu.vector_store %arg14[%c10_113, %c0_114], %489 {strides = array<i32>} : memref<16x32xf32, #tpu.memory_space<vmem>>, vector<1x32xf32>,
    %491 = vector.extract_strided_slice %380 {offsets = [9, 0], sizes = [1, 32], strides = [1, 1]} : vector<16x32xf32> to vector<1x32xf32>
    %492 = vector.broadcast %491 : vector<1x32xf32> to vector<8x32xf32>
    %493 = arith.mulf %492, %386 : vector<8x32xf32>
    %494 = math.exp %493 : vector<8x32xf32>
    %495 = vector.extract_strided_slice %382 {offsets = [0, 9], sizes = [8, 1], strides = [1, 1]} : vector<8x16xf32> to vector<8x1xf32>
    %496 = vector.extract_strided_slice %387 {offsets = [9, 0], sizes = [1, 32], strides = [1, 1]} : vector<16x32xf32> to vector<1x32xf32>
    %497 = vector.broadcast %495 : vector<8x1xf32> to vector<8x32xf32>
    %498 = vector.broadcast %496 : vector<1x32xf32> to vector<8x32xf32>
    %499 = arith.mulf %497, %498 : vector<8x32xf32>
    %500 = arith.mulf %494, %484 : vector<8x32xf32>
    %501 = arith.addf %500, %499 : vector<8x32xf32>
    %502 = vector.extract_strided_slice %384 {offsets = [0, 9], sizes = [8, 1], strides = [1, 1]} : vector<8x16xf32> to vector<8x1xf32>
    %503 = vector.broadcast %502 : vector<8x1xf32> to vector<8x32xf32>
    %504 = arith.mulf %501, %503 : vector<8x32xf32>
    %cst_115 = arith.constant dense<0.000000e+00> : vector<32xf32>
    %505 = vector.multi_reduction <add>, %504, %cst_115 [0] : vector<8x32xf32> to vector<32xf32>
    %506 = vector.shape_cast %505 : vector<32xf32> to vector<1x32xf32>
    %c9_116 = arith.constant 9 : index
    %c0_117 = arith.constant 0 : index
    %507 = vector.load %arg14[%c9_116, %c0_117] : memref<16x32xf32, #tpu.memory_space<vmem>>, vector<1x32xf32>
    tpu.vector_store %arg14[%c9_116, %c0_117], %506 {strides = array<i32>} : memref<16x32xf32, #tpu.memory_space<vmem>>, vector<1x32xf32>,
    %508 = vector.extract_strided_slice %380 {offsets = [8, 0], sizes = [1, 32], strides = [1, 1]} : vector<16x32xf32> to vector<1x32xf32>
    %509 = vector.broadcast %508 : vector<1x32xf32> to vector<8x32xf32>
    %510 = arith.mulf %509, %386 : vector<8x32xf32>
    %511 = math.exp %510 : vector<8x32xf32>
    %512 = vector.extract_strided_slice %382 {offsets = [0, 8], sizes = [8, 1], strides = [1, 1]} : vector<8x16xf32> to vector<8x1xf32>
    %513 = vector.extract_strided_slice %387 {offsets = [8, 0], sizes = [1, 32], strides = [1, 1]} : vector<16x32xf32> to vector<1x32xf32>
    %514 = vector.broadcast %512 : vector<8x1xf32> to vector<8x32xf32>
    %515 = vector.broadcast %513 : vector<1x32xf32> to vector<8x32xf32>
    %516 = arith.mulf %514, %515 : vector<8x32xf32>
    %517 = arith.mulf %511, %501 : vector<8x32xf32>
    %518 = arith.addf %517, %516 : vector<8x32xf32>
    %519 = vector.extract_strided_slice %384 {offsets = [0, 8], sizes = [8, 1], strides = [1, 1]} : vector<8x16xf32> to vector<8x1xf32>
    %520 = vector.broadcast %519 : vector<8x1xf32> to vector<8x32xf32>
    %521 = arith.mulf %518, %520 : vector<8x32xf32>
    %cst_118 = arith.constant dense<0.000000e+00> : vector<32xf32>
    %522 = vector.multi_reduction <add>, %521, %cst_118 [0] : vector<8x32xf32> to vector<32xf32>
    %523 = vector.shape_cast %522 : vector<32xf32> to vector<1x32xf32>
    %c8_119 = arith.constant 8 : index
    %c0_120 = arith.constant 0 : index
    %524 = vector.load %arg14[%c8_119, %c0_120] : memref<16x32xf32, #tpu.memory_space<vmem>>, vector<1x32xf32>
    tpu.vector_store %arg14[%c8_119, %c0_120], %523 {strides = array<i32>} : memref<16x32xf32, #tpu.memory_space<vmem>>, vector<1x32xf32>,
    %525 = vector.extract_strided_slice %380 {offsets = [7, 0], sizes = [1, 32], strides = [1, 1]} : vector<16x32xf32> to vector<1x32xf32>
    %526 = vector.broadcast %525 : vector<1x32xf32> to vector<8x32xf32>
    %527 = arith.mulf %526, %386 : vector<8x32xf32>
    %528 = math.exp %527 : vector<8x32xf32>
    %529 = vector.extract_strided_slice %382 {offsets = [0, 7], sizes = [8, 1], strides = [1, 1]} : vector<8x16xf32> to vector<8x1xf32>
    %530 = vector.extract_strided_slice %387 {offsets = [7, 0], sizes = [1, 32], strides = [1, 1]} : vector<16x32xf32> to vector<1x32xf32>
    %531 = vector.broadcast %529 : vector<8x1xf32> to vector<8x32xf32>
    %532 = vector.broadcast %530 : vector<1x32xf32> to vector<8x32xf32>
    %533 = arith.mulf %531, %532 : vector<8x32xf32>
    %534 = arith.mulf %528, %518 : vector<8x32xf32>
    %535 = arith.addf %534, %533 : vector<8x32xf32>
    %536 = vector.extract_strided_slice %384 {offsets = [0, 7], sizes = [8, 1], strides = [1, 1]} : vector<8x16xf32> to vector<8x1xf32>
    %537 = vector.broadcast %536 : vector<8x1xf32> to vector<8x32xf32>
    %538 = arith.mulf %535, %537 : vector<8x32xf32>
    %cst_121 = arith.constant dense<0.000000e+00> : vector<32xf32>
    %539 = vector.multi_reduction <add>, %538, %cst_121 [0] : vector<8x32xf32> to vector<32xf32>
    %540 = vector.shape_cast %539 : vector<32xf32> to vector<1x32xf32>
    %c7_122 = arith.constant 7 : index
    %c0_123 = arith.constant 0 : index
    %541 = vector.load %arg14[%c7_122, %c0_123] : memref<16x32xf32, #tpu.memory_space<vmem>>, vector<1x32xf32>
    tpu.vector_store %arg14[%c7_122, %c0_123], %540 {strides = array<i32>} : memref<16x32xf32, #tpu.memory_space<vmem>>, vector<1x32xf32>,
    %542 = vector.extract_strided_slice %380 {offsets = [6, 0], sizes = [1, 32], strides = [1, 1]} : vector<16x32xf32> to vector<1x32xf32>
    %543 = vector.broadcast %542 : vector<1x32xf32> to vector<8x32xf32>
    %544 = arith.mulf %543, %386 : vector<8x32xf32>
    %545 = math.exp %544 : vector<8x32xf32>
    %546 = vector.extract_strided_slice %382 {offsets = [0, 6], sizes = [8, 1], strides = [1, 1]} : vector<8x16xf32> to vector<8x1xf32>
    %547 = vector.extract_strided_slice %387 {offsets = [6, 0], sizes = [1, 32], strides = [1, 1]} : vector<16x32xf32> to vector<1x32xf32>
    %548 = vector.broadcast %546 : vector<8x1xf32> to vector<8x32xf32>
    %549 = vector.broadcast %547 : vector<1x32xf32> to vector<8x32xf32>
    %550 = arith.mulf %548, %549 : vector<8x32xf32>
    %551 = arith.mulf %545, %535 : vector<8x32xf32>
    %552 = arith.addf %551, %550 : vector<8x32xf32>
    %553 = vector.extract_strided_slice %384 {offsets = [0, 6], sizes = [8, 1], strides = [1, 1]} : vector<8x16xf32> to vector<8x1xf32>
    %554 = vector.broadcast %553 : vector<8x1xf32> to vector<8x32xf32>
    %555 = arith.mulf %552, %554 : vector<8x32xf32>
    %cst_124 = arith.constant dense<0.000000e+00> : vector<32xf32>
    %556 = vector.multi_reduction <add>, %555, %cst_124 [0] : vector<8x32xf32> to vector<32xf32>
    %557 = vector.shape_cast %556 : vector<32xf32> to vector<1x32xf32>
    %c6_125 = arith.constant 6 : index
    %c0_126 = arith.constant 0 : index
    %558 = vector.load %arg14[%c6_125, %c0_126] : memref<16x32xf32, #tpu.memory_space<vmem>>, vector<1x32xf32>
    tpu.vector_store %arg14[%c6_125, %c0_126], %557 {strides = array<i32>} : memref<16x32xf32, #tpu.memory_space<vmem>>, vector<1x32xf32>,
    %559 = vector.extract_strided_slice %380 {offsets = [5, 0], sizes = [1, 32], strides = [1, 1]} : vector<16x32xf32> to vector<1x32xf32>
    %560 = vector.broadcast %559 : vector<1x32xf32> to vector<8x32xf32>
    %561 = arith.mulf %560, %386 : vector<8x32xf32>
    %562 = math.exp %561 : vector<8x32xf32>
    %563 = vector.extract_strided_slice %382 {offsets = [0, 5], sizes = [8, 1], strides = [1, 1]} : vector<8x16xf32> to vector<8x1xf32>
    %564 = vector.extract_strided_slice %387 {offsets = [5, 0], sizes = [1, 32], strides = [1, 1]} : vector<16x32xf32> to vector<1x32xf32>
    %565 = vector.broadcast %563 : vector<8x1xf32> to vector<8x32xf32>
    %566 = vector.broadcast %564 : vector<1x32xf32> to vector<8x32xf32>
    %567 = arith.mulf %565, %566 : vector<8x32xf32>
    %568 = arith.mulf %562, %552 : vector<8x32xf32>
    %569 = arith.addf %568, %567 : vector<8x32xf32>
    %570 = vector.extract_strided_slice %384 {offsets = [0, 5], sizes = [8, 1], strides = [1, 1]} : vector<8x16xf32> to vector<8x1xf32>
    %571 = vector.broadcast %570 : vector<8x1xf32> to vector<8x32xf32>
    %572 = arith.mulf %569, %571 : vector<8x32xf32>
    %cst_127 = arith.constant dense<0.000000e+00> : vector<32xf32>
    %573 = vector.multi_reduction <add>, %572, %cst_127 [0] : vector<8x32xf32> to vector<32xf32>
    %574 = vector.shape_cast %573 : vector<32xf32> to vector<1x32xf32>
    %c5_128 = arith.constant 5 : index
    %c0_129 = arith.constant 0 : index
    %575 = vector.load %arg14[%c5_128, %c0_129] : memref<16x32xf32, #tpu.memory_space<vmem>>, vector<1x32xf32>
    tpu.vector_store %arg14[%c5_128, %c0_129], %574 {strides = array<i32>} : memref<16x32xf32, #tpu.memory_space<vmem>>, vector<1x32xf32>,
    %576 = vector.extract_strided_slice %380 {offsets = [4, 0], sizes = [1, 32], strides = [1, 1]} : vector<16x32xf32> to vector<1x32xf32>
    %577 = vector.broadcast %576 : vector<1x32xf32> to vector<8x32xf32>
    %578 = arith.mulf %577, %386 : vector<8x32xf32>
    %579 = math.exp %578 : vector<8x32xf32>
    %580 = vector.extract_strided_slice %382 {offsets = [0, 4], sizes = [8, 1], strides = [1, 1]} : vector<8x16xf32> to vector<8x1xf32>
    %581 = vector.extract_strided_slice %387 {offsets = [4, 0], sizes = [1, 32], strides = [1, 1]} : vector<16x32xf32> to vector<1x32xf32>
    %582 = vector.broadcast %580 : vector<8x1xf32> to vector<8x32xf32>
    %583 = vector.broadcast %581 : vector<1x32xf32> to vector<8x32xf32>
    %584 = arith.mulf %582, %583 : vector<8x32xf32>
    %585 = arith.mulf %579, %569 : vector<8x32xf32>
    %586 = arith.addf %585, %584 : vector<8x32xf32>
    %587 = vector.extract_strided_slice %384 {offsets = [0, 4], sizes = [8, 1], strides = [1, 1]} : vector<8x16xf32> to vector<8x1xf32>
    %588 = vector.broadcast %587 : vector<8x1xf32> to vector<8x32xf32>
    %589 = arith.mulf %586, %588 : vector<8x32xf32>
    %cst_130 = arith.constant dense<0.000000e+00> : vector<32xf32>
    %590 = vector.multi_reduction <add>, %589, %cst_130 [0] : vector<8x32xf32> to vector<32xf32>
    %591 = vector.shape_cast %590 : vector<32xf32> to vector<1x32xf32>
    %c4_131 = arith.constant 4 : index
    %c0_132 = arith.constant 0 : index
    %592 = vector.load %arg14[%c4_131, %c0_132] : memref<16x32xf32, #tpu.memory_space<vmem>>, vector<1x32xf32>
    tpu.vector_store %arg14[%c4_131, %c0_132], %591 {strides = array<i32>} : memref<16x32xf32, #tpu.memory_space<vmem>>, vector<1x32xf32>,
    %593 = vector.extract_strided_slice %380 {offsets = [3, 0], sizes = [1, 32], strides = [1, 1]} : vector<16x32xf32> to vector<1x32xf32>
    %594 = vector.broadcast %593 : vector<1x32xf32> to vector<8x32xf32>
    %595 = arith.mulf %594, %386 : vector<8x32xf32>
    %596 = math.exp %595 : vector<8x32xf32>
    %597 = vector.extract_strided_slice %382 {offsets = [0, 3], sizes = [8, 1], strides = [1, 1]} : vector<8x16xf32> to vector<8x1xf32>
    %598 = vector.extract_strided_slice %387 {offsets = [3, 0], sizes = [1, 32], strides = [1, 1]} : vector<16x32xf32> to vector<1x32xf32>
    %599 = vector.broadcast %597 : vector<8x1xf32> to vector<8x32xf32>
    %600 = vector.broadcast %598 : vector<1x32xf32> to vector<8x32xf32>
    %601 = arith.mulf %599, %600 : vector<8x32xf32>
    %602 = arith.mulf %596, %586 : vector<8x32xf32>
    %603 = arith.addf %602, %601 : vector<8x32xf32>
    %604 = vector.extract_strided_slice %384 {offsets = [0, 3], sizes = [8, 1], strides = [1, 1]} : vector<8x16xf32> to vector<8x1xf32>
    %605 = vector.broadcast %604 : vector<8x1xf32> to vector<8x32xf32>
    %606 = arith.mulf %603, %605 : vector<8x32xf32>
    %cst_133 = arith.constant dense<0.000000e+00> : vector<32xf32>
    %607 = vector.multi_reduction <add>, %606, %cst_133 [0] : vector<8x32xf32> to vector<32xf32>
    %608 = vector.shape_cast %607 : vector<32xf32> to vector<1x32xf32>
    %c3_134 = arith.constant 3 : index
    %c0_135 = arith.constant 0 : index
    %609 = vector.load %arg14[%c3_134, %c0_135] : memref<16x32xf32, #tpu.memory_space<vmem>>, vector<1x32xf32>
    tpu.vector_store %arg14[%c3_134, %c0_135], %608 {strides = array<i32>} : memref<16x32xf32, #tpu.memory_space<vmem>>, vector<1x32xf32>,
    %610 = vector.extract_strided_slice %380 {offsets = [2, 0], sizes = [1, 32], strides = [1, 1]} : vector<16x32xf32> to vector<1x32xf32>
    %611 = vector.broadcast %610 : vector<1x32xf32> to vector<8x32xf32>
    %612 = arith.mulf %611, %386 : vector<8x32xf32>
    %613 = math.exp %612 : vector<8x32xf32>
    %614 = vector.extract_strided_slice %382 {offsets = [0, 2], sizes = [8, 1], strides = [1, 1]} : vector<8x16xf32> to vector<8x1xf32>
    %615 = vector.extract_strided_slice %387 {offsets = [2, 0], sizes = [1, 32], strides = [1, 1]} : vector<16x32xf32> to vector<1x32xf32>
    %616 = vector.broadcast %614 : vector<8x1xf32> to vector<8x32xf32>
    %617 = vector.broadcast %615 : vector<1x32xf32> to vector<8x32xf32>
    %618 = arith.mulf %616, %617 : vector<8x32xf32>
    %619 = arith.mulf %613, %603 : vector<8x32xf32>
    %620 = arith.addf %619, %618 : vector<8x32xf32>
    %621 = vector.extract_strided_slice %384 {offsets = [0, 2], sizes = [8, 1], strides = [1, 1]} : vector<8x16xf32> to vector<8x1xf32>
    %622 = vector.broadcast %621 : vector<8x1xf32> to vector<8x32xf32>
    %623 = arith.mulf %620, %622 : vector<8x32xf32>
    %cst_136 = arith.constant dense<0.000000e+00> : vector<32xf32>
    %624 = vector.multi_reduction <add>, %623, %cst_136 [0] : vector<8x32xf32> to vector<32xf32>
    %625 = vector.shape_cast %624 : vector<32xf32> to vector<1x32xf32>
    %c2_137 = arith.constant 2 : index
    %c0_138 = arith.constant 0 : index
    %626 = vector.load %arg14[%c2_137, %c0_138] : memref<16x32xf32, #tpu.memory_space<vmem>>, vector<1x32xf32>
    tpu.vector_store %arg14[%c2_137, %c0_138], %625 {strides = array<i32>} : memref<16x32xf32, #tpu.memory_space<vmem>>, vector<1x32xf32>,
    %627 = vector.extract_strided_slice %380 {offsets = [1, 0], sizes = [1, 32], strides = [1, 1]} : vector<16x32xf32> to vector<1x32xf32>
    %628 = vector.broadcast %627 : vector<1x32xf32> to vector<8x32xf32>
    %629 = arith.mulf %628, %386 : vector<8x32xf32>
    %630 = math.exp %629 : vector<8x32xf32>
    %631 = vector.extract_strided_slice %382 {offsets = [0, 1], sizes = [8, 1], strides = [1, 1]} : vector<8x16xf32> to vector<8x1xf32>
    %632 = vector.extract_strided_slice %387 {offsets = [1, 0], sizes = [1, 32], strides = [1, 1]} : vector<16x32xf32> to vector<1x32xf32>
    %633 = vector.broadcast %631 : vector<8x1xf32> to vector<8x32xf32>
    %634 = vector.broadcast %632 : vector<1x32xf32> to vector<8x32xf32>
    %635 = arith.mulf %633, %634 : vector<8x32xf32>
    %636 = arith.mulf %630, %620 : vector<8x32xf32>
    %637 = arith.addf %636, %635 : vector<8x32xf32>
    %638 = vector.extract_strided_slice %384 {offsets = [0, 1], sizes = [8, 1], strides = [1, 1]} : vector<8x16xf32> to vector<8x1xf32>
    %639 = vector.broadcast %638 : vector<8x1xf32> to vector<8x32xf32>
    %640 = arith.mulf %637, %639 : vector<8x32xf32>
    %cst_139 = arith.constant dense<0.000000e+00> : vector<32xf32>
    %641 = vector.multi_reduction <add>, %640, %cst_139 [0] : vector<8x32xf32> to vector<32xf32>
    %642 = vector.shape_cast %641 : vector<32xf32> to vector<1x32xf32>
    %c1_140 = arith.constant 1 : index
    %c0_141 = arith.constant 0 : index
    %643 = vector.load %arg14[%c1_140, %c0_141] : memref<16x32xf32, #tpu.memory_space<vmem>>, vector<1x32xf32>
    tpu.vector_store %arg14[%c1_140, %c0_141], %642 {strides = array<i32>} : memref<16x32xf32, #tpu.memory_space<vmem>>, vector<1x32xf32>,
    %644 = vector.extract_strided_slice %380 {offsets = [0, 0], sizes = [1, 32], strides = [1, 1]} : vector<16x32xf32> to vector<1x32xf32>
    %645 = vector.broadcast %644 : vector<1x32xf32> to vector<8x32xf32>
    %646 = arith.mulf %645, %386 : vector<8x32xf32>
    %647 = math.exp %646 : vector<8x32xf32>
    %648 = vector.extract_strided_slice %382 {offsets = [0, 0], sizes = [8, 1], strides = [1, 1]} : vector<8x16xf32> to vector<8x1xf32>
    %649 = vector.extract_strided_slice %387 {offsets = [0, 0], sizes = [1, 32], strides = [1, 1]} : vector<16x32xf32> to vector<1x32xf32>
    %650 = vector.broadcast %648 : vector<8x1xf32> to vector<8x32xf32>
    %651 = vector.broadcast %649 : vector<1x32xf32> to vector<8x32xf32>
    %652 = arith.mulf %650, %651 : vector<8x32xf32>
    %653 = arith.mulf %647, %637 : vector<8x32xf32>
    %654 = arith.addf %653, %652 : vector<8x32xf32>
    %655 = vector.extract_strided_slice %384 {offsets = [0, 0], sizes = [8, 1], strides = [1, 1]} : vector<8x16xf32> to vector<8x1xf32>
    %656 = vector.broadcast %655 : vector<8x1xf32> to vector<8x32xf32>
    %657 = arith.mulf %654, %656 : vector<8x32xf32>
    %cst_142 = arith.constant dense<0.000000e+00> : vector<32xf32>
    %658 = vector.multi_reduction <add>, %657, %cst_142 [0] : vector<8x32xf32> to vector<32xf32>
    %659 = vector.shape_cast %658 : vector<32xf32> to vector<1x32xf32>
    %c0_143 = arith.constant 0 : index
    %c0_144 = arith.constant 0 : index
    %660 = vector.load %arg14[%c0_143, %c0_144] : memref<16x32xf32, #tpu.memory_space<vmem>>, vector<1x32xf32>
    tpu.vector_store %arg14[%c0_143, %c0_144], %659 {strides = array<i32>} : memref<16x32xf32, #tpu.memory_space<vmem>>, vector<1x32xf32>,
    %c0_145 = arith.constant 0 : index
    %c0_146 = arith.constant 0 : index
    %661 = vector.load %arg14[%c0_145, %c0_146] : memref<16x32xf32, #tpu.memory_space<vmem>>, vector<16x32xf32>
    %c1_147 = arith.constant 1 : index
    %c0_148 = arith.constant 0 : index
    %c0_149 = arith.constant 0 : index
    %662 = vector.load %arg11[%c1_147, %c0_148, %c0_149] : memref<2x1x32xf32, #tpu.memory_space<vmem>>, vector<1x1x32xf32>
    %663 = vector.shape_cast %662 : vector<1x1x32xf32> to vector<1x32xf32>
    %664 = vector.broadcast %663 : vector<1x32xf32> to vector<16x32xf32>
    %665 = arith.mulf %664, %364 : vector<16x32xf32>
    %666 = arith.addf %661, %665 : vector<16x32xf32>
    %667 = tpu.concatenate %1, %31, %349, %666 in 0 : vector<16x32xf32>, vector<16x32xf32>, vector<16x32xf32>, vector<16x32xf32> -> vector<64x32xf32>
    %c0_150 = arith.constant 0 : index
    %c0_151 = arith.constant 0 : index
    %668 = vector.load %arg12[%c0_150, %c0_151] : memref<32x64xf32, #tpu.memory_space<vmem>>, vector<32x64xf32>
    %cst_152 = arith.constant dense<0.000000e+00> : vector<32x32xf32>
    %669 = tpu.matmul %668, %667, %cst_152 {dimension_numbers = #tpu.dot_dimension_numbers<[1], [0], [0], [1], [0, 0, 1, 1], [], []>} : vector<32x64xf32>, vector<64x32xf32>, vector<32x32xf32> -> vector<32x32xf32>
    %670 = vector.extract_strided_slice %669 {offsets = [0, 0], sizes = [8, 32], strides = [1, 1]} : vector<32x32xf32> to vector<8x32xf32>
    %671 = vector.extract_strided_slice %669 {offsets = [8, 0], sizes = [8, 32], strides = [1, 1]} : vector<32x32xf32> to vector<8x32xf32>
    %672 = arith.negf %671 : vector<8x32xf32>
    %673 = math.exp %672 : vector<8x32xf32>
    %cst_153 = arith.constant 1.000000e+00 : f32
    %674 = vector.broadcast %cst_153 : f32 to vector<8x32xf32>
    %675 = arith.addf %674, %673 : vector<8x32xf32>
    %676 = arith.divf %674, %675 : vector<8x32xf32>
    %677 = arith.mulf %671, %676 : vector<8x32xf32>
    %678 = vector.extract_strided_slice %669 {offsets = [16, 0], sizes = [8, 32], strides = [1, 1]} : vector<32x32xf32> to vector<8x32xf32>
    %679 = arith.negf %678 : vector<8x32xf32>
    %680 = math.exp %679 : vector<8x32xf32>
    %cst_154 = arith.constant 1.000000e+00 : f32
    %681 = vector.broadcast %cst_154 : f32 to vector<8x32xf32>
    %682 = arith.addf %681, %680 : vector<8x32xf32>
    %683 = arith.divf %681, %682 : vector<8x32xf32>
    %684 = arith.mulf %678, %683 : vector<8x32xf32>
    %685 = vector.extract_strided_slice %669 {offsets = [24, 0], sizes = [8, 32], strides = [1, 1]} : vector<32x32xf32> to vector<8x32xf32>
    %686 = arith.negf %685 : vector<8x32xf32>
    %687 = math.exp %686 : vector<8x32xf32>
    %cst_155 = arith.constant 1.000000e+00 : f32
    %688 = vector.broadcast %cst_155 : f32 to vector<8x32xf32>
    %689 = arith.addf %688, %687 : vector<8x32xf32>
    %690 = arith.divf %688, %689 : vector<8x32xf32>
    %691 = arith.mulf %685, %690 : vector<8x32xf32>
    %692 = arith.mulf %677, %684 : vector<8x32xf32>
    %693 = arith.mulf %677, %691 : vector<8x32xf32>
    %694 = arith.addf %692, %693 : vector<8x32xf32>
    %695 = arith.addf %694, %670 : vector<8x32xf32>
    %c0_156 = arith.constant 0 : index
    %c0_157 = arith.constant 0 : index
    %c0_158 = arith.constant 0 : index
    %696 = vector.load %arg13[%c0_156, %c0_157, %c0_158] : memref<1x8x32xf32, #tpu.memory_space<vmem>>, vector<1x8x32xf32>
    %697 = vector.shape_cast %696 : vector<1x8x32xf32> to vector<8x32xf32>
    %698 = vector.shape_cast %695 : vector<8x32xf32> to vector<1x8x32xf32>
    tpu.vector_store %arg13[%c0_156, %c0_157, %c0_158], %698 {strides = array<i32>} : memref<1x8x32xf32, #tpu.memory_space<vmem>>, vector<1x8x32xf32>,
    return
  }
  func.func @transform_0(%arg0: i32) -> (i32, i32, i32) {
    %c0_i32 = arith.constant 0 : i32
    %c0_i32_0 = arith.constant 0 : i32
    %c0_i32_1 = arith.constant 0 : i32
    return %arg0, %c0_i32, %c0_i32_0 : i32, i32, i32
  }
  func.func @transform_1(%arg0: i32) -> (i32, i32) {
    %c0_i32 = arith.constant 0 : i32
    %c0_i32_0 = arith.constant 0 : i32
    %c0_i32_1 = arith.constant 0 : i32
    return %c0_i32, %c0_i32_0 : i32, i32
  }
  func.func @transform_2(%arg0: i32) -> (i32, i32) {
    %c0_i32 = arith.constant 0 : i32
    %c0_i32_0 = arith.constant 0 : i32
    %c0_i32_1 = arith.constant 0 : i32
    return %c0_i32, %c0_i32_0 : i32, i32
  }
  func.func @transform_3(%arg0: i32) -> (i32, i32) {
    %c0_i32 = arith.constant 0 : i32
    %c0_i32_0 = arith.constant 0 : i32
    %c0_i32_1 = arith.constant 0 : i32
    return %c0_i32, %c0_i32_0 : i32, i32
  }
  func.func @transform_4(%arg0: i32) -> (i32, i32) {
    %c0_i32 = arith.constant 0 : i32
    %c0_i32_0 = arith.constant 0 : i32
    %c0_i32_1 = arith.constant 0 : i32
    return %c0_i32, %c0_i32_0 : i32, i32
  }
  func.func @transform_5(%arg0: i32) -> (i32, i32, i32) {
    %c0_i32 = arith.constant 0 : i32
    %c0_i32_0 = arith.constant 0 : i32
    %c0_i32_1 = arith.constant 0 : i32
    %c0_i32_2 = arith.constant 0 : i32
    return %c0_i32, %c0_i32_0, %c0_i32_1 : i32, i32, i32
  }
  func.func @transform_6(%arg0: i32) -> (i32, i32, i32) {
    %c0_i32 = arith.constant 0 : i32
    %c0_i32_0 = arith.constant 0 : i32
    %c0_i32_1 = arith.constant 0 : i32
    %c0_i32_2 = arith.constant 0 : i32
    return %c0_i32, %c0_i32_0, %c0_i32_1 : i32, i32, i32
  }
  func.func @transform_7(%arg0: i32) -> (i32, i32, i32) {
    %c0_i32 = arith.constant 0 : i32
    %c0_i32_0 = arith.constant 0 : i32
    %c0_i32_1 = arith.constant 0 : i32
    %c0_i32_2 = arith.constant 0 : i32
    return %c0_i32, %c0_i32_0, %c0_i32_1 : i32, i32, i32
  }
  func.func @transform_8(%arg0: i32) -> (i32, i32, i32) {
    %c0_i32 = arith.constant 0 : i32
    %c0_i32_0 = arith.constant 0 : i32
    %c0_i32_1 = arith.constant 0 : i32
    %c0_i32_2 = arith.constant 0 : i32
    return %c0_i32, %c0_i32_0, %c0_i32_1 : i32, i32, i32
  }
  func.func @transform_9(%arg0: i32) -> (i32, i32, i32) {
    %c0_i32 = arith.constant 0 : i32
    %c0_i32_0 = arith.constant 0 : i32
    %c0_i32_1 = arith.constant 0 : i32
    %c0_i32_2 = arith.constant 0 : i32
    return %c0_i32, %c0_i32_0, %c0_i32_1 : i32, i32, i32
  }
  func.func @transform_10(%arg0: i32) -> (i32, i32, i32) {
    %c0_i32 = arith.constant 0 : i32
    %c0_i32_0 = arith.constant 0 : i32
    %c0_i32_1 = arith.constant 0 : i32
    %c0_i32_2 = arith.constant 0 : i32
    return %c0_i32, %c0_i32_0, %c0_i32_1 : i32, i32, i32
  }
  func.func @transform_11(%arg0: i32) -> (i32, i32) {
    %c0_i32 = arith.constant 0 : i32
    %c0_i32_0 = arith.constant 0 : i32
    %c0_i32_1 = arith.constant 0 : i32
    return %c0_i32, %c0_i32_0 : i32, i32
  }
  func.func @transform_12(%arg0: i32) -> (i32, i32, i32) {
    %c0_i32 = arith.constant 0 : i32
    %c0_i32_0 = arith.constant 0 : i32
    %c0_i32_1 = arith.constant 0 : i32
    return %arg0, %c0_i32, %c0_i32_0 : i32, i32, i32
  }
}

</mosaic_0001>

<bundles_post_ra>
// kernel: vision_encoder_mamba_block.1
= control target key start
LH: loop header
LB: loop body
LE: loop exit
PB: predicated region body
PF: predicated region fallthrough
CT: control target
= control target key end

     0   :  { %s4664_s0 = inlined_call_operand.hbm [shape: f32[2,16,32], index: 0, kind: input, shape index: {}]   ;;  %s4665_s1 = inlined_call_operand.vmem [shape: f32[1,32], index: 1, kind: input, shape index: {}]   ;;  %s4666_s2 = inlined_call_operand.hbm [shape: f32[1,32], index: 2, kind: input, shape index: {}]   ;;  %s4667_s3 = inlined_call_operand.vmem [shape: f32[32,64], index: 3, kind: input, shape index: {}]   ;;  %s4668_s4 = inlined_call_operand.hbm [shape: f32[1,64], index: 4, kind: input, shape index: {}]   ;;  %s4669_s5 = inlined_call_operand.hbm [shape: f32[2,32,32], index: 5, kind: input, shape index: {}]   ;;  %s4670_s6 = inlined_call_operand.vmem [shape: f32[2,1,32], index: 6, kind: input, shape index: {}]   ;;  %s4671_s7 = inlined_call_operand.hbm [shape: f32[2,32,48], index: 7, kind: input, shape index: {}]   ;;  %s4672_s8 = inlined_call_operand.vmem [shape: f32[2,1,48], index: 8, kind: input, shape index: {}]   ;;  %s4673_s9 = inlined_call_operand.hbm [shape: f32[2,8,32], index: 9, kind: input, shape index: {}]   ;;  %s4674_s10 = inlined_call_operand.hbm [shape: f32[2,1,32], index: 10, kind: input, shape index: {}]   ;;  %s4675_s11 = inlined_call_operand.hbm [shape: f32[32,64], index: 11, kind: input, shape index: {}]   ;;  %s4676_s12 = inlined_call_operand.hbm [shape: f32[2,8,32], index: 12, kind: output, shape index: {}]  }
   0x1   :  { %4686 = sst [smem:[#allocation24_spill]] %s4666_s2 }
   0x2   :  { %4687 = sst [smem:[#allocation25_spill]] %s4669_s5 }
   0x3   :  { %4688 = sst [smem:[#allocation26_spill]] %s4670_s6 }
   0x4   :  { %4689 = sst [smem:[#allocation27_spill]] %s4672_s8 }
   0x5   :  { %4690 = sst [smem:[#allocation28_spill]] %s4676_s12 }
   0x6   :  { %17 = vsyncpa [#allocation4], 0 }
   0x7   :  { %19 = vsyncpa [#allocation4 + $0x1], 0 }
   0x8   :  { %20 = vsyncpa [#allocation7], 0 }
   0x9   :  { %21 = vsyncpa [#allocation10], 0 }
   0xa   :  { %22 = vsyncpa [#allocation13], 0 }
   0xb   :  { %23 = vsyncpa [#allocation16], 0 }
   0xc   :  { %24 = vsyncpa [#allocation5], 0 }
   0xd   :  { %26 = vsyncpa [#allocation5 + $0x1], 0  ;;  %s3579_s21 = smov 0   ;;  %s3581_s22 = smov 0  }
   0xe   :  { %s3583_s23 = smov 0   ;;  %s3585_s24 = smov 0  }
   0xf LB: > { %s3483_s25 = smov [#allocation6]   ;;  %s3600_s27 = sadd.s32 4294967295, %s3481_s24   ;;  %s3481_s24 = sphi %s3585_s24, %s4753_s24   ;;  %s3477_s23 = sphi %s3583_s23, %s4752_s23   ;;  %s3473_s22 = sphi %s3581_s22, %s4751_s22   ;;  %s3469_s21 = sphi %s3579_s21, %s4750_s21  }
  0x10   : > { %s336_s26 = sshll.u32 %s3483_s25, 4  ;;  %p2627_p0 = scmp.ge.s32.totalorder %s3481_s24, 1  ;;  %s3605_s26 = int_to_ptr.vmem [resolvable:$true] %s336_s26 }
  0x11   : > { %p4680_p1 = scmp.eq.s32.totalorder %s3600_s27, 0  ;;  %p320_p2 = scmp.lt.s32.totalorder %s3481_s24, 3 }
  0x12   : > { %s3484_s29 = smov [#allocation9]   ;;  %s3485_s14 = smov [#allocation12]  }
  0x13   : > { %p3607_p3 = pnand %p2627_p0, %p320_p2  ;;  %s360_s30 = sshll.u32 %s3484_s29, 4  ;;  %s3614_s30 = int_to_ptr.vmem [resolvable:$true] %s360_s30 }
  0x14   : > { %s392_s15 = sshll.u32 %s3485_s14, 4  ;;  %s4693_s2 = sld [smem:[#allocation24_spill]]  ;;  %s3622_s15 = int_to_ptr.vmem [resolvable:$true] %s392_s15 }
  0x15   : > { %s4691_s28 = scalar_select %p3607_p3, 1, 0 }
  0x16   : > { %p2889_p5 = pneg %p3607_p3 }
  0x18   : > { %p3618_p6 = pnand %p2889_p5, %p4680_p1 }
  0x1a   : > { %s3173_s18 = scalar_lea.hbm %s4693_s2, 16  ;;  %p3632_p8 = pneg %p3618_p6 }
  0x1b   : > { %p3174_p7 = scmp.ne.s32.totalorder %s4693_s2, %s3173_s18  ;;  %p3180_p11 = scmp.lt.u32.totalorder %s3173_s18, %s4693_s2 }
  0x1d   : > { %p3176_p9 = pnand %p3632_p8, %p3174_p7 }
  0x1f   : > { %p3177_p10 = pneg %p3176_p9 }
  0x21   : > { %p3182_p12 = pnand %p3180_p11, %p3177_p10 }
  0x23   : > { %3185 = shalt.err (!%p3182_p12)
}
  0x24   : > { %s3186_s16 = scalar_lea.vmem %s3605_s26, 16  ;;  %s3193_s17 = scalar_lea.vmem %s3605_s26, 32 }
  0x25   : > { %p3187_p13 = scmp.ne.s32.totalorder %s3605_s26, %s3186_s16  ;;  %p3194_p5 = scmp.lt.s32.totalorder %s3605_s26, %s3605_s26 }
  0x26   : > { %p3195_p7 = scmp.lt.s32.totalorder %s3193_s17, %s3186_s16 }
  0x27   : > { %p3189_p0 = pnand %p3187_p13, %p3632_p8 }
  0x28   : > { %p3196_p9 = por %p3195_p7, %p3194_p5 }
  0x29   : > { %p3190_p2 = pneg %p3189_p0 }
  0x2b   : > { %p3197_p4 = pnand %p3196_p9, %p3190_p2 }
  0x2d   : > { %3200 = shalt.err (!%p3197_p4)
}
  0x2e   : > { %2892 = dma.hbm_to_vmem [thread:$0]  (!%p3618_p6), %s4693_s2, 16, %s3605_s26, [#allocation7]  }
  0x2f   : > { %s4695_s5 = sld [smem:[#allocation25_spill]] }
  0x35   : > { %s3201_s14 = scalar_lea.hbm %s4695_s5, 1024 }
  0x36   : > { %p3202_p10 = scmp.ne.s32.totalorder %s4695_s5, %s3201_s14  ;;  %p3208_p4 = scmp.lt.u32.totalorder %s3201_s14, %s4695_s5 }
  0x38   : > { %p3204_p11 = pnand %p3202_p10, %p3632_p8 }
  0x3a   : > { %p3205_p12 = pneg %p3204_p11 }
  0x3c   : > { %p3210_p13 = pnand %p3208_p4, %p3205_p12 }
  0x3e   : > { %3213 = shalt.err (!%p3210_p13)
}
  0x3f   : > { %s3214_s26 = scalar_lea.vmem %s3614_s30, 1024  ;;  %p3222_p7 = scmp.lt.s32.totalorder %s3614_s30, %s3614_s30 }
  0x40   : > { %p3215_p0 = scmp.ne.s32.totalorder %s3614_s30, %s3214_s26  ;;  %p3223_p9 = scmp.lt.s32.totalorder %s3214_s26, %s3214_s26 }
  0x42   : > { %p3217_p2 = pnand %p3215_p0, %p3632_p8  ;;  %p3224_p10 = por %p3223_p9, %p3222_p7 }
  0x44   : > { %p3218_p5 = pneg %p3217_p2 }
  0x46   : > { %p3225_p11 = pnand %p3224_p10, %p3218_p5 }
  0x48   : > { %3228 = shalt.err (!%p3225_p11)
}
  0x49   : > { %s4682_s8 = smov 128   ;;  %s4684_s12 = smov 8  }
  0x4a   : > { %2898 = dma.hbm_to_vmem [thread:$0]  (!%p3618_p6), %s4695_s5, 1024, %s3614_s30, [#allocation10], %s4682_s8, %s4682_s8, %s4684_s12  }
  0x4b   : > { %s3229_s14 = scalar_lea.hbm %s4673_s9, 256 }
  0x4c   : > { %p3230_p12 = scmp.ne.s32.totalorder %s4673_s9, %s3229_s14  ;;  %p3236_p0 = scmp.lt.u32.totalorder %s3229_s14, %s4673_s9 }
  0x4e   : > { %p3232_p4 = pnand %p3230_p12, %p3632_p8 }
  0x50   : > { %p3233_p13 = pneg %p3232_p4 }
  0x52   : > { %p3238_p2 = pnand %p3236_p0, %p3233_p13 }
  0x54   : > { %3241 = shalt.err (!%p3238_p2)
}
  0x55   : > { %s3242_s30 = scalar_lea.vmem %s3622_s15, 256  ;;  %p3250_p10 = scmp.lt.s32.totalorder %s3622_s15, %s3622_s15 }
  0x56   : > { %p3243_p5 = scmp.ne.s32.totalorder %s3622_s15, %s3242_s30  ;;  %p3251_p11 = scmp.lt.s32.totalorder %s3242_s30, %s3242_s30 }
  0x58   : > { %p3245_p7 = pnand %p3243_p5, %p3632_p8  ;;  %p3252_p12 = por %p3251_p11, %p3250_p10 }
  0x5a   : > { %p3246_p9 = pneg %p3245_p7 }
  0x5c   : > { %p3253_p4 = pnand %p3252_p12, %p3246_p9 }
  0x5e   : > { %3256 = shalt.err (!%p3253_p4)
}
  0x5f   : > { %2904 = dma.hbm_to_vmem [thread:$0]  (!%p3618_p6), %s4673_s9, 256, %s3622_s15, [#allocation13], %s4682_s8, %s4682_s8, %s4684_s12  }
  0x60   : > { %s3488_s19 = smov [#allocation8]   ;;  %s3489_s29 = smov [#allocation11]  }
  0x61   : > { %s350_s20 = sshll.u32 %s3488_s19, 4  ;;  %s376_s14 = sshll.u32 %s3489_s29, 4  ;;  %s351_s20 = int_to_ptr.vmem [resolvable:$true] %s350_s20  ;;  %s377_s14 = int_to_ptr.vmem [resolvable:$true] %s376_s14 }
  0x62   : > { %s3257_s26 = scalar_lea.hbm %s4668_s4, 16 }
  0x63   : > { %p3258_p13 = scmp.ne.s32.totalorder %s4668_s4, %s3257_s26  ;;  %p3264_p5 = scmp.lt.u32.totalorder %s3257_s26, %s4668_s4 }
  0x65   : > { %p3260_p0 = pnand %p3258_p13, %p3632_p8 }
  0x67   : > { %p3261_p2 = pneg %p3260_p0 }
  0x69   : > { %p3266_p7 = pnand %p3264_p5, %p3261_p2 }
  0x6b   : > { %3269 = shalt.err (!%p3266_p7)
}
  0x6c   : > { %s3270_s15 = scalar_lea.vmem %s351_s20, 16  ;;  %s3277_s18 = scalar_lea.vmem %s351_s20, 32 }
  0x6d   : > { %p3271_p9 = scmp.ne.s32.totalorder %s351_s20, %s3270_s15  ;;  %p3278_p12 = scmp.lt.s32.totalorder %s351_s20, %s351_s20 }
  0x6e   : > { %p3279_p4 = scmp.lt.s32.totalorder %s3277_s18, %s3270_s15 }
  0x6f   : > { %p3273_p10 = pnand %p3271_p9, %p3632_p8 }
  0x70   : > { %p3280_p1 = por %p3279_p4, %p3278_p12 }
  0x71   : > { %p3274_p11 = pneg %p3273_p10 }
  0x73   : > { %p3281_p3 = pnand %p3280_p1, %p3274_p11 }
  0x75   : > { %3284 = shalt.err (!%p3281_p3)
}
  0x76   : > { %2895 = dma.hbm_to_vmem [thread:$0]  (!%p3618_p6), %s4668_s4, 16, %s351_s20, [#allocation7]  }
  0x77   : > { %s3285_s16 = scalar_lea.hbm %s4671_s7, 1024 }
  0x78   : > { %p3286_p13 = scmp.ne.s32.totalorder %s4671_s7, %s3285_s16  ;;  %p3292_p3 = scmp.lt.u32.totalorder %s3285_s16, %s4671_s7 }
  0x7a   : > { %p3288_p0 = pnand %p3286_p13, %p3632_p8 }
  0x7c   : > { %p3289_p1 = pneg %p3288_p0 }
  0x7e   : > { %p3294_p2 = pnand %p3292_p3, %p3289_p1 }
  0x80   : > { %3297 = shalt.err (!%p3294_p2)
}
  0x81   : > { %s3298_s15 = scalar_lea.vmem %s377_s14, 1024  ;;  %p3306_p10 = scmp.lt.s32.totalorder %s377_s14, %s377_s14 }
  0x82   : > { %p3299_p5 = scmp.ne.s32.totalorder %s377_s14, %s3298_s15  ;;  %p3307_p11 = scmp.lt.s32.totalorder %s3298_s15, %s3298_s15 }
  0x84   : > { %p3301_p7 = pnand %p3299_p5, %p3632_p8  ;;  %p3308_p12 = por %p3307_p11, %p3306_p10 }
  0x86   : > { %p3302_p9 = pneg %p3301_p7 }
  0x88   : > { %p3309_p4 = pnand %p3308_p12, %p3302_p9 }
  0x8a   : > { %3312 = shalt.err (!%p3309_p4)
}
  0x8b   : > { %2901 = dma.hbm_to_vmem [thread:$0]  (!%p3618_p6), %s4671_s7, 1024, %s377_s14, [#allocation10], %s4682_s8, %s4682_s8, %s4684_s12  }
  0x8c   : > { %s3490_s5 = smov [#allocation14]   ;;  %s3313_s16 = scalar_lea.hbm %s4674_s10, 32 }
  0x8d   : > { %s405_s19 = sshll.u32 %s3490_s5, 4  ;;  %p3314_p13 = scmp.ne.s32.totalorder %s4674_s10, %s3313_s16  ;;  %s406_s19 = int_to_ptr.vmem [resolvable:$true] %s405_s19 }
  0x8e   : > { %p3320_p3 = scmp.lt.u32.totalorder %s3313_s16, %s4674_s10 }
  0x8f   : > { %p3316_p0 = pnand %p3314_p13, %p3632_p8 }
  0x91   : > { %p3317_p1 = pneg %p3316_p0 }
  0x93   : > { %p3322_p2 = pnand %p3320_p3, %p3317_p1 }
  0x95   : > { %3325 = shalt.err (!%p3322_p2)
}
  0x96   : > { %s3326_s14 = scalar_lea.vmem %s406_s19, 32  ;;  %p3334_p10 = scmp.lt.s32.totalorder %s406_s19, %s406_s19 }
  0x97   : > { %p3327_p5 = scmp.ne.s32.totalorder %s406_s19, %s3326_s14  ;;  %p3335_p11 = scmp.lt.s32.totalorder %s3326_s14, %s3326_s14 }
  0x99   : > { %p3329_p7 = pnand %p3327_p5, %p3632_p8  ;;  %p3336_p12 = por %p3335_p11, %p3334_p10 }
  0x9b   : > { %p3330_p9 = pneg %p3329_p7 }
  0x9d   : > { %p3337_p4 = pnand %p3336_p12, %p3330_p9 }
  0x9f   : > { %3340 = shalt.err (!%p3337_p4)
}
  0xa0   : > { %s3491_s15 = smov 16   ;;  %s3492_s20 = smov 1  }
  0xa1   : > { %2907 = dma.hbm_to_vmem [thread:$0]  (!%p3618_p6), %s4674_s10, 32, %s406_s19, [#allocation13], %s3491_s15, %s3491_s15, %s3492_s20  }
  0xa2   : > { %s3493_s6 = smov [#allocation15]   ;;  %s3341_s26 = scalar_lea.hbm %s4675_s11, 512 }
  0xa3   : > { %s418_s29 = sshll.u32 %s3493_s6, 4  ;;  %p3342_p13 = scmp.ne.s32.totalorder %s4675_s11, %s3341_s26  ;;  %s419_s29 = int_to_ptr.vmem [resolvable:$true] %s418_s29 }
  0xa4   : > { %p3348_p3 = scmp.lt.u32.totalorder %s3341_s26, %s4675_s11 }
  0xa5   : > { %p3344_p0 = pnand %p3342_p13, %p3632_p8 }
  0xa7   : > { %p3345_p1 = pneg %p3344_p0 }
  0xa9   : > { %p3350_p2 = pnand %p3348_p3, %p3345_p1 }
  0xab   : > { %3353 = shalt.err (!%p3350_p2)
}
  0xac   : > { %s3354_s19 = scalar_lea.vmem %s419_s29, 512  ;;  %p3362_p10 = scmp.lt.s32.totalorder %s419_s29, %s419_s29 }
  0xad   : > { %p3355_p5 = scmp.ne.s32.totalorder %s419_s29, %s3354_s19  ;;  %p3363_p11 = scmp.lt.s32.totalorder %s3354_s19, %s3354_s19 }
  0xaf   : > { %p3357_p7 = pnand %p3355_p5, %p3632_p8  ;;  %p3364_p12 = por %p3363_p11, %p3362_p10 }
  0xb1   : > { %p3358_p9 = pneg %p3357_p7 }
  0xb3   : > { %p3365_p4 = pnand %p3364_p12, %p3358_p9 }
  0xb5   : > { %3368 = shalt.err (!%p3365_p4)
}
  0xb6   : > { %s4696_s15 = smov 128   ;;  %s2626_s13 = sadd.s32 4294967294, %s3481_s24  }
  0xb7   : > { %2910 = dma.hbm_to_vmem [thread:$0]  (!%p3618_p6), %s4675_s11, 512, %s419_s29, [#allocation16], %s4696_s15, %s4696_s15, %s4684_s12  }
  0xb8   : > { %s3786_s25 = sadd.s32 1, %s3481_s24   ;;  %s39_s18 = sadd.s32 1, %s3477_s23 }
  0xb9   : > { %s36_s5 = ssub.s32 %s3481_s24, %s3786_s25  ;;  %p46_p8 = scmp.ne.s32.totalorder %s3477_s23, %s3473_s22 }
  0xba   : > { %p37_p13 = scmp.eq.s32.totalorder %s36_s5, 0  ;;  %p47_p0 = scmp.eq.s32.totalorder %s3481_s24, 0 }
  0xbb   : > { %p52_p1 = scmp.ne.s32.totalorder %s3473_s22, %s3469_s21  ;;  %p307_p3 = scmp.eq.s32.totalorder %s3600_s27, 1 }
  0xbc   : > { %s3798_s6 = scalar_select %p37_p13, %s3477_s23, %s39_s18  }
  0xbd   : > { %p48_p2 = por %p47_p0, %p46_p8  ;;  %p4697_p5 = scmp.eq.s32.totalorder %s3600_s27, 0 }
  0xbe   : > { %p3806_p6 = por %p307_p3, %p46_p8  ;;  %p313_p9 = scmp.eq.s32.totalorder %s2626_s13, 1 }
  0xbf   : > { %p3802_p7 = por %p4697_p5, %p52_p1  ;;  %p2926_p10 = scmp.lt.s32.totalorder %s3481_s24, 2 }
  0xc0   : > { %s4699_s29 = scalar_select %p3806_p6, 1, 0 }
  0xc1   : > { %s432_s17 = sand.u32 1, %s3477_s23   ;;  %p3812_p11 = por %p313_p9, %p52_p1 }
  0xc2   : > { %s2636_s30 = sshll.u32 %s432_s17, 4  ;;  %s2681_s2 = sshll.u32 %s3481_s24, 8 }
  0xc3   : > { %s4700_s26 = scalar_select %p3812_p11, 1, 0 }
  0xc4   : > { %s3820_s8 = scalar_lea.hbm %s4664_s0, %s2681_s2  ;;  %s436_s20 = scalar_lea.vmem [#allocation3], %s2636_s30 }
  0xc5   : > { %s443_s18 = sshll.u32 %s436_s20, 4  ;;  %p3822_p12 = pnand %p2926_p10, %p48_p2  ;;  %s3826_s18 = int_to_ptr.vmem [resolvable:$true] %s443_s18 }
  0xc6   : > { %s3828_s5 = scalar_lea.sflag [#allocation4], %s432_s17  ;;  %s3369_s12 = scalar_lea.hbm %s3820_s8, 256 }
  0xc7   : > { %p3370_p4 = scmp.ne.s32.totalorder %s3820_s8, %s3369_s12  ;;  %p3371_p8 = pneg %p3822_p12 }
  0xc8   : > { %s3374_s14 = scalar_lea.hbm %s4664_s0, 512  ;;  %p3375_p1 = scmp.lt.u32.totalorder %s3820_s8, %s4664_s0 }
  0xc9   : > { %p3372_p13 = pnand %p3371_p8, %p3370_p4  ;;  %p3376_p3 = scmp.lt.u32.totalorder %s3374_s14, %s3369_s12 }
  0xca   : > { %p3378_p5 = scmp.lt.u32.totalorder %s3369_s12, %s3820_s8 }
  0xcb   : > { %p3373_p0 = pneg %p3372_p13  ;;  %p3377_p2 = por %p3376_p3, %p3375_p1 }
  0xcd   : > { %p3379_p9 = por %p3378_p5, %p3377_p2 }
  0xcf   : > { %p3380_p10 = pnand %p3379_p9, %p3373_p0 }
  0xd1   : > { %3383 = shalt.err (!%p3380_p10)
}
  0xd2   : > { %s3384_s17 = scalar_lea.vmem %s3826_s18, 256  ;;  %s3494_s30 = smov [#allocation3]  }
  0xd3   : > { %p3385_p4 = scmp.ne.s32.totalorder %s3826_s18, %s3384_s17  ;;  %s3389_s2 = sshll.u32 %s3494_s30, 4  ;;  %s3390_s2 = int_to_ptr.vmem [resolvable:$false] %s3389_s2 }
  0xd4   : > { %s3391_s19 = scalar_lea.vmem %s3390_s2, 512  ;;  %p3392_p6 = scmp.lt.s32.totalorder %s3826_s18, %s3390_s2 }
  0xd5   : > { %p3387_p13 = pnand %p3385_p4, %p3371_p8  ;;  %p3393_p1 = scmp.lt.s32.totalorder %s3391_s19, %s3384_s17 }
  0xd7   : > { %p3388_p11 = pneg %p3387_p13  ;;  %p3394_p3 = por %p3393_p1, %p3392_p6 }
  0xd9   : > { %p3395_p2 = pnand %p3394_p3, %p3388_p11 }
  0xdb   : > { %3398 = shalt.err (!%p3395_p2)
}
  0xdc   : > { %s4702_s12 = smov 8   ;;  %p4703_p8 = scmp.ne.s32.totalorder %s4691_s28, 0 }
  0xdd   : > { %2914 = dma.hbm_to_vmem [thread:$0]  (!%p3822_p12), %s3820_s8, 256, %s3826_s18, %s3828_s5, %s4696_s15, %s4696_s15, %s4702_s12  }
  0xde   : > { %455 = sbr.rel (%p4703_p8) target bundleno = 2233 (0x8b9), region = 68  ;;  %s3862_s14 = sand.u32 (!%p4703_p8), 1, %s3473_s22  }
  0xdf   : > { %s2640_s20 = sshll.u32 (!%p4703_p8), %s3862_s14, 4  ;;  %s458_s17 = scalar_lea.sflag (!%p4703_p8), [#allocation4], %s3862_s14 }
  0xe0   : > { %s461_s30 = scalar_lea.vmem (!%p4703_p8), [#allocation3], %s2640_s20 }
  0xe5   : > { %3444 = dma.done.wait (%p3802_p7), %s458_s17, 256  }
  0xe6   : > { %3446 = vsyncadd (%p3802_p7), %s458_s17, 4294967040  ;;  %p4704_p6 = scmp.eq.s32.totalorder %s3600_s27, 0 }
  0xe8   : > { %3448 = dma.done.wait (%p4704_p6), [#allocation7], 32   ;;  %p4705_p11 = pmov %p4704_p6 }
  0xe9   : > { %p4706_p12 = pmov %p4704_p6 }
  0xea   : > { %3450 = vsyncadd (%p4705_p11), [#allocation7], 4294967264 }
  0xeb   : > { %3452 = dma.done.wait (%p4706_p12), [#allocation10], 2048   ;;  %p4707_p0 = pmov %p4704_p6 }
  0xed   : > { %3454 = vsyncadd (%p4707_p0), [#allocation10], 4294965248  ;;  %p4708_p5 = pmov %p4707_p0 }
  0xee   : > { %p4709_p9 = pmov %p4707_p0 }
  0xef   : > { %3456 = dma.done.wait (%p4708_p5), [#allocation13], 288  }
  0xf0   : > { %3458 = vsyncadd (%p4709_p9), [#allocation13], 4294967008  ;;  %p4710_p7 = pmov %p4707_p0 }
  0xf1   : > { %p4711_p10 = pmov %p4707_p0 }
  0xf2   : > { %3460 = dma.done.wait (%p4710_p7), [#allocation16], 512  }
  0xf3   : > { %3462 = vsyncadd (%p4711_p10), [#allocation16], 4294966784  ;;  %vm532_vm0 = vcmask 261120   ;;  %v3886_v0 = vld [vmem:[%s461_s30] sm:$0xff]  ;;  %v3888_v1 = vld [vmem:[%s461_s30 + $0x8] sm:$0xff]  ;;  %s3495_s20 = smov 96  }
  0xf4   : > { %v533_v2 = vsel %vm532_vm0, %v3886_v0, 0.0  ;;  %v536_v3 = vsel %vm532_vm0, %v3888_v1, 0.0  ;;  %v578_v14 = vld [vmem:[%s4667_s3] sm:$0xff]  ;;  %v579_v15 = vld [vmem:[%s4667_s3 + $0x8] sm:$0xff]  ;;  %v580_v16 = vld [vmem:[%s4667_s3 + $0x10] sm:$0xff]  ;;  %v2841_v48 = vpack.c.bf16 %v3888_v1, %v3886_v0  ;;  %s4712_s28 = sld [smem:[#allocation26_spill]] }
  0xf5   : > { %534 = vadd.xlane.f32.xlu0 %v533_v2  ;;  %v2801_v17 = vpack.c.bf16 %v579_v15, %v578_v14  ;;  %v581_v18 = vld [vmem:[%s4667_s3 + $0x18] sm:$0xff]  ;;  %v2649_v27 = vld [vmem:[%s4665_s1] ss:$0 sm:$0xff]  ;;  %v2650_v29 = vld [vmem:[#allocation6] ss:$0 sm:$0xff]  ;;  %s4715_s13 = sld [smem:[#allocation27_spill]] }
  0xf6   : > { %v2805_v19 = vpack.c.bf16 %v581_v18, %v580_v16  ;;  %v1512_v36 = vld [vmem:[#allocation9 + $0x20] sm:$0xff]  ;;  %v1513_v37 = vld [vmem:[#allocation9 + $0x28] sm:$0xff]  ;;  %v1514_v41 = vld [vmem:[#allocation9 + $0x30] sm:$0xff]  ;;  %s3496_s19 = smov 88   ;;  %vm1031_vm9 = vcmask 253952   ;;  %vm2351_vm10 = vcmask 523264  }
  0xf7   : > { %2802 = vmatprep.subr.bf16.mxu0 %v2801_v17  ;;  %v670_v38 = vld [vmem:[#allocation9] sm:$0xff]  ;;  %v2825_v39 = vpack.c.bf16 %v1513_v37, %v1512_v36  ;;  %v671_v40 = vld [vmem:[#allocation9 + $0x8] sm:$0xff]  ;;  %v1515_v42 = vld [vmem:[#allocation9 + $0x38] sm:$0xff]  ;;  %s2648_s12 = sshll.u32 %s3862_s14, 3  ;;  %s4746_s8 = sld [smem:[#allocation28_spill]] }
  0xf8   : > { %2804 = vmatpush3.bf16.msra.mxu0 %v2801_v17  ;;  %v2809_v43 = vpack.c.bf16 %v671_v40, %v670_v38  ;;  %v2829_v44 = vpack.c.bf16 %v1515_v42, %v1514_v41  ;;  %v672_v45 = vld [vmem:[#allocation9 + $0x10] sm:$0xff]  ;;  %v673_v46 = vld [vmem:[#allocation9 + $0x18] sm:$0xff]  ;;  %v796_v57 = vld [vmem:[#allocation11] sm:$0xff]  ;;  %s529_s17 = scalar_lea.vmem [#allocation17], %s2648_s12  ;;  %s2476_s5 = scalar_lea.sflag [#allocation5], %s3862_s14 }
  0xf9   : > { %537 = vadd.xlane.f32.xlu0 %v536_v3  ;;  %2806 = vmatprep.subr.bf16.mxu0 %v2805_v19  ;;  %v2813_v47 = vpack.c.bf16 %v673_v46, %v672_v45  ;;  %v2651_v49 = vld [vmem:[#allocation8] ss:$0 sm:$0xff]  ;;  %v797_v58 = vld [vmem:[#allocation11 + $0x8] sm:$0xff]  ;;  %v798_v60 = vld [vmem:[#allocation11 + $0x10] sm:$0xff]  ;;  %s2489_s30 = sshll.u32 %s529_s17, 4  ;;  %p4747_p13 = scmp.ne.s32.totalorder %s4699_s29, 0  ;;  %s4621_s30 = int_to_ptr.vmem [resolvable:$true] %s2489_s30 }
  0xfa   : > { %2826 = vmatprep.subr.bf16.mxu1 %v2825_v39  ;;  %v2817_v59 = vpack.c.bf16 %v797_v58, %v796_v57  ;;  %v799_v61 = vld [vmem:[#allocation11 + $0x18] sm:$0xff]  ;;  %v1630_v63 = vld [vmem:[#allocation11 + $0x20] sm:$0xff]  ;;  %v2654_v2 = vld [vmem:[%s4712_s28] ss:$0 sm:$0xff]  ;;  %s3399_s2 = scalar_lea.vmem %s4621_s30, 128 }
  0xfb   : > { %2828 = vmatpush3.bf16.msra.mxu1 %v2825_v39  ;;  %v2821_v62 = vpack.c.bf16 %v799_v61, %v798_v60  ;;  %v2662_v3 = vld [vmem:[%s4712_s28 + $0x1] ss:$0 sm:$0xff]  ;;  %p3400_p4 = scmp.ne.s32.totalorder %s4621_s30, %s3399_s2 }
  0xfc   : > { %2808 = vmatpush3.bf16.msra.mxu0 %v2805_v19  ;;  %2830 = vmatprep.subr.bf16.mxu1 %v2829_v44 }
  0xfd   : > { %2810 = vmatprep.subr.bf16.mxu0 %v2809_v43  ;;  %p3401_p1 = pnand %p3400_p4, %p4747_p13 }
  0xff   : > { %2832 = vmatpush3.bf16.msra.mxu1 %v2829_v44  ;;  %p3402_p3 = pneg %p3401_p1 }
 0x100   : > { %2842 = vmatprep.subr.bf16.mxu1 %v2841_v48 }
 0x182   : > { %v535_v4 = vpop.xlane.xlu0 %534 }
 0x183   : > { %v540_v5 = vmul.f32 0.03125, %v535_v4 }
 0x185   : > { %v542_v6 = vsub.f32 %v3886_v0, %v540_v5  ;;  %v1631_v0 = vld [vmem:[#allocation11 + $0x28] sm:$0xff] }
 0x186   : > { %v538_v7 = vpop.xlane.xlu0 %537 }
 0x187   : > { %v541_v8 = vmul.f32 0.03125, %v538_v7  ;;  %v544_v9 = vmul.f32 %v542_v6, %v542_v6 }
 0x189   : > { %v543_v10 = vsub.f32 %v3888_v1, %v541_v8  ;;  %v546_v11 = vsel %vm532_vm0, %v544_v9, 0.0  ;;  %v3923_v1 = vpack.c.bf16 %v1631_v0, %v1630_v63 }
 0x18a   : > { %547 = vadd.xlane.f32.xlu1 %v546_v11 }
 0x18b   : > { %v545_v12 = vmul.f32 %v543_v10, %v543_v10 }
 0x18d   : > { %v549_v13 = vsel %vm532_vm0, %v545_v12, 0.0 }
 0x18e   : > { %550 = vadd.xlane.f32.xlu1 %v549_v13 }
 0x217   : > { %v548_v20 = vpop.xlane.xlu1 %547 }
 0x218   : > { %v552_v21 = vmul.f32 0.03125, %v548_v20 }
 0x21a   : > { %v554_v22 = vadd.f32 1e-05, %v552_v21 }
 0x21b   : > { %v551_v23 = vpop.xlane.xlu1 %550 }
 0x21c   : > { %3060 = vrsqrt.f32 %v554_v22  ;;  %v553_v24 = vmul.f32 0.03125, %v551_v23 }
 0x21e   : > { %v555_v25 = vadd.f32 1e-05, %v553_v24 }
 0x220   : > { %3062 = vrsqrt.f32 %v555_v25 }
 0x226   : > { %v3061_v26 = vpop.eup %3060 }
 0x227   : > { %v558_v28 = vmul.f32 %v3061_v26, %v542_v6 }
 0x229   : > { %v567_v30 = vmul.f32 %v2649_v27, %v558_v28 }
 0x22a   : > { %v3063_v31 = vpop.eup %3062 }
 0x22b   : > { %v559_v32 = vmul.f32 %v3063_v31, %v543_v10  ;;  %v576_v33 = vadd.f32 %v2650_v29, %v567_v30 }
 0x22d   : > { %v568_v34 = vmul.f32 %v2649_v27, %v559_v32  ;;  %2732 = vmatprep.mubr.msk.f32.mxu0 %vm532_vm0, %v576_v33 }
 0x22f   : > { %v577_v35 = vadd.f32 %v2650_v29, %v568_v34 }
 0x231   : > { %2733 = vmatmul.mubr.msk.f32.vlgmr.msra.gmra.mrb[0].mxu0 %vm532_vm0, %v577_v35 }
 0x232   : > { %2812 = vmatpush3.bf16.msra.mxu0 %v2809_v43 }
 0x233   : > { %2814 = vmatprep.subr.bf16.mxu0 %v2813_v47 }
 0x236   : > { %2816 = vmatpush3.bf16.msra.mxu0 %v2813_v47 }
 0x237   : > { %2818 = vmatprep.subr.bf16.mxu0 %v2817_v59 }
 0x304   : > { %v2734_v50 = vpop.f32.mrb[0].mxu0 }
 0x305   : > { %v667_v51 = vadd.f32 %v2734_v50, %v2651_v49  ;;  %v661_v52 = vpop.f32.mrb[1].mxu0 }
 0x306   : > { %v662_v53 = vadd.f32 %v2651_v49, %v661_v52  ;;  %v1632_v52 = vld [vmem:[#allocation11 + $0x30] sm:$0xff] }
 0x307   : > { %685 = vrot.lane.b32.xlu1 %v667_v51, %s3495_s20 }
 0x308   : > { %v2845_v54 = vpack.c.bf16 %v667_v51, %v662_v53  ;;  %683 = vrot.lane.b32.xlu0 %v662_v53, %s3495_s20  ;;  %v1633_v53 = vld [vmem:[#allocation11 + $0x38] sm:$0xff] }
 0x379   : > { %v686_v56 = vpop.permute.xlu1 %685 }
 0x37a   : > { %v684_v55 = vpop.permute.xlu0 %683 }
 0x37b   : > { %2743 = vmatprep.mubr.msk.f32.mxu0 %vm532_vm0, %v684_v55  ;;  %2765 = vmatprep.mubr.msk.f32.mxu1 %vm532_vm0, %v684_v55 }
 0x37c   : > { %2744 = vmatmul.mubr.msk.f32.vlgmr.msra.gmra.mrb[2].mxu0 %vm532_vm0, %v686_v56  ;;  %2766 = vmatmul.mubr.msk.f32.vlgmr.msra.gmra.mrb[0].mxu1 %vm532_vm0, %v686_v56 }
 0x37d   : > { %2844 = vmatpush3.bf16.msra.mxu1 %v2841_v48  ;;  %2820 = vmatpush3.bf16.msra.mxu0 %v2817_v59 }
 0x37e   : > { %2846 = vmatprep.subr.bf16.mxu1 %v2845_v54  ;;  %2822 = vmatprep.subr.bf16.mxu0 %v2821_v62 }
 0x381   : > { %2848 = vmatpush3.bf16.msra.mxu1 %v2845_v54  ;;  %2824 = vmatpush3.bf16.msra.mxu0 %v2821_v62 }
 0x382   : > { %2834 = vmatprep.subr.bf16.mxu0 %v3923_v1 }
 0x44f   : > { %v2745_v4 = vpop.f32.mrb[2].mxu0  ;;  %v2767_v5 = vpop.f32.mrb[0].mxu1 }
 0x450   : > { %v3932_v6 = vadd.f32 %v2745_v4, %v2654_v2  ;;  %v3934_v7 = vadd.f32 %v2767_v5, %v2662_v3  ;;  %v757_v8 = vpop.f32.mrb[3].mxu0  ;;  %v1590_v9 = vpop.f32.mrb[1].mxu1 }
 0x451   : > { %v758_v10 = vadd.f32 %v2654_v2, %v757_v8  ;;  %v3936_v11 = vadd.f32 %v2662_v3, %v1590_v9  ;;  %v2837_v2 = vpack.c.bf16 %v1633_v53, %v1632_v52 }
 0x452   : > { %v769_v12 = vand.u32 2147483647, %v3932_v6  ;;  %v1602_v13 = vand.u32 2147483647, %v3934_v7  ;;  %v767_v55 = vmax.f32 %v3932_v6, 0.0  ;;  %v1600_v8 = vmax.f32 %v3934_v7, 0.0 }
 0x453   : > { %v768_v14 = vand.u32 2147483647, %v758_v10  ;;  %v1601_v15 = vand.u32 2147483647, %v3936_v11  ;;  %v766_v51 = vmax.f32 %v758_v10, 0.0  ;;  %v1599_v61 = vmax.f32 %v3936_v11, 0.0 }
 0x454   : > { %v771_v16 = vsub.f32 0.0, %v769_v12  ;;  %v1604_v17 = vsub.f32 0.0, %v1602_v13  ;;  %v2657_v10 = vld [vmem:[%s4715_s13] ss:$0 sm:$0xff]  ;;  %v2666_v7 = vld [vmem:[%s4715_s13 + $0x1] ss:$0 sm:$0xff] }
 0x455   : > { %v770_v18 = vsub.f32 0.0, %v768_v14  ;;  %v1603_v19 = vsub.f32 0.0, %v1601_v15 }
 0x456   : > { %v774_v20 = vmul.f32 1.442695, %v771_v16  ;;  %v1607_v21 = vmul.f32 1.442695, %v1604_v17 }
 0x457   : > { %v772_v22 = vmul.f32 1.442695, %v770_v18  ;;  %v1605_v23 = vmul.f32 1.442695, %v1603_v19 }
 0x458   : > { %3064 = vpow2.f32 %v774_v20 }
 0x459   : > { %3066 = vpow2.f32 %v1607_v21 }
 0x45a   : > { %3068 = vpow2.f32 %v772_v22 }
 0x45b   : > { %3070 = vpow2.f32 %v1605_v23 }
 0x462   : > { %v3065_v24 = vpop.eup %3064 }
 0x463   : > { %v3067_v25 = vpop.eup %3066  ;;  %v785_v26 = vadd.f32 1.0, %v3065_v24  ;;  %v788_v32 = vmul.f32 -0.5, %v3065_v24  ;;  %v791_v36 = vand.u32 2147483647, %v3065_v24 }
 0x464   : > { %v3069_v27 = vpop.eup %3068  ;;  %v1618_v30 = vadd.f32 1.0, %v3067_v25  ;;  %v1621_v44 = vmul.f32 -0.5, %v3067_v25  ;;  %v1624_v63 = vand.u32 2147483647, %v3067_v25 }
 0x465   : > { %v3071_v28 = vpop.eup %3070  ;;  %3072 = vlog2.f32 %v785_v26  ;;  %v776_v29 = vadd.f32 1.0, %v3069_v27  ;;  %v779_v33 = vmul.f32 -0.5, %v3069_v27  ;;  %v789_v35 = vadd.f32 1.0, %v788_v32 }
 0x466   : > { %v1609_v31 = vadd.f32 1.0, %v3071_v28  ;;  %v1612_v34 = vmul.f32 -0.5, %v3071_v28  ;;  %v782_v39 = vand.u32 2147483647, %v3069_v27  ;;  %v1615_v45 = vand.u32 2147483647, %v3071_v28 }
 0x467   : > { %3074 = vlog2.f32 %v776_v29  ;;  %v780_v37 = vadd.f32 1.0, %v779_v33  ;;  %v790_v43 = vmul.f32 %v3065_v24, %v789_v35  ;;  %vm3941_vm1 = vcmp.lt.f32.partialorder %v791_v36, 0.0004427343 }
 0x468   : > { %3076 = vlog2.f32 %v1609_v31  ;;  %v1613_v41 = vadd.f32 1.0, %v1612_v34  ;;  %vm783_vm2 = vcmp.lt.f32.partialorder %v782_v39, 0.0004427343  ;;  %v1622_v59 = vadd.f32 1.0, %v1621_v44 }
 0x469   : > { %3078 = vlog2.f32 %v1618_v30  ;;  %v781_v48 = vmul.f32 %v3069_v27, %v780_v37  ;;  %vm1616_vm3 = vcmp.lt.f32.partialorder %v1615_v45, 0.0004427343  ;;  %vm1625_vm4 = vcmp.lt.f32.partialorder %v1624_v63, 0.0004427343 }
 0x46a   : > { %v1614_v58 = vmul.f32 %v3071_v28, %v1613_v41  ;;  %v1623_v5 = vmul.f32 %v3067_v25, %v1622_v59 }
 0x46f   : > { %v3073_v38 = vpop.eup %3072 }
 0x470   : > { %v787_v40 = vmul.f32 0.6931472, %v3073_v38 }
 0x471   : > { %v3075_v42 = vpop.eup %3074 }
 0x472   : > { %v778_v47 = vmul.f32 0.6931472, %v3075_v42  ;;  %v3077_v49 = vpop.eup %3076  ;;  %v793_v50 = vsel %vm3941_vm1, %v790_v43, %v787_v40 }
 0x473   : > { %v3079_v54 = vpop.eup %3078  ;;  %v1611_v57 = vmul.f32 0.6931472, %v3077_v49  ;;  %v3951_v62 = vadd.f32 %v793_v50, %v767_v55 }
 0x474   : > { %v784_v56 = vsel %vm783_vm2, %v781_v48, %v778_v47  ;;  %v1620_v3 = vmul.f32 0.6931472, %v3079_v54  ;;  %v999_v48 = vlaneseq }
 0x475   : > { %v3948_v60 = vadd.f32 %v784_v56, %v766_v51  ;;  %v1617_v0 = vsel %vm1616_vm3, %v1614_v58, %v1611_v57 }
 0x476   : > { %v3953_v4 = vadd.f32 %v1617_v0, %v1599_v61  ;;  %v1626_v6 = vsel %vm1625_vm4, %v1623_v5, %v1620_v3  ;;  %v1000_v55 = vshrl.u32 %v999_v48, 7 }
 0x477   : > { %2754 = vmatprep.mubr.msk.f32.mxu0 %vm532_vm0, %v3948_v60  ;;  %v3963_v9 = vadd.f32 %v1626_v6, %v1600_v8 }
 0x478   : > { %2755 = vmatmul.mubr.msk.f32.vlgmr.msra.gmra.mrb[4].mxu0 %vm532_vm0, %v3951_v62  ;;  %v3989_v0 = vsub.s32 6, %v1000_v55  ;;  %v3993_v3 = vsub.s32 7, %v1000_v55  ;;  %v3999_v8 = vsub.s32 2, %v1000_v55 }
 0x479   : > { %2836 = vmatpush3.bf16.msra.mxu0 %v3923_v1  ;;  %2776 = vmatprep.mubr.msk.f32.mxu0 %vm532_vm0, %v3953_v4 }
 0x47a   : > { %2838 = vmatprep.subr.bf16.mxu0 %v2837_v2 }
 0x47d   : > { %2840 = vmatpush3.bf16.msra.mxu0 %v2837_v2 }
 0x480   : > { %2777 = vmatmul.mubr.msk.f32.vlgmr.msra.gmra.mrb[6].mxu0 %vm532_vm0, %v3963_v9 }
 0x54b   : > { %v2756_v11 = vpop.f32.mrb[4].mxu0 }
 0x54c   : > { %v885_v1 = vadd.f32 %v2756_v11, %v2657_v10  ;;  %v879_v12 = vpop.f32.mrb[5].mxu0  ;;  %v4003_v11 = vsub.s32 5, %v1000_v55 }
 0x54d   : > { %v3974_v17 = vadd.f32 %v2657_v10, %v879_v12  ;;  %v4001_v10 = vsub.s32 1, %v1000_v55  ;;  %v4009_v12 = vld [vmem:[#allocation12] sm:$0xff] }
 0x54e   : > { %v891_v13 = vand.u32 2147483647, %v885_v1  ;;  %922 = vrot.lane.b32.xlu1 %v885_v1, %s3495_s20  ;;  %v889_v45 = vmax.f32 %v885_v1, 0.0 }
 0x550   : > { %v893_v14 = vsub.f32 0.0, %v891_v13  ;;  %v4011_v13 = vsub.s32 0, %v1000_v55 }
 0x552   : > { %v896_v15 = vmul.f32 1.442695, %v893_v14  ;;  %960 = vrot.lane.b32.xlu1 %v885_v1, %s3496_s19 }
 0x553   : > { %v2778_v16 = vpop.f32.mrb[6].mxu0 }
 0x554   : > { %3080 = vpow2.f32 %v896_v15  ;;  %v1720_v18 = vadd.f32 %v2778_v16, %v2666_v7  ;;  %v1714_v19 = vpop.f32.mrb[7].mxu0 }
 0x555   : > { %v1715_v20 = vadd.f32 %v2666_v7, %v1714_v19  ;;  %v4025_v19 = vsub.s32 4, %v1000_v55 }
 0x556   : > { %v1726_v21 = vand.u32 2147483647, %v1720_v18  ;;  %920 = vrot.lane.b32.xlu1 %v3974_v17, %s3495_s20  ;;  %v1724_v57 = vmax.f32 %v1720_v18, 0.0 }
 0x557   : > { %v1725_v22 = vand.u32 2147483647, %v1715_v20  ;;  %1755 = vrot.lane.b32.xlu0 %v1715_v20, %s3495_s20  ;;  %v1723_v61 = vmax.f32 %v1715_v20, 0.0 }
 0x558   : > { %v1728_v23 = vsub.f32 0.0, %v1726_v21  ;;  %v3509_v21 = vmov 12  }
 0x559   : > { %v1727_v24 = vsub.f32 0.0, %v1725_v22 }
 0x55a   : > { %v1731_v25 = vmul.f32 1.442695, %v1728_v23  ;;  %958 = vrot.lane.b32.xlu1 %v3974_v17, %s3496_s19 }
 0x55b   : > { %v1729_v26 = vmul.f32 1.442695, %v1727_v24  ;;  %1793 = vrot.lane.b32.xlu0 %v1715_v20, %s3496_s19  ;;  %v3511_v20 = vmov 14  }
 0x55c   : > { %3082 = vpow2.f32 %v1731_v25 }
 0x55d   : > { %3084 = vpow2.f32 %v1729_v26  ;;  %v4040_v26 = vsub.s32 3, %v1000_v55 }
 0x55e   : > { %v3081_v27 = vpop.eup %3080  ;;  %1757 = vrot.lane.b32.xlu1 %v1720_v18, %s3495_s20  ;;  %s2678_s20 = sshll.u32 %s3600_s27, 7  ;;  %s3513_s27 = smov [#allocation17]  }
 0x55f   : > { %v907_v28 = vadd.f32 1.0, %v3081_v27  ;;  %v910_v33 = vmul.f32 -0.5, %v3081_v27  ;;  %v913_v36 = vand.u32 2147483647, %v3081_v27  ;;  %s4619_s18 = scalar_lea.hbm %s4746_s8, %s2678_s20 }
 0x561   : > { %3086 = vlog2.f32 %v907_v28  ;;  %v911_v35 = vadd.f32 1.0, %v910_v33  ;;  %vm914_vm5 = vcmp.lt.f32.partialorder %v913_v36, 0.0004427343 }
 0x562   : > { %1795 = vrot.lane.b32.xlu1 %v1720_v18, %s3496_s19  ;;  %v890_v18 = vand.u32 2147483647, %v3974_v17  ;;  %s3403_s19 = sshll.u32 %s3513_s27, 4  ;;  %s3404_s19 = int_to_ptr.vmem [resolvable:$false] %s3403_s19 }
 0x563   : > { %v912_v40 = vmul.f32 %v3081_v27, %v911_v35  ;;  %s3405_s12 = scalar_lea.vmem %s3404_s19, 256  ;;  %p3406_p2 = scmp.lt.s32.totalorder %s4621_s30, %s3404_s19 }
 0x564   : > { %v892_v16 = vsub.f32 0.0, %v890_v18  ;;  %p3407_p8 = scmp.lt.s32.totalorder %s3405_s12, %s3399_s2 }
 0x566   : > { %v3083_v29 = vpop.eup %3082  ;;  %p3408_p6 = por %p3407_p8, %p3406_p2 }
 0x567   : > { %v3085_v30 = vpop.eup %3084  ;;  %v1742_v31 = vadd.f32 1.0, %v3083_v29  ;;  %v1745_v38 = vmul.f32 -0.5, %v3083_v29  ;;  %v1748_v46 = vand.u32 2147483647, %v3083_v29 }
 0x568   : > { %v1733_v32 = vadd.f32 1.0, %v3085_v30  ;;  %v1736_v39 = vmul.f32 -0.5, %v3085_v30  ;;  %v1739_v50 = vand.u32 2147483647, %v3085_v30  ;;  %p3409_p11 = pnand %p3408_p6, %p3402_p3 }
 0x569   : > { %3088 = vlog2.f32 %v1742_v31  ;;  %v1746_v44 = vadd.f32 1.0, %v1745_v38  ;;  %vm1749_vm6 = vcmp.lt.f32.partialorder %v1748_v46, 0.0004427343  ;;  %v888_v38 = vmax.f32 %v3974_v17, 0.0 }
 0x56a   : > { %3090 = vlog2.f32 %v1733_v32  ;;  %v1737_v47 = vadd.f32 1.0, %v1736_v39  ;;  %vm1740_vm7 = vcmp.lt.f32.partialorder %v1739_v50, 0.0004427343 }
 0x56b   : > { %v3087_v34 = vpop.eup %3086  ;;  %v1747_v53 = vmul.f32 %v3083_v29, %v1746_v44  ;;  %v3507_v44 = vmov 11  }
 0x56c   : > { %v909_v37 = vmul.f32 0.6931472, %v3087_v34  ;;  %v1738_v54 = vmul.f32 %v3085_v30, %v1737_v47  ;;  %v3510_v47 = vmov 13  }
 0x56e   : > { %v915_v43 = vsel %vm914_vm5, %v912_v40, %v909_v37 }
 0x56f   : > { %v3981_v51 = vadd.f32 %v915_v43, %v889_v45  ;;  %v3512_v45 = vmov 15  }
 0x571   : > { %v3985_v59 = vmul.f32 %v3981_v51, %v3951_v62  ;;  %v1439_v7 = vrot.slane %v3981_v51, %v3989_v0  ;;  %v1470_v25 = vrot.slane %v3981_v51, %v3993_v3 }
 0x573   : > { %v3089_v41 = vpop.eup %3088  ;;  %v1450_v5 = vrot.slane %v3985_v59, %v3989_v0  ;;  %v1481_v6 = vrot.slane %v3985_v59, %v3993_v3  ;;  %v4036_v24 = vmul.f32 %v1439_v7, %v4009_v12  ;;  %v4049_v30 = vmul.f32 %v1470_v25, %v4009_v12 }
 0x574   : > { %v3091_v42 = vpop.eup %3090  ;;  %v1744_v49 = vmul.f32 0.6931472, %v3089_v41 }
 0x575   : > { %v1735_v52 = vmul.f32 0.6931472, %v3091_v42  ;;  %v3508_v42 = vmov 9  }
 0x576   : > { %v1750_v56 = vsel %vm1749_vm6, %v1747_v53, %v1744_v49  ;;  %v4087_v49 = vld [vmem:[#allocation12 + $0x8] sm:$0xff] }
 0x577   : > { %v1741_v58 = vsel %vm1740_vm7, %v1738_v54, %v1735_v52  ;;  %v3987_v63 = vadd.f32 %v1750_v56, %v1724_v57 }
 0x578   : > { %v3991_v2 = vadd.f32 %v1741_v58, %v1723_v61 }
 0x579   : > { %v4007_v1 = vmul.f32 %v3987_v63, %v3963_v9 }
 0x57a   : > { %v4015_v14 = vmul.f32 %v3991_v2, %v3953_v4  ;;  %v2274_v53 = vrot.slane %v3991_v2, %v4001_v10  ;;  %v2305_v54 = vrot.slane %v3991_v2, %v4011_v13 }
 0x57c   : > { %v4098_v55 = vmul.f32 %v2274_v53, %v4087_v49  ;;  %v4101_v56 = vmul.f32 %v2305_v54, %v4087_v49  ;;  %v3497_v53 = vmov 2   ;;  %v3498_v54 = vmov 0  }
 0x5c0   : > { %v923_v57 = vpop.permute.xlu1 %922 }
 0x5c4   : > { %v961_v58 = vpop.permute.xlu1 %960 }
 0x5c8   : > { %v921_v61 = vpop.permute.xlu1 %920 }
 0x5c9   : > { %926 = vxpose.xlu0.b32.start [1/2] (short) (narrow) %v921_v61, 8  ;;  %v1756_v7 = vpop.permute.xlu0 %1755  ;;  %v3499_v61 = vmov 4  }
 0x5cc   : > { %v959_v25 = vpop.permute.xlu1 %958 }
 0x5cd   : > { %927 = vxpose.xlu0.b32.end [2/2] (short) (narrow) %v923_v57, 8  ;;  %964 = vxpose.xlu1.b32.start [1/2] (short) (narrow) %v959_v25, 8  ;;  %v1794_v50 = vpop.permute.xlu0 %1793  ;;  %v3500_v57 = vmov 1   ;;  %v3506_v25 = vmov 8  }
 0x5d0   : > { %v1758_v22 = vpop.permute.xlu1 %1757 }
 0x5d1   : > { %1799 = vxpose.xlu0.b32.start [1/2] (short) (narrow) %v1794_v50, 8  ;;  %965 = vxpose.xlu1.b32.end [2/2] (short) (narrow) %v961_v58, 8  ;;  %v3501_v50 = vmov 5   ;;  %v3504_v58 = vmov 6  }
 0x5d4   : > { %v1796_v48 = vpop.permute.xlu1 %1795 }
 0x5d5   : > { %1761 = vxpose.xlu1.b32.start [1/2] (short) (narrow) %v1756_v7, 8  ;;  %1800 = vxpose.xlu0.b32.end [2/2] (short) (narrow) %v1796_v48, 8  ;;  %v3503_v48 = vmov 7   ;;  %v3505_v7 = vmov 10  }
 0x5d9   : > { %1762 = vxpose.xlu1.b32.end [2/2] (short) (narrow) %v1758_v22, 8  ;;  %v3502_v22 = vmov 3  }
 0x5f7   : > { %2999 = vset.pattern.permute.xlu1 %v3497_v53 }
 0x5fe   : > { %2997 = vset.pattern.permute.xlu0 %v3498_v54 }
 0x649   : > { %v942_v46 = vpop.trf.xlu0 }
 0x64a   : > { %1072 = vperm.xlu1 %2999, %v942_v46   ;;  %1008 = vperm.xlu0 %2997, %v942_v46  }
 0x64d   : > { %v4115_v52 = vpop.trf.xlu1 }
 0x64e   : > { %3001 = vset.pattern.permute.xlu1 %v3499_v61  ;;  %2998 = vset.pattern.permute.xlu0 %v3500_v57 }
 0x64f   : > { %1134 = vperm.xlu1 %3001, %v942_v46   ;;  %1041 = vperm.xlu0 %2998, %v942_v46  }
 0x651   : > { %v4163_v41 = vpop.trf.xlu0 }
 0x653   : > { %3002 = vset.pattern.permute.xlu1 %v3501_v50  ;;  %3000 = vset.pattern.permute.xlu0 %v3502_v22 }
 0x654   : > { %1165 = vperm.xlu1 %3002, %v942_v46   ;;  %1103 = vperm.xlu0 %3000, %v942_v46  }
 0x655   : > { %v4134_v43 = vpop.trf.xlu1 }
 0x658   : > { %3004 = vset.pattern.permute.xlu1 %v3503_v48  ;;  %3003 = vset.pattern.permute.xlu0 %v3504_v58 }
 0x659   : > { %1227 = vperm.xlu1 %3004, %v942_v46   ;;  %1196 = vperm.xlu0 %3003, %v942_v46  }
 0x65d   : > { %3007 = vset.pattern.permute.xlu1 %v3505_v7  ;;  %3005 = vset.pattern.permute.xlu0 %v3506_v25 }
 0x65e   : > { %1320 = vperm.xlu1 %3007, %v942_v46   ;;  %1258 = vperm.xlu0 %3005, %v942_v46  }
 0x662   : > { %3008 = vset.pattern.permute.xlu1 %v3507_v44  ;;  %3006 = vset.pattern.permute.xlu0 %v3508_v42 }
 0x663   : > { %1351 = vperm.xlu1 %3008, %v942_v46   ;;  %1289 = vperm.xlu0 %3006, %v942_v46  }
 0x667   : > { %3009 = vset.pattern.permute.xlu1 %v3509_v21  ;;  %3015 = vset.pattern.permute.xlu0 %v3497_v53 }
 0x668   : > { %1382 = vperm.xlu1 %3009, %v942_v46   ;;  %1083 = vperm.xlu0 %3015, %v4115_v52  }
 0x66c   : > { %3010 = vset.pattern.permute.xlu1 %v3510_v47  ;;  %3017 = vset.pattern.permute.xlu0 %v3499_v61 }
 0x66d   : > { %1413 = vperm.xlu1 %3010, %v942_v46   ;;  %1145 = vperm.xlu0 %3017, %v4115_v52  }
 0x671   : > { %3011 = vset.pattern.permute.xlu1 %v3511_v20  ;;  %3020 = vset.pattern.permute.xlu0 %v3503_v48 }
 0x672   : > { %1444 = vperm.xlu1 %3011, %v942_v46   ;;  %1238 = vperm.xlu0 %3020, %v4115_v52  }
 0x676   : > { %3012 = vset.pattern.permute.xlu1 %v3512_v45  ;;  %3023 = vset.pattern.permute.xlu0 %v3505_v7 }
 0x677   : > { %1475 = vperm.xlu1 %3012, %v942_v46   ;;  %1331 = vperm.xlu0 %3023, %v4115_v52   ;;  %v894_v46 = vmul.f32 1.442695, %v892_v16 }
 0x679   : > { %3092 = vpow2.f32 %v894_v46 }
 0x67b   : > { %3013 = vset.pattern.permute.xlu1 %v3498_v54  ;;  %3026 = vset.pattern.permute.xlu0 %v3510_v47 }
 0x67c   : > { %1424 = vperm.xlu0 %3026, %v4115_v52   ;;  %1020 = vperm.xlu1 %3013, %v4115_v52  }
 0x680   : > { %3014 = vset.pattern.permute.xlu1 %v3500_v57  ;;  %1907 = vperm.xlu0 %3026, %v4134_v43  }
 0x681   : > { %1052 = vperm.xlu1 %3014, %v4115_v52  }
 0x683   : > { %v3093_v16 = vpop.eup %3092 }
 0x684   : > { %3032 = vset.pattern.permute.xlu0 %v3505_v7  ;;  %v898_v18 = vadd.f32 1.0, %v3093_v16  ;;  %v901_v46 = vmul.f32 -0.5, %v3093_v16  ;;  %v904_v40 = vand.u32 2147483647, %v3093_v16 }
 0x685   : > { %3016 = vset.pattern.permute.xlu1 %v3502_v22  ;;  %2000 = vperm.xlu0 %3032, %v4134_v43  }
 0x686   : > { %1114 = vperm.xlu1 %3016, %v4115_v52   ;;  %3094 = vlog2.f32 %v898_v18  ;;  %v902_v36 = vadd.f32 1.0, %v901_v46  ;;  %vm905_vm8 = vcmp.lt.f32.partialorder %v904_v40, 0.0004427343 }
 0x688   : > { %v903_v39 = vmul.f32 %v3093_v16, %v902_v36 }
 0x689   : > { %3033 = vset.pattern.permute.xlu0 %v3508_v42 }
 0x68a   : > { %3018 = vset.pattern.permute.xlu1 %v3501_v50  ;;  %2031 = vperm.xlu0 %3033, %v4134_v43  }
 0x68b   : > { %1176 = vperm.xlu1 %3018, %v4115_v52  }
 0x68e   : > { %3034 = vset.pattern.permute.xlu0 %v3506_v25 }
 0x68f   : > { %3019 = vset.pattern.permute.xlu1 %v3504_v58  ;;  %2062 = vperm.xlu0 %3034, %v4134_v43  }
 0x690   : > { %1207 = vperm.xlu1 %3019, %v4115_v52   ;;  %v3095_v18 = vpop.eup %3094 }
 0x691   : > { %v900_v34 = vmul.f32 0.6931472, %v3095_v18 }
 0x693   : > { %3035 = vset.pattern.permute.xlu0 %v3503_v48  ;;  %v906_v15 = vsel %vm905_vm8, %v903_v39, %v900_v34 }
 0x694   : > { %3021 = vset.pattern.permute.xlu1 %v3506_v25  ;;  %2093 = vperm.xlu0 %3035, %v4134_v43   ;;  %v4175_v46 = vadd.f32 %v906_v15, %v888_v38 }
 0x695   : > { %1269 = vperm.xlu1 %3021, %v4115_v52  }
 0x696   : > { %v1002_v36 = vrot.slane %v4175_v46, %v4011_v13  ;;  %v1036_v15 = vrot.slane %v4175_v46, %v4001_v10  ;;  %v1129_v18 = vrot.slane %v4175_v46, %v4025_v19 }
 0x698   : > { %3040 = vset.pattern.permute.xlu0 %v3497_v53  ;;  %v1003_v17 = vmul.f32 %v1002_v36, %v4009_v12  ;;  %v1037_v38 = vmul.f32 %v1036_v15, %v4009_v12  ;;  %v1160_v36 = vrot.slane %v4175_v46, %v4003_v11 }
 0x699   : > { %3022 = vset.pattern.permute.xlu1 %v3508_v42  ;;  %2248 = vperm.xlu0 %3040, %v4134_v43  }
 0x69a   : > { %1300 = vperm.xlu1 %3022, %v4115_v52   ;;  %v1004_v34 = vmul.f32 1.442695, %v1003_v17  ;;  %v1038_v39 = vmul.f32 1.442695, %v1037_v38 }
 0x69c   : > { %3096 = vpow2.f32 %v1004_v34  ;;  %v1130_v34 = vmul.f32 %v1129_v18, %v4009_v12 }
 0x69d   : > { %3041 = vset.pattern.permute.xlu0 %v3500_v57  ;;  %3098 = vpow2.f32 %v1038_v39 }
 0x69e   : > { %3024 = vset.pattern.permute.xlu1 %v3507_v44  ;;  %2279 = vperm.xlu0 %3041, %v4134_v43   ;;  %v1131_v37 = vmul.f32 1.442695, %v1130_v34 }
 0x69f   : > { %1362 = vperm.xlu1 %3024, %v4115_v52  }
 0x6a2   : > { %3044 = vset.pattern.permute.xlu0 %v3511_v20 }
 0x6a3   : > { %3025 = vset.pattern.permute.xlu1 %v3509_v21  ;;  %1887 = vperm.xlu0 %3044, %v4163_v41  }
 0x6a4   : > { %1393 = vperm.xlu1 %3025, %v4115_v52  }
 0x6a7   : > { %3047 = vset.pattern.permute.xlu0 %v3507_v44 }
 0x6a8   : > { %3027 = vset.pattern.permute.xlu1 %v3511_v20  ;;  %1980 = vperm.xlu0 %3047, %v4163_v41  }
 0x6a9   : > { %1455 = vperm.xlu1 %3027, %v4115_v52  }
 0x6ac   : > { %3050 = vset.pattern.permute.xlu0 %v3506_v25 }
 0x6ad   : > { %3028 = vset.pattern.permute.xlu1 %v3512_v45  ;;  %2073 = vperm.xlu0 %3050, %v4163_v41  }
 0x6ae   : > { %1486 = vperm.xlu1 %3028, %v4115_v52   ;;  %v1098_v52 = vrot.slane %v4175_v46, %v4040_v26 }
 0x6b0   : > { %v1099_v16 = vmul.f32 %v1098_v52, %v4009_v12  ;;  %v1191_v52 = vrot.slane %v4175_v46, %v3989_v0 }
 0x6b1   : > { %3053 = vset.pattern.permute.xlu0 %v3501_v50 }
 0x6b2   : > { %1844 = vperm.xlu1 %3028, %v4134_v43   ;;  %2166 = vperm.xlu0 %3053, %v4163_v41   ;;  %v1100_v15 = vmul.f32 1.442695, %v1099_v16 }
 0x6b6   : > { %3029 = vset.pattern.permute.xlu1 %v3511_v20  ;;  %3056 = vset.pattern.permute.xlu0 %v3497_v53  ;;  %v1067_v20 = vrot.slane %v4175_v46, %v3999_v8  ;;  %v4205_v53 = vmul.f32 %v4175_v46, %v3948_v60 }
 0x6b7   : > { %1876 = vperm.xlu1 %3029, %v4134_v43   ;;  %2259 = vperm.xlu0 %3056, %v4163_v41  }
 0x6b8   : > { %v1068_v40 = vmul.f32 %v1067_v20, %v4009_v12  ;;  %v1014_v17 = vrot.slane %v4205_v53, %v4011_v13  ;;  %v1047_v18 = vrot.slane %v4205_v53, %v4001_v10  ;;  %v1078_v34 = vrot.slane %v4205_v53, %v3999_v8 }
 0x6ba   : > { %v1069_v25 = vmul.f32 1.442695, %v1068_v40 }
 0x6bb   : > { %3030 = vset.pattern.permute.xlu1 %v3509_v21  ;;  %3059 = vset.pattern.permute.xlu0 %v3498_v54 }
 0x6bc   : > { %1938 = vperm.xlu1 %3030, %v4134_v43   ;;  %3100 = vpow2.f32 %v1069_v25  ;;  %v1161_v25 = vmul.f32 %v1160_v36, %v4009_v12  ;;  %v1222_v36 = vrot.slane %v4175_v46, %v3993_v3  ;;  %v1253_v46 = vrot.slane %v3981_v51, %v4011_v13 }
 0x6bd   : > { %3102 = vpow2.f32 %v1100_v15  ;;  %v1192_v15 = vmul.f32 %v1191_v52, %v4009_v12 }
 0x6be   : > { %3104 = vpow2.f32 %v1131_v37  ;;  %v1223_v52 = vmul.f32 %v1222_v36, %v4009_v12  ;;  %v1284_v36 = vrot.slane %v3981_v51, %v4001_v10 }
 0x6bf   : > { %v1193_v37 = vmul.f32 1.442695, %v1192_v15  ;;  %v1254_v15 = vmul.f32 %v1253_v46, %v4009_v12 }
 0x6c0   : > { %3031 = vset.pattern.permute.xlu1 %v3507_v44  ;;  %v3097_v44 = vpop.eup %3096  ;;  %v1224_v33 = vmul.f32 1.442695, %v1223_v52  ;;  %v1285_v46 = vmul.f32 %v1284_v36, %v4009_v12 }
 0x6c1   : > { %1969 = vperm.xlu1 %3031, %v4134_v43   ;;  %v1016_v40 = vmul.f32 0.0, %v3097_v44  ;;  %v3099_v16 = vpop.eup %3098  ;;  %v1255_v52 = vmul.f32 1.442695, %v1254_v15  ;;  %v1346_v15 = vrot.slane %v3981_v51, %v4040_v26 }
 0x6c5   : > { %3036 = vset.pattern.permute.xlu1 %v3504_v58 }
 0x6c6   : > { %2124 = vperm.xlu1 %3036, %v4134_v43  }
 0x6c9   : > { %v1009_v38 = vpop.permute.xlu0 %1008  ;;  %v1073_v20 = vpop.permute.xlu1 %1072 }
 0x6ca   : > { %v1015_v39 = vmul.f32 %v1014_v17, %v1009_v38  ;;  %3037 = vset.pattern.permute.xlu1 %v3501_v50  ;;  %v1162_v38 = vmul.f32 1.442695, %v1161_v25 }
 0x6cb   : > { %2155 = vperm.xlu1 %3037, %v4134_v43  }
 0x6cc   : > { %v4221_v29 = vadd.f32 %v1016_v40, %v1015_v39  ;;  %v3101_v40 = vpop.eup %3100  ;;  %3106 = vpow2.f32 %v1162_v38 }
 0x6cd   : > { %3108 = vpow2.f32 %v1193_v37 }
 0x6ce   : > { %v1042_v28 = vpop.permute.xlu0 %1041  ;;  %v1049_v44 = vmul.f32 %v3099_v16, %v4221_v29  ;;  %v1135_v17 = vpop.permute.xlu1 %1134  ;;  %v1079_v16 = vmul.f32 %v1078_v34, %v1073_v20  ;;  %3110 = vpow2.f32 %v1224_v33 }
 0x6cf   : > { %v1048_v50 = vmul.f32 %v1047_v18, %v1042_v28  ;;  %3038 = vset.pattern.permute.xlu1 %v3499_v61  ;;  %v3103_v20 = vpop.eup %3102  ;;  %3112 = vpow2.f32 %v1255_v52  ;;  %v1347_v52 = vmul.f32 %v1346_v15, %v4009_v12 }
 0x6d0   : > { %2186 = vperm.xlu1 %3038, %v4134_v43   ;;  %v3105_v32 = vpop.eup %3104 }
 0x6d1   : > { %v4234_v39 = vadd.f32 %v1049_v44, %v1048_v50  ;;  %v1109_v44 = vrot.slane %v4205_v53, %v4040_v26  ;;  %v1348_v15 = vmul.f32 1.442695, %v1347_v52 }
 0x6d3   : > { %v1080_v28 = vmul.f32 %v3101_v40, %v4234_v39  ;;  %v1104_v18 = vpop.permute.xlu0 %1103  ;;  %v1166_v35 = vpop.permute.xlu1 %1165 }
 0x6d4   : > { %3039 = vset.pattern.permute.xlu1 %v3502_v22  ;;  %v1110_v50 = vmul.f32 %v1109_v44, %v1104_v18  ;;  %v1315_v44 = vrot.slane %v3981_v51, %v3999_v8 }
 0x6d5   : > { %v1081_v25 = vadd.f32 %v1080_v28, %v1079_v16  ;;  %2217 = vperm.xlu1 %3039, %v4134_v43   ;;  %v1140_v16 = vrot.slane %v4205_v53, %v4025_v19 }
 0x6d6   : > { %v3107_v23 = vpop.eup %3106  ;;  %v1316_v33 = vmul.f32 %v1315_v44, %v4009_v12 }
 0x6d7   : > { %v1111_v34 = vmul.f32 %v3103_v20, %v1081_v25  ;;  %v1141_v18 = vmul.f32 %v1140_v16, %v1135_v17  ;;  %v1202_v16 = vrot.slane %v4205_v53, %v3989_v0 }
 0x6d8   : > { %v1197_v40 = vpop.permute.xlu0 %1196  ;;  %v1228_v38 = vpop.permute.xlu1 %1227 }
 0x6d9   : > { %v4249_v28 = vadd.f32 %v1111_v34, %v1110_v50  ;;  %3042 = vset.pattern.permute.xlu1 %v3498_v54  ;;  %v1171_v50 = vrot.slane %v4205_v53, %v4003_v11 }
 0x6da   : > { %2310 = vperm.xlu1 %3042, %v4134_v43  }
 0x6db   : > { %v1142_v37 = vmul.f32 %v3105_v32, %v4249_v28  ;;  %v1172_v43 = vmul.f32 %v1171_v50, %v1166_v35  ;;  %v1286_v32 = vmul.f32 1.442695, %v1285_v46  ;;  %v1203_v35 = vmul.f32 %v1202_v16, %v1197_v40 }
 0x6dc   : > { %v1377_v46 = vrot.slane %v3981_v51, %v4025_v19  ;;  %v1233_v50 = vrot.slane %v4205_v53, %v3993_v3  ;;  %v1408_v40 = vrot.slane %v3981_v51, %v4003_v11  ;;  %v1264_v53 = vrot.slane %v3985_v59, %v4011_v13 }
 0x6dd   : > { %v1143_v20 = vadd.f32 %v1142_v37, %v1141_v18  ;;  %v1259_v34 = vpop.permute.xlu0 %1258  ;;  %v4259_v31 = vpop.permute.xlu1 %1320  ;;  %3114 = vpow2.f32 %v1286_v32 }
 0x6de   : > { %3043 = vset.pattern.permute.xlu1 %v3512_v45  ;;  %v3109_v18 = vpop.eup %3108  ;;  %v1317_v45 = vmul.f32 1.442695, %v1316_v33 }
 0x6df   : > { %v1173_v17 = vmul.f32 %v3107_v23, %v1143_v20  ;;  %1856 = vperm.xlu1 %3043, %v4163_v41  }
 0x6e0   : > { %3116 = vpow2.f32 %v1317_v45 }
 0x6e1   : > { %v4266_v36 = vadd.f32 %v1173_v17, %v1172_v43  ;;  %v3111_v43 = vpop.eup %3110  ;;  %v1234_v17 = vmul.f32 %v1233_v50, %v1228_v38  ;;  %v1265_v50 = vmul.f32 %v1264_v53, %v1259_v34  ;;  %3118 = vpow2.f32 %v1348_v15 }
 0x6e2   : > { %v1290_v37 = vpop.permute.xlu0 %1289  ;;  %v4270_v27 = vpop.permute.xlu1 %1351 }
 0x6e3   : > { %v1204_v23 = vmul.f32 %v3109_v18, %v4266_v36  ;;  %3045 = vset.pattern.permute.xlu1 %v3510_v47  ;;  %v1378_v18 = vmul.f32 %v1377_v46, %v4009_v12  ;;  %v3113_v51 = vpop.eup %3112 }
 0x6e4   : > { %1918 = vperm.xlu1 %3045, %v4163_v41  }
 0x6e5   : > { %v4278_v44 = vadd.f32 %v1204_v23, %v1203_v35  ;;  %v1409_v23 = vmul.f32 %v1408_v40, %v4009_v12 }
 0x6e7   : > { %v1235_v47 = vmul.f32 %v3111_v43, %v4278_v44  ;;  %v1084_v32 = vpop.permute.xlu0 %1083  ;;  %v4285_v33 = vpop.permute.xlu1 %1382  ;;  %v1410_v12 = vmul.f32 1.442695, %v1409_v23 }
 0x6e8   : > { %v1086_v16 = vmul.f32 %v1084_v32, %v1081_v25  ;;  %3046 = vset.pattern.permute.xlu1 %v3509_v21  ;;  %v1379_v25 = vmul.f32 1.442695, %v1378_v18 }
 0x6e9   : > { %v1236_v35 = vadd.f32 %v1235_v47, %v1234_v17  ;;  %1949 = vperm.xlu1 %3046, %v4163_v41   ;;  %v1295_v17 = vrot.slane %v3985_v59, %v4001_v10 }
 0x6ea   : > { %v1087_v38 = vsel %vm532_vm0, %v1086_v16, 0.0  ;;  %v3115_v16 = vpop.eup %3114  ;;  %3120 = vpow2.f32 %v1379_v25 }
 0x6eb   : > { %v1266_v43 = vmul.f32 %v3113_v51, %v1236_v35  ;;  %v1088_v45 = vrot.slane %v1087_v38, 4  ;;  %v1296_v34 = vmul.f32 %v1295_v17, %v1290_v37  ;;  %v1326_v51 = vrot.slane %v3985_v59, %v3999_v8 }
 0x6ec   : > { %v1146_v52 = vpop.permute.xlu0 %1145  ;;  %v4294_v46 = vpop.permute.xlu1 %1413  ;;  %3122 = vpow2.f32 %v1410_v12 }
 0x6ed   : > { %v4296_v21 = vadd.f32 %v1266_v43, %v1265_v50  ;;  %v1089_v47 = vadd.f32 %v1088_v45, %v1087_v38  ;;  %v1148_v32 = vmul.f32 %v1146_v52, %v1143_v20  ;;  %3048 = vset.pattern.permute.xlu1 %v3505_v7  ;;  %v3117_v43 = vpop.eup %3116  ;;  %v1327_v37 = vmul.f32 %v1326_v51, %v4259_v31 }
 0x6ee   : > { %2011 = vperm.xlu1 %3048, %v4163_v41  }
 0x6ef   : > { %v1297_v40 = vmul.f32 %v3115_v16, %v4296_v21  ;;  %v1090_v15 = vrot.slane %v1089_v47, 2  ;;  %v1149_v18 = vsel %vm532_vm0, %v1148_v32, 0.0  ;;  %v1441_v32 = vmul.f32 1.442695, %v4036_v24 }
 0x6f0   : > { %v1150_v53 = vrot.slane %v1149_v18, 4  ;;  %v1357_v16 = vrot.slane %v3985_v59, %v4040_v26 }
 0x6f1   : > { %v4306_v50 = vadd.f32 %v1297_v40, %v1296_v34  ;;  %v1091_v20 = vadd.f32 %v1090_v15, %v1089_v47  ;;  %v1239_v38 = vpop.permute.xlu0 %1238  ;;  %v4308_v7 = vpop.permute.xlu1 %1444  ;;  %3124 = vpow2.f32 %v1441_v32 }
 0x6f2   : > { %v1151_v45 = vadd.f32 %v1150_v53, %v1149_v18  ;;  %v1241_v23 = vmul.f32 %v1239_v38, %v1236_v35  ;;  %3049 = vset.pattern.permute.xlu1 %v3508_v42  ;;  %v3119_v40 = vpop.eup %3118  ;;  %v1358_v53 = vmul.f32 %v1357_v16, %v4270_v27 }
 0x6f3   : > { %v1328_v52 = vmul.f32 %v3117_v43, %v4306_v50  ;;  %v1092_v25 = vrot.slane %v1091_v20, 1  ;;  %2042 = vperm.xlu1 %3049, %v4163_v41  }
 0x6f4   : > { %v1152_v17 = vrot.slane %v1151_v45, 2  ;;  %v1242_v47 = vsel %vm532_vm0, %v1241_v23, 0.0 }
 0x6f5   : > { %v1329_v35 = vadd.f32 %v1328_v52, %v1327_v37  ;;  %v1093_v34 = vadd.f32 %v1092_v25, %v1091_v20  ;;  %v1243_v42 = vrot.slane %v1242_v47, 4  ;;  %v1472_v20 = vmul.f32 1.442695, %v4049_v30  ;;  %v3121_v37 = vpop.eup %3120 }
 0x6f6   : > { %v1153_v31 = vadd.f32 %v1152_v17, %v1151_v45  ;;  %v1332_v15 = vpop.permute.xlu0 %1331  ;;  %v4318_v18 = vpop.permute.xlu1 %1475  ;;  %v1388_v45 = vrot.slane %v3985_v59, %v4025_v19 }
 0x6f7   : > { %v1359_v12 = vmul.f32 %v3119_v40, %v1329_v35  ;;  %1094 = vst.msk [vmem:[#allocation2 + $0x2] sm:$0x1] %vm1031_vm9, %v1093_v34  ;;  %v1244_v51 = vadd.f32 %v1243_v42, %v1242_v47  ;;  %v1334_v38 = vmul.f32 %v1332_v15, %v1329_v35  ;;  %3051 = vset.pattern.permute.xlu1 %v3503_v48  ;;  %3126 = vpow2.f32 %v1472_v20  ;;  %v3123_v34 = vpop.eup %3122 }
 0x6f8   : > { %v1154_v24 = vrot.slane %v1153_v31, 1  ;;  %2104 = vperm.xlu1 %3051, %v4163_v41   ;;  %v1389_v17 = vmul.f32 %v1388_v45, %v4285_v33  ;;  %v1419_v40 = vrot.slane %v3985_v59, %v4003_v11 }
 0x6f9   : > { %v4325_v43 = vadd.f32 %v1359_v12, %v1358_v53  ;;  %v1245_v23 = vrot.slane %v1244_v51, 2  ;;  %v1335_v27 = vsel %vm532_vm0, %v1334_v38, 0.0 }
 0x6fa   : > { %v1155_v52 = vadd.f32 %v1154_v24, %v1153_v31  ;;  %v1336_v25 = vrot.slane %v1335_v27, 4  ;;  %v1420_v53 = vmul.f32 %v1419_v40, %v4294_v46  ;;  %v1451_v46 = vmul.f32 %v1450_v5, %v4308_v7 }
 0x6fb   : > { %v1390_v48 = vmul.f32 %v3121_v37, %v4325_v43  ;;  %v1246_v47 = vadd.f32 %v1245_v23, %v1244_v51  ;;  %v1425_v16 = vpop.permute.xlu0 %1424  ;;  %v1021_v32 = vpop.permute.xlu1 %1020 }
 0x6fc   : > { %1156 = vst.msk [vmem:[#allocation2 + $0x4] sm:$0x1] %vm1031_vm9, %v1155_v52  ;;  %v1337_v30 = vadd.f32 %v1336_v25, %v1335_v27  ;;  %v1023_v35 = vmul.f32 %v1021_v32, %v4221_v29  ;;  %3052 = vset.pattern.permute.xlu1 %v3504_v58  ;;  %v3125_v27 = vpop.eup %3124 }
 0x6fd   : > { %v4335_v42 = vadd.f32 %v1390_v48, %v1389_v17  ;;  %v1247_v33 = vrot.slane %v1246_v47, 1  ;;  %2135 = vperm.xlu1 %3052, %v4163_v41  }
 0x6fe   : > { %v1338_v31 = vrot.slane %v1337_v30, 2  ;;  %v1024_v15 = vsel %vm532_vm0, %v1023_v35, 0.0 }
 0x6ff   : > { %v1248_v12 = vadd.f32 %v1247_v33, %v1246_v47  ;;  %v1421_v29 = vmul.f32 %v3123_v34, %v4335_v42  ;;  %v1025_v51 = vrot.slane %v1024_v15, 4  ;;  %v4343_v58 = vpop.permute.xlu0 %1907  ;;  %v1482_v33 = vmul.f32 %v1481_v6, %v4318_v18 }
 0x700   : > { %v1339_v38 = vadd.f32 %v1338_v31, %v1337_v30  ;;  %v1053_v24 = vpop.permute.xlu1 %1052 }
 0x701   : > { %1249 = vst.msk [vmem:[#allocation2 + $0x7] sm:$0x1] %vm1031_vm9, %v1248_v12  ;;  %v1422_v20 = vadd.f32 %v1421_v29, %v1420_v53  ;;  %v1026_v45 = vadd.f32 %v1025_v51, %v1024_v15  ;;  %v1055_v23 = vmul.f32 %v1053_v24, %v4234_v39  ;;  %3054 = vset.pattern.permute.xlu1 %v3499_v61  ;;  %v3127_v40 = vpop.eup %3126 }
 0x702   : > { %v1340_v37 = vrot.slane %v1339_v38, 1  ;;  %2197 = vperm.xlu1 %3054, %v4163_v41  }
 0x703   : > { %v1427_v52 = vmul.f32 %v1425_v16, %v1422_v20  ;;  %v1027_v25 = vrot.slane %v1026_v45, 2  ;;  %v1056_v17 = vsel %vm532_vm0, %v1055_v23, 0.0  ;;  %v1452_v48 = vmul.f32 %v3125_v27, %v1422_v20 }
 0x704   : > { %v1341_v47 = vadd.f32 %v1340_v37, %v1339_v38  ;;  %v1057_v32 = vrot.slane %v1056_v17, 4  ;;  %v4354_v30 = vpop.permute.xlu0 %2000 }
 0x705   : > { %v1428_v61 = vsel %vm532_vm0, %v1427_v52, 0.0  ;;  %v1028_v39 = vadd.f32 %v1027_v25, %v1026_v45  ;;  %v1115_v35 = vpop.permute.xlu1 %1114  ;;  %v4357_v34 = vadd.f32 %v1452_v48, %v1451_v46 }
 0x706   : > { %1342 = vst.msk [vmem:[#allocation2 + $0xa] sm:$0x1] %vm1031_vm9, %v1341_v47  ;;  %v1429_v5 = vrot.slane %v1428_v61, 4  ;;  %v1058_v7 = vadd.f32 %v1057_v32, %v1056_v17  ;;  %v1117_v16 = vmul.f32 %v1115_v35, %v4249_v28  ;;  %3055 = vset.pattern.permute.xlu1 %v3502_v22 }
 0x707   : > { %v1029_v31 = vrot.slane %v1028_v39, 1  ;;  %2228 = vperm.xlu1 %3055, %v4163_v41   ;;  %v1483_v15 = vmul.f32 %v3127_v40, %v4357_v34 }
 0x708   : > { %v1430_v53 = vadd.f32 %v1429_v5, %v1428_v61  ;;  %v1059_v12 = vrot.slane %v1058_v7, 2  ;;  %v1118_v29 = vsel %vm532_vm0, %v1117_v16, 0.0 }
 0x709   : > { %v1030_v51 = vadd.f32 %v1029_v31, %v1028_v39  ;;  %v1119_v38 = vrot.slane %v1118_v29, 4  ;;  %v4369_v24 = vpop.permute.xlu0 %2031  ;;  %v4371_v28 = vadd.f32 %v1483_v15, %v1482_v33 }
 0x70a   : > { %v1431_v22 = vrot.slane %v1430_v53, 2  ;;  %v1060_v20 = vadd.f32 %v1059_v12, %v1058_v7  ;;  %v1177_v45 = vpop.permute.xlu1 %1176 }
 0x70b   : > { %1032 = vst.msk [vmem:[#allocation2] sm:$0x1] %vm1031_vm9, %v1030_v51  ;;  %v1120_v59 = vadd.f32 %v1119_v38, %v1118_v29  ;;  %v1179_v6 = vmul.f32 %v1177_v45, %v4266_v36  ;;  %3057 = vset.pattern.permute.xlu1 %v3500_v57 }
 0x70c   : > { %v1432_v18 = vadd.f32 %v1431_v22, %v1430_v53  ;;  %v1061_v23 = vrot.slane %v1060_v20, 1  ;;  %2290 = vperm.xlu1 %3057, %v4163_v41  }
 0x70d   : > { %v1121_v27 = vrot.slane %v1120_v59, 2  ;;  %v1180_v46 = vsel %vm532_vm0, %v1179_v6, 0.0 }
 0x70e   : > { %v1433_v37 = vrot.slane %v1432_v18, 1  ;;  %v1062_v52 = vadd.f32 %v1061_v23, %v1060_v20  ;;  %v1181_v25 = vrot.slane %v1180_v46, 4  ;;  %v4378_v17 = vpop.permute.xlu0 %2062 }
 0x70f   : > { %v1122_v48 = vadd.f32 %v1121_v27, %v1120_v59  ;;  %v1208_v47 = vpop.permute.xlu1 %1207  ;;  %v4716_v27 = vrot.slane %v3987_v63, %v3993_v3 }
 0x710   : > { %v1434_v32 = vadd.f32 %v1433_v37, %v1432_v18  ;;  %1063 = vst.msk [vmem:[#allocation2 + $0x1] sm:$0x1] %vm1031_vm9, %v1062_v52  ;;  %v1182_v36 = vadd.f32 %v1181_v25, %v1180_v46  ;;  %v1210_v57 = vmul.f32 %v1208_v47, %v4278_v44  ;;  %3058 = vset.pattern.permute.xlu1 %v3498_v54 }
 0x711   : > { %v1123_v61 = vrot.slane %v1122_v48, 1  ;;  %2321 = vperm.xlu1 %3058, %v4163_v41   ;;  %v1839_v46 = vmul.f32 %v4716_v27, %v4087_v49  ;;  %v4717_v52 = vrot.slane %v4015_v14, %v4001_v10 }
 0x712   : > { %1435 = vst.msk [vmem:[#allocation2 + $0xd] sm:$0x1] %vm1031_vm9, %v1434_v32  ;;  %v1183_v39 = vrot.slane %v1182_v36, 2  ;;  %v1211_v35 = vsel %vm532_vm0, %v1210_v57, 0.0 }
 0x713   : > { %v1124_v40 = vadd.f32 %v1123_v61, %v1122_v48  ;;  %v1212_v5 = vrot.slane %v1211_v35, 4  ;;  %v4386_v7 = vpop.permute.xlu0 %2093  ;;  %v1840_v61 = vmul.f32 1.442695, %v1839_v46  ;;  %v4720_v46 = vrot.slane %v3987_v63, %v4025_v19 }
 0x714   : > { %v1184_v16 = vadd.f32 %v1183_v39, %v1182_v36  ;;  %v1270_v33 = vpop.permute.xlu1 %1269 }
 0x715   : > { %1125 = vst.msk [vmem:[#allocation2 + $0x3] sm:$0x1] %vm1031_vm9, %v1124_v40  ;;  %v1213_v31 = vadd.f32 %v1212_v5, %v1211_v35  ;;  %v1272_v44 = vmul.f32 %v1270_v33, %v4296_v21  ;;  %3128 = vpow2.f32 %v1840_v61 }
 0x716   : > { %v1185_v54 = vrot.slane %v1184_v16, 1 }
 0x717   : > { %v1214_v15 = vrot.slane %v1213_v31, 2  ;;  %v1273_v41 = vsel %vm532_vm0, %v1272_v44, 0.0 }
 0x718   : > { %v1186_v53 = vadd.f32 %v1185_v54, %v1184_v16  ;;  %v1274_v12 = vrot.slane %v1273_v41, 4  ;;  %v4391_v29 = vpop.permute.xlu0 %2248  ;;  %v4718_v16 = vrot.slane %v3987_v63, %v3989_v0 }
 0x719   : > { %v1215_v51 = vadd.f32 %v1214_v15, %v1213_v31  ;;  %v1301_v38 = vpop.permute.xlu1 %1300 }
 0x71a   : > { %1187 = vst.msk [vmem:[#allocation2 + $0x5] sm:$0x1] %vm1031_vm9, %v1186_v53  ;;  %v1275_v22 = vadd.f32 %v1274_v12, %v1273_v41  ;;  %v1303_v20 = vmul.f32 %v1301_v38, %v4306_v50  ;;  %v1872_v33 = vmul.f32 %v4718_v16, %v4087_v49 }
 0x71b   : > { %v1216_v45 = vrot.slane %v1215_v51, 1 }
 0x71c   : > { %v1276_v59 = vrot.slane %v1275_v22, 2  ;;  %v1304_v6 = vsel %vm532_vm0, %v1303_v20, 0.0  ;;  %v1873_v12 = vmul.f32 1.442695, %v1872_v33 }
 0x71d   : > { %v1217_v21 = vadd.f32 %v1216_v45, %v1215_v51  ;;  %v1305_v18 = vrot.slane %v1304_v6, 4  ;;  %v2280_v23 = vpop.permute.xlu0 %2279 }
 0x71e   : > { %v1277_v37 = vadd.f32 %v1276_v59, %v1275_v22  ;;  %v4403_v25 = vmul.f32 %v4717_v52, %v2280_v23  ;;  %v1363_v48 = vpop.permute.xlu1 %1362  ;;  %v4719_v22 = vrot.slane %v3987_v63, %v4003_v11  ;;  %3130 = vpow2.f32 %v1873_v12 }
 0x71f   : > { %1218 = vst.msk [vmem:[#allocation2 + $0x6] sm:$0x1] %vm1031_vm9, %v1217_v21  ;;  %v1306_v50 = vadd.f32 %v1305_v18, %v1304_v6  ;;  %v1365_v47 = vmul.f32 %v1363_v48, %v4325_v43  ;;  %v4723_v12 = vrot.slane %v3987_v63, %v3999_v8 }
 0x720   : > { %v1278_v32 = vrot.slane %v1277_v37, 1  ;;  %v1903_v20 = vmul.f32 %v4719_v22, %v4087_v49 }
 0x721   : > { %v1307_v36 = vrot.slane %v1306_v50, 2  ;;  %v1366_v57 = vsel %vm532_vm0, %v1365_v47, 0.0 }
 0x722   : > { %v1279_v39 = vadd.f32 %v1278_v32, %v1277_v37  ;;  %v1367_v35 = vrot.slane %v1366_v57, 4  ;;  %v1904_v27 = vmul.f32 1.442695, %v1903_v20  ;;  %v1934_v37 = vmul.f32 %v4720_v46, %v4087_v49  ;;  %v3129_v32 = vpop.eup %3128 }
 0x723   : > { %v1308_v40 = vadd.f32 %v1307_v36, %v1306_v50  ;;  %v1394_v5 = vpop.permute.xlu1 %1393  ;;  %v2347_v50 = vld [vmem:[#allocation15] sm:$0xff] }
 0x724   : > { %1280 = vst.msk [vmem:[#allocation2 + $0x8] sm:$0x1] %vm1031_vm9, %v1279_v39  ;;  %v1368_v31 = vadd.f32 %v1367_v35, %v1366_v57  ;;  %v1396_v44 = vmul.f32 %v1394_v5, %v4335_v42  ;;  %2795 = vmatprep.mubr.msk.f32.mxu1 %vm2351_vm10, %v2347_v50  ;;  %v4721_v57 = vrot.slane %v3987_v63, %v4040_v26  ;;  %3132 = vpow2.f32 %v1904_v27 }
 0x725   : > { %v1309_v43 = vrot.slane %v1308_v40, 1  ;;  %v4725_v27 = vrot.slane %v3987_v63, %v4001_v10  ;;  %v4726_v50 = vrot.slane %v4007_v1, %v4003_v11 }
 0x726   : > { %v1369_v54 = vrot.slane %v1368_v31, 2  ;;  %v1397_v15 = vsel %vm532_vm0, %v1396_v44, 0.0  ;;  %v1965_v61 = vmul.f32 %v4721_v57, %v4087_v49  ;;  %v1852_v44 = vmul.f32 0.0, %v3129_v32 }
 0x727   : > { %v1310_v41 = vadd.f32 %v1309_v43, %v1308_v40  ;;  %v1398_v53 = vrot.slane %v1397_v15, 4  ;;  %v1935_v40 = vmul.f32 1.442695, %v1934_v37 }
 0x728   : > { %v1370_v51 = vadd.f32 %v1369_v54, %v1368_v31  ;;  %v1456_v38 = vpop.permute.xlu1 %1455 }
 0x729   : > { %1311 = vst.msk [vmem:[#allocation2 + $0x9] sm:$0x1] %vm1031_vm9, %v1310_v41  ;;  %v1399_v45 = vadd.f32 %v1398_v53, %v1397_v15  ;;  %v1458_v42 = vmul.f32 %v1456_v38, %v4357_v34  ;;  %v1966_v15 = vmul.f32 1.442695, %v1965_v61  ;;  %3134 = vpow2.f32 %v1935_v40  ;;  %v4440_v53 = vld [vmem:[#allocation12 + $0x8] sm:$0xff]  ;;  %v3131_v38 = vpop.eup %3130 }
 0x72a   : > { %v1371_v59 = vrot.slane %v1370_v51, 1  ;;  %v2027_v46 = vmul.f32 %v4440_v53, %v4725_v27  ;;  %v4731_v27 = vrot.slane %v3991_v2, %v3989_v0 }
 0x72b   : > { %v1400_v6 = vrot.slane %v1399_v45, 2  ;;  %v1459_v21 = vsel %vm532_vm0, %v1458_v42, 0.0  ;;  %3136 = vpow2.f32 %v1966_v15 }
 0x72c   : > { %v1372_v18 = vadd.f32 %v1371_v59, %v1370_v51  ;;  %v1460_v23 = vrot.slane %v1459_v21, 4  ;;  %v1996_v51 = vmul.f32 %v4440_v53, %v4723_v12  ;;  %v2028_v61 = vmul.f32 1.442695, %v2027_v46 }
 0x72d   : > { %v1401_v52 = vadd.f32 %v1400_v6, %v1399_v45  ;;  %v1487_v48 = vpop.permute.xlu1 %1486  ;;  %v4724_v6 = vrot.slane %v4007_v1, %v3989_v0  ;;  %v2120_v46 = vmul.f32 %v4440_v53, %v4731_v27 }
 0x72e   : > { %1373 = vst.msk [vmem:[#allocation2 + $0xb] sm:$0x1] %vm1031_vm9, %v1372_v18  ;;  %v1461_v34 = vadd.f32 %v1460_v23, %v1459_v21  ;;  %v1489_v47 = vmul.f32 %v1487_v48, %v4371_v28  ;;  %v4722_v28 = vrot.slane %v4007_v1, %v3993_v3  ;;  %v1888_v18 = vpop.permute.xlu0 %1887  ;;  %v1997_v23 = vmul.f32 1.442695, %v1996_v51  ;;  %v3133_v48 = vpop.eup %3132 }
 0x72f   : > { %v1402_v36 = vrot.slane %v1401_v52, 1 }
 0x730   : > { %v1462_v39 = vrot.slane %v1461_v34, 2  ;;  %v1490_v35 = vsel %vm532_vm0, %v1489_v47, 0.0  ;;  %3138 = vpow2.f32 %v1997_v23 }
 0x731   : > { %v1403_v5 = vadd.f32 %v1402_v36, %v1401_v52  ;;  %v1491_v16 = vrot.slane %v1490_v35, 4  ;;  %v1845_v33 = vpop.permute.xlu1 %1844  ;;  %3140 = vpow2.f32 %v2028_v61 }
 0x732   : > { %v1463_v31 = vadd.f32 %v1462_v39, %v1461_v34  ;;  %v1851_v43 = vmul.f32 %v4722_v28, %v1845_v33  ;;  %v1914_v34 = vmul.f32 %v4726_v50, %v4343_v58  ;;  %v4727_v39 = vrot.slane %v3987_v63, %v4011_v13 }
 0x733   : > { %1404 = vst.msk [vmem:[#allocation2 + $0xc] sm:$0x1] %vm1031_vm9, %v1403_v5  ;;  %v1492_v54 = vadd.f32 %v1491_v16, %v1490_v35  ;;  %v3135_v16 = vpop.eup %3134 }
 0x734   : > { %v1464_v41 = vrot.slane %v1463_v31, 1  ;;  %v4438_v49 = vadd.f32 %v1852_v44, %v1851_v43  ;;  %v2058_v35 = vmul.f32 %v4440_v53, %v4727_v39 }
 0x735   : > { %v1493_v22 = vrot.slane %v1492_v54, 2  ;;  %v3137_v51 = vpop.eup %3136 }
 0x736   : > { %v1465_v20 = vadd.f32 %v1464_v41, %v1463_v31  ;;  %v1877_v45 = vpop.permute.xlu1 %1876  ;;  %v1884_v42 = vmul.f32 %v3131_v38, %v4438_v49  ;;  %v4728_v31 = vrot.slane %v4007_v1, %v4025_v19  ;;  %v2059_v63 = vmul.f32 1.442695, %v2058_v35  ;;  %v2660_v41 = vld [vmem:[#allocation14] ss:$0 sm:$0xff] }
 0x737   : > { %v1494_v59 = vadd.f32 %v1493_v22, %v1492_v54  ;;  %v1883_v21 = vmul.f32 %v4724_v6, %v1877_v45  ;;  %v4729_v54 = vrot.slane %v3991_v2, %v3993_v3  ;;  %v1498_v22 = vld [vmem:[#allocation2] sm:$0xff]  ;;  %v4730_v45 = vrot.slane %v4007_v1, %v4040_v26 }
 0x738   : > { %1466 = vst.msk [vmem:[#allocation2 + $0xe] sm:$0x1] %vm1031_vm9, %v1465_v20  ;;  %v1508_v6 = vmul.f32 %v2660_v41, %v3951_v62  ;;  %3142 = vpow2.f32 %v2059_v63  ;;  %v2121_v35 = vmul.f32 1.442695, %v2120_v46 }
 0x739   : > { %v1495_v37 = vrot.slane %v1494_v59, 1  ;;  %v1885_v52 = vadd.f32 %v1884_v42, %v1883_v21  ;;  %v2089_v15 = vmul.f32 %v4440_v53, %v4729_v54 }
 0x73b   : > { %v1496_v47 = vadd.f32 %v1495_v37, %v1494_v59  ;;  %v1890_v32 = vmul.f32 %v1888_v18, %v1885_v52  ;;  %v1915_v36 = vmul.f32 %v3133_v48, %v1885_v52  ;;  %v1939_v57 = vpop.permute.xlu1 %1938  ;;  %v1507_v59 = vmul.f32 %v2660_v41, %v3948_v60  ;;  %v1981_v37 = vpop.permute.xlu0 %1980 }
 0x73c   : > { %v1945_v44 = vmul.f32 %v4728_v31, %v1939_v57  ;;  %v2090_v23 = vmul.f32 1.442695, %v2089_v15  ;;  %v4732_v60 = vrot.slane %v4007_v1, %v3999_v8  ;;  %v4735_v41 = vrot.slane %v3991_v2, %v4025_v19 }
 0x73d   : > { %1497 = vst.msk [vmem:[#allocation2 + $0xf] sm:$0x1] %vm1031_vm9, %v1496_v47  ;;  %v1891_v40 = vsel %vm532_vm0, %v1890_v32, 0.0  ;;  %v4465_v5 = vadd.f32 %v1915_v36, %v1914_v34  ;;  %v1509_v50 = vadd.f32 %v1507_v59, %v1498_v22  ;;  %v3139_v47 = vpop.eup %3138 }
 0x73e   : > { %v1892_v33 = vrot.slane %v1891_v40, 4  ;;  %v2007_v62 = vmul.f32 %v4732_v60, %v4354_v30  ;;  %3144 = vpow2.f32 %v2090_v23  ;;  %v3141_v31 = vpop.eup %3140  ;;  %v4739_v60 = vrot.slane %v3991_v2, %v3999_v8 }
 0x73f   : > { %v1946_v58 = vmul.f32 %v3135_v16, %v4465_v5  ;;  %3146 = vpow2.f32 %v2121_v35 }
 0x740   : > { %v1893_v28 = vadd.f32 %v1892_v33, %v1891_v40  ;;  %v1970_v43 = vpop.permute.xlu1 %1969  ;;  %v4733_v40 = vrot.slane %v3991_v2, %v4003_v11 }
 0x741   : > { %v4475_v12 = vadd.f32 %v1946_v58, %v1945_v44  ;;  %v1976_v42 = vmul.f32 %v4730_v45, %v1970_v43  ;;  %v4736_v45 = vrot.slane %v4007_v1, %v4011_v13 }
 0x742   : > { %v1894_v38 = vrot.slane %v1893_v28, 2  ;;  %v2151_v16 = vmul.f32 %v4440_v53, %v4733_v40  ;;  %v3143_v22 = vpop.eup %3142 }
 0x743   : > { %v1977_v20 = vmul.f32 %v3137_v51, %v4475_v12  ;;  %v2182_v51 = vmul.f32 %v4440_v53, %v4735_v41 }
 0x744   : > { %v1499_v21 = vld [vmem:[#allocation2 + $0x8] sm:$0xff]  ;;  %v1895_v18 = vadd.f32 %v1894_v38, %v1893_v28  ;;  %v4734_v28 = vrot.slane %v4007_v1, %v4001_v10  ;;  %v2152_v15 = vmul.f32 1.442695, %v2151_v16  ;;  %v2069_v10 = vmul.f32 %v4736_v45, %v4378_v17 }
 0x745   : > { %v1978_v52 = vadd.f32 %v1977_v20, %v1976_v42  ;;  %v2125_v48 = vpop.permute.xlu1 %2124  ;;  %v1510_v34 = vadd.f32 %v1508_v6, %v1499_v21  ;;  %v2183_v6 = vmul.f32 1.442695, %v2182_v51  ;;  %v2074_v21 = vpop.permute.xlu0 %2073  ;;  %v4738_v1 = vrot.slane %v4015_v14, %v3993_v3 }
 0x746   : > { %v1896_v32 = vrot.slane %v1895_v18, 1  ;;  %v2038_v43 = vmul.f32 %v4734_v28, %v4369_v24  ;;  %3148 = vpow2.f32 %v2152_v15  ;;  %v4741_v28 = vrot.slane %v4015_v14, %v4003_v11 }
 0x747   : > { %v2008_v36 = vmul.f32 %v3139_v47, %v1978_v52  ;;  %v1983_v57 = vmul.f32 %v1981_v37, %v1978_v52  ;;  %v2849_v61 = vpack.c.bf16 %v1510_v34, %v1509_v50  ;;  %v2100_v17 = vmul.f32 %v4738_v1, %v4386_v7 }
 0x748   : > { %v1897_v39 = vadd.f32 %v1896_v32, %v1895_v18  ;;  %v4737_v18 = vrot.slane %v3991_v2, %v4040_v26  ;;  %v3145_v46 = vpop.eup %3144  ;;  %3150 = vpow2.f32 %v2183_v6  ;;  %v2307_v11 = vmul.f32 1.442695, %v4101_v56 }
 0x749   : > { %v4495_v33 = vadd.f32 %v2008_v36, %v2007_v62  ;;  %v1984_v58 = vsel %vm532_vm0, %v1983_v57, 0.0  ;;  %2850 = vmatprep.subr.bf16.mxu1 %v2849_v61  ;;  %v2244_v62 = vmul.f32 %v4440_v53, %v4739_v60  ;;  %v2167_v41 = vpop.permute.xlu0 %2166 }
 0x74a   : > { %1898 = vst.msk [vmem:[#allocation2 + $0xe] sm:$0x1] %vm1031_vm9, %v1897_v39  ;;  %v1985_v30 = vrot.slane %v1984_v58, 4  ;;  %v2156_v44 = vpop.permute.xlu1 %2155  ;;  %2852 = vmatpush3.bf16.msra.mxu1 %v2849_v61  ;;  %v2213_v23 = vmul.f32 %v4440_v53, %v4737_v18  ;;  %v3147_v61 = vpop.eup %3146  ;;  %v4740_v39 = vrot.slane %v4015_v14, %v3989_v0  ;;  %v2276_v0 = vmul.f32 1.442695, %v4098_v55 }
 0x74b   : > { %v2039_v63 = vmul.f32 %v3141_v31, %v4495_v33  ;;  %v2245_v16 = vmul.f32 1.442695, %v2244_v62 }
 0x74c   : > { %v1986_v54 = vadd.f32 %v1985_v30, %v1984_v58  ;;  %v2214_v47 = vmul.f32 1.442695, %v2213_v23  ;;  %v2131_v35 = vmul.f32 %v4740_v39, %v2125_v48 }
 0x74d   : > { %v4508_v38 = vadd.f32 %v2039_v63, %v2038_v43  ;;  %v2162_v43 = vmul.f32 %v4741_v28, %v2156_v44 }
 0x74e   : > { %v1987_v20 = vrot.slane %v1986_v54, 2  ;;  %3152 = vpow2.f32 %v2214_v47  ;;  %v4744_v47 = vrot.slane %v4015_v14, %v3999_v8 }
 0x74f   : > { %v2070_v24 = vmul.f32 %v3143_v22, %v4508_v38  ;;  %v2187_v42 = vpop.permute.xlu1 %2186  ;;  %3154 = vpow2.f32 %v2245_v16 }
 0x750   : > { %v1988_v59 = vadd.f32 %v1987_v20, %v1986_v54  ;;  %v3149_v58 = vpop.eup %3148  ;;  %v4742_v20 = vrot.slane %v4015_v14, %v4025_v19  ;;  %3156 = vpow2.f32 %v2276_v0  ;;  %v2255_v60 = vmul.f32 %v4744_v47, %v4391_v29 }
 0x751   : > { %v2071_v27 = vadd.f32 %v2070_v24, %v2069_v10  ;;  %3158 = vpow2.f32 %v2307_v11 }
 0x752   : > { %v1989_v37 = vrot.slane %v1988_v59, 1  ;;  %v3151_v54 = vpop.eup %3150  ;;  %v2193_v45 = vmul.f32 %v4742_v20, %v2187_v42 }
 0x753   : > { %v2101_v52 = vmul.f32 %v3145_v46, %v2071_v27  ;;  %v2076_v50 = vmul.f32 %v2074_v21, %v2071_v27 }
 0x754   : > { %v1990_v34 = vadd.f32 %v1989_v37, %v1988_v59  ;;  %v2218_v32 = vpop.permute.xlu1 %2217 }
 0x755   : > { %v4527_v36 = vadd.f32 %v2101_v52, %v2100_v17  ;;  %v2077_v57 = vsel %vm532_vm0, %v2076_v50, 0.0 }
 0x756   : > { %1991 = vst.msk [vmem:[#allocation2 + $0xb] sm:$0x1] %vm1031_vm9, %v1990_v34  ;;  %v2078_v3 = vrot.slane %v2077_v57, 4 }
 0x757   : > { %v2132_v7 = vmul.f32 %v3147_v61, %v4527_v36 }
 0x758   : > { %v2079_v40 = vadd.f32 %v2078_v3, %v2077_v57  ;;  %v3153_v21 = vpop.eup %3152 }
 0x759   : > { %v4535_v2 = vadd.f32 %v2132_v7, %v2131_v35  ;;  %v4537_v53 = vpop.permute.xlu1 %2310  ;;  %v3155_v17 = vpop.eup %3154 }
 0x75a   : > { %v2080_v31 = vrot.slane %v2079_v40, 2  ;;  %v3157_v39 = vpop.eup %3156 }
 0x75b   : > { %v2163_v30 = vmul.f32 %v3149_v58, %v4535_v2 }
 0x75c   : > { %v2081_v63 = vadd.f32 %v2080_v31, %v2079_v40  ;;  %v2260_v40 = vpop.permute.xlu0 %2259 }
 0x75d   : > { %v2164_v48 = vadd.f32 %v2163_v30, %v2162_v43 }
 0x75e   : > { %v2082_v15 = vrot.slane %v2081_v63, 1  ;;  %v1857_v51 = vpop.permute.xlu1 %1856 }
 0x75f   : > { %v2194_v22 = vmul.f32 %v3151_v54, %v2164_v48  ;;  %v2169_v10 = vmul.f32 %v2167_v41, %v2164_v48  ;;  %v1859_v24 = vmul.f32 %v1857_v51, %v4438_v49  ;;  %v4743_v49 = vrot.slane %v4015_v14, %v4040_v26 }
 0x760   : > { %v2083_v59 = vadd.f32 %v2082_v15, %v2081_v63 }
 0x761   : > { %v4549_v44 = vadd.f32 %v2194_v22, %v2193_v45  ;;  %v2170_v55 = vsel %vm532_vm0, %v2169_v10, 0.0  ;;  %v1860_v6 = vsel %vm532_vm0, %v1859_v24, 0.0  ;;  %v2224_v42 = vmul.f32 %v4743_v49, %v2218_v32 }
 0x762   : > { %2084 = vst.msk [vmem:[#allocation2 + $0x8] sm:$0x1] %vm1031_vm9, %v2083_v59  ;;  %v2171_v18 = vrot.slane %v2170_v55, 4  ;;  %v1861_v23 = vrot.slane %v1860_v6, 4  ;;  %v4745_v22 = vrot.slane %v4015_v14, %v4011_v13 }
 0x763   : > { %v2225_v19 = vmul.f32 %v3153_v21, %v4549_v44  ;;  %v1919_v27 = vpop.permute.xlu1 %1918 }
 0x764   : > { %v2172_v46 = vadd.f32 %v2171_v18, %v2170_v55  ;;  %v1862_v56 = vadd.f32 %v1861_v23, %v1860_v6  ;;  %v1921_v37 = vmul.f32 %v1919_v27, %v4465_v5  ;;  %v2317_v20 = vmul.f32 %v4745_v22, %v4537_v53 }
 0x765   : > { %v4559_v1 = vadd.f32 %v2225_v19, %v2224_v42 }
 0x766   : > { %v2173_v52 = vrot.slane %v2172_v46, 2  ;;  %v1863_v50 = vrot.slane %v1862_v56, 2  ;;  %v1922_v34 = vsel %vm532_vm0, %v1921_v37, 0.0 }
 0x767   : > { %v2256_v26 = vmul.f32 %v3155_v17, %v4559_v1  ;;  %v1923_v32 = vrot.slane %v1922_v34, 4 }
 0x768   : > { %v2174_v62 = vadd.f32 %v2173_v52, %v2172_v46  ;;  %v1864_v57 = vadd.f32 %v1863_v50, %v1862_v56  ;;  %v1950_v61 = vpop.permute.xlu1 %1949 }
 0x769   : > { %v2257_v5 = vadd.f32 %v2256_v26, %v2255_v60  ;;  %v1924_v3 = vadd.f32 %v1923_v32, %v1922_v34  ;;  %v1952_v7 = vmul.f32 %v1950_v61, %v4475_v12  ;;  %v3159_v12 = vpop.eup %3158 }
 0x76a   : > { %v2175_v35 = vrot.slane %v2174_v62, 1  ;;  %v1865_v16 = vrot.slane %v1864_v57, 1 }
 0x76b   : > { %v2262_v58 = vmul.f32 %v2260_v40, %v2257_v5  ;;  %v1925_v31 = vrot.slane %v1924_v3, 2  ;;  %v1953_v30 = vsel %vm532_vm0, %v1952_v7, 0.0  ;;  %v2287_v8 = vmul.f32 %v3157_v39, %v2257_v5 }
 0x76c   : > { %v2176_v29 = vadd.f32 %v2175_v35, %v2174_v62  ;;  %v1866_v28 = vadd.f32 %v1865_v16, %v1864_v57  ;;  %v1954_v43 = vrot.slane %v1953_v30, 4 }
 0x76d   : > { %v2263_v63 = vsel %vm532_vm0, %v2262_v58, 0.0  ;;  %v1926_v0 = vadd.f32 %v1925_v31, %v1924_v3  ;;  %v2012_v48 = vpop.permute.xlu1 %2011  ;;  %v4571_v54 = vadd.f32 %v2287_v8, %v4403_v25 }
 0x76e   : > { %2177 = vst.msk [vmem:[#allocation2 + $0x5] sm:$0x1] %vm1031_vm9, %v2176_v29  ;;  %v2264_v15 = vrot.slane %v2263_v63, 4  ;;  %1867 = vst.msk [vmem:[#allocation2 + $0xf] sm:$0x1] %vm1031_vm9, %v1866_v28  ;;  %v1955_v41 = vadd.f32 %v1954_v43, %v1953_v30  ;;  %v2014_v51 = vmul.f32 %v2012_v48, %v4495_v33 }
 0x76f   : > { %v1927_v45 = vrot.slane %v1926_v0, 1  ;;  %v2318_v10 = vmul.f32 %v3159_v12, %v4571_v54 }
 0x770   : > { %v2265_v24 = vadd.f32 %v2264_v15, %v2263_v63  ;;  %v1956_v25 = vrot.slane %v1955_v41, 2  ;;  %v2015_v59 = vsel %vm532_vm0, %v2014_v51, 0.0 }
 0x771   : > { %v1928_v11 = vadd.f32 %v1927_v45, %v1926_v0  ;;  %v2016_v55 = vrot.slane %v2015_v59, 4  ;;  %v4582_v6 = vadd.f32 %v2318_v10, %v2317_v20 }
 0x772   : > { %v2266_v21 = vrot.slane %v2265_v24, 2  ;;  %v1957_v18 = vadd.f32 %v1956_v25, %v1955_v41  ;;  %v2043_v23 = vpop.permute.xlu1 %2042 }
 0x773   : > { %1929 = vst.msk [vmem:[#allocation2 + $0xd] sm:$0x1] %vm1031_vm9, %v1928_v11  ;;  %v2017_v33 = vadd.f32 %v2016_v55, %v2015_v59  ;;  %v2045_v13 = vmul.f32 %v2043_v23, %v4508_v38 }
 0x774   : > { %v2267_v14 = vadd.f32 %v2266_v21, %v2265_v24  ;;  %v1958_v53 = vrot.slane %v1957_v18, 1 }
 0x775   : > { %v2018_v19 = vrot.slane %v2017_v33, 2  ;;  %v2046_v49 = vsel %vm532_vm0, %v2045_v13, 0.0 }
 0x776   : > { %v2268_v42 = vrot.slane %v2267_v14, 1  ;;  %v1959_v27 = vadd.f32 %v1958_v53, %v1957_v18  ;;  %v2047_v46 = vrot.slane %v2046_v49, 4 }
 0x777   : > { %v2019_v56 = vadd.f32 %v2018_v19, %v2017_v33  ;;  %v2105_v37 = vpop.permute.xlu1 %2104 }
 0x778   : > { %v2269_v17 = vadd.f32 %v2268_v42, %v2267_v14  ;;  %1960 = vst.msk [vmem:[#allocation2 + $0xc] sm:$0x1] %vm1031_vm9, %v1959_v27  ;;  %v2048_v52 = vadd.f32 %v2047_v46, %v2046_v49  ;;  %v2107_v50 = vmul.f32 %v2105_v37, %v4527_v36 }
 0x779   : > { %v2020_v34 = vrot.slane %v2019_v56, 1 }
 0x77a   : > { %2270 = vst.msk [vmem:[#allocation2 + $0x2] sm:$0x1] %vm1031_vm9, %v2269_v17  ;;  %v2049_v38 = vrot.slane %v2048_v52, 2  ;;  %v2108_v47 = vsel %vm532_vm0, %v2107_v50, 0.0 }
 0x77b   : > { %v2021_v60 = vadd.f32 %v2020_v34, %v2019_v56  ;;  %v2109_v26 = vrot.slane %v2108_v47, 4 }
 0x77c   : > { %v2050_v32 = vadd.f32 %v2049_v38, %v2048_v52  ;;  %v2136_v62 = vpop.permute.xlu1 %2135 }
 0x77d   : > { %2022 = vst.msk [vmem:[#allocation2 + $0xa] sm:$0x1] %vm1031_vm9, %v2021_v60  ;;  %v2110_v57 = vadd.f32 %v2109_v26, %v2108_v47  ;;  %v2138_v61 = vmul.f32 %v2136_v62, %v4535_v2  ;;  %v2348_v26 = vld [vmem:[#allocation15 + $0x8] sm:$0xff]  ;;  %v2350_v62 = vld [vmem:[#allocation15 + $0x18] sm:$0xff] }
 0x77e   : > { %v2051_v5 = vrot.slane %v2050_v32, 1 }
 0x77f   : > { %v2111_v3 = vrot.slane %v2110_v57, 2  ;;  %v2139_v7 = vsel %vm532_vm0, %v2138_v61, 0.0 }
 0x780   : > { %v2052_v36 = vadd.f32 %v2051_v5, %v2050_v32  ;;  %v2140_v39 = vrot.slane %v2139_v7, 4  ;;  %v2349_v32 = vld [vmem:[#allocation15 + $0x10] sm:$0xff] }
 0x781   : > { %v2112_v35 = vadd.f32 %v2111_v3, %v2110_v57  ;;  %v2198_v40 = vpop.permute.xlu1 %2197 }
 0x782   : > { %2053 = vst.msk [vmem:[#allocation2 + $0x9] sm:$0x1] %vm1031_vm9, %v2052_v36  ;;  %v2141_v16 = vadd.f32 %v2140_v39, %v2139_v7  ;;  %v2200_v58 = vmul.f32 %v2198_v40, %v4549_v44 }
 0x783   : > { %v2113_v31 = vrot.slane %v2112_v35, 1 }
 0x784   : > { %v2142_v30 = vrot.slane %v2141_v16, 2  ;;  %v2201_v8 = vsel %vm532_vm0, %v2200_v58, 0.0 }
 0x785   : > { %v2114_v29 = vadd.f32 %v2113_v31, %v2112_v35  ;;  %v2202_v28 = vrot.slane %v2201_v8, 4 }
 0x786   : > { %v2143_v2 = vadd.f32 %v2142_v30, %v2141_v16  ;;  %v2229_v43 = vpop.permute.xlu1 %2228 }
 0x787   : > { %2115 = vst.msk [vmem:[#allocation2 + $0x7] sm:$0x1] %vm1031_vm9, %v2114_v29  ;;  %v2203_v63 = vadd.f32 %v2202_v28, %v2201_v8  ;;  %v2231_v0 = vmul.f32 %v2229_v43, %v4559_v1 }
 0x788   : > { %v2144_v48 = vrot.slane %v2143_v2, 1 }
 0x789   : > { %v2204_v12 = vrot.slane %v2203_v63, 2  ;;  %v2232_v15 = vsel %vm532_vm0, %v2231_v0, 0.0  ;;  %v2334_v17 = vld [vmem:[#allocation2 + $0x8] sm:$0xff] }
 0x78a   : > { %v2145_v41 = vadd.f32 %v2144_v48, %v2143_v2  ;;  %v2233_v51 = vrot.slane %v2232_v15, 4 }
 0x78b   : > { %v2205_v44 = vadd.f32 %v2204_v12, %v2203_v63  ;;  %v2291_v22 = vpop.permute.xlu1 %2290 }
 0x78c   : > { %2146 = vst.msk [vmem:[#allocation2 + $0x6] sm:$0x1] %vm1031_vm9, %v2145_v41  ;;  %v2234_v20 = vadd.f32 %v2233_v51, %v2232_v15  ;;  %v2293_v45 = vmul.f32 %v2291_v22, %v4571_v54 }
 0x78d   : > { %v2206_v10 = vrot.slane %v2205_v44, 1 }
 0x78e   : > { %v2235_v24 = vrot.slane %v2234_v20, 2  ;;  %v2294_v25 = vsel %vm532_vm0, %v2293_v45, 0.0 }
 0x78f   : > { %v2207_v59 = vadd.f32 %v2206_v10, %v2205_v44  ;;  %v2295_v11 = vrot.slane %v2294_v25, 4 }
 0x790   : > { %v2236_v1 = vadd.f32 %v2235_v24, %v2234_v20  ;;  %v2322_v55 = vpop.permute.xlu1 %2321 }
 0x791   : > { %2208 = vst.msk [vmem:[#allocation2 + $0x4] sm:$0x1] %vm1031_vm9, %v2207_v59  ;;  %v2296_v21 = vadd.f32 %v2295_v11, %v2294_v25  ;;  %v2324_v18 = vmul.f32 %v2322_v55, %v4582_v6  ;;  %v2669_v6 = vld [vmem:[#allocation14 + $0x1] ss:$0 sm:$0xff] }
 0x792   : > { %v2237_v23 = vrot.slane %v2236_v1, 1  ;;  %v2343_v52 = vmul.f32 %v2669_v6, %v3953_v4  ;;  %v2344_v50 = vmul.f32 %v2669_v6, %v3963_v9 }
 0x793   : > { %v2297_v33 = vrot.slane %v2296_v21, 2  ;;  %v2325_v13 = vsel %vm532_vm0, %v2324_v18, 0.0 }
 0x794   : > { %v2238_v14 = vadd.f32 %v2237_v23, %v2236_v1  ;;  %v2326_v53 = vrot.slane %v2325_v13, 4  ;;  %v2346_v47 = vadd.f32 %v2344_v50, %v2334_v17 }
 0x795   : > { %v2298_v54 = vadd.f32 %v2297_v33, %v2296_v21 }
 0x796   : > { %2239 = vst.msk [vmem:[#allocation2 + $0x3] sm:$0x1] %vm1031_vm9, %v2238_v14  ;;  %v2327_v19 = vadd.f32 %v2326_v53, %v2325_v13 }
 0x797   : > { %v2299_v49 = vrot.slane %v2298_v54, 1 }
 0x798   : > { %v2328_v42 = vrot.slane %v2327_v19, 2 }
 0x799   : > { %v2300_v27 = vadd.f32 %v2299_v49, %v2298_v54 }
 0x79a   : > { %v2329_v46 = vadd.f32 %v2328_v42, %v2327_v19 }
 0x79b   : > { %2301 = vst.msk [vmem:[#allocation2 + $0x1] sm:$0x1] %vm1031_vm9, %v2300_v27 }
 0x79c   : > { %v2330_v56 = vrot.slane %v2329_v46, 1 }
 0x79e   : > { %v2331_v37 = vadd.f32 %v2330_v56, %v2329_v46 }
 0x7a0   : > { %2332 = vst.msk [vmem:[#allocation2] sm:$0x1] %vm1031_vm9, %v2331_v37 }
 0x7a7   : > { %v2333_v34 = vld [vmem:[#allocation2] sm:$0xff] }
 0x7a8   : > { %v2345_v38 = vadd.f32 %v2343_v52, %v2333_v34 }
 0x7aa   : > { %v2853_v60 = vpack.c.bf16 %v2346_v47, %v2345_v38 }
 0x7ac   : > { %2854 = vmatprep.subr.bf16.mxu1 %v2853_v60 }
 0x7ad   : > { %2856 = vmatpush3.bf16.msra.mxu1 %v2853_v60 }
 0x7b0   : > { %2796 = vmatmul.mubr.msk.f32.vlgmr.msra.gmra.mrb[2].mxu1 %vm2351_vm10, %v2348_v26 }
 0x7b1   : > { %2798 = vmatprep.mubr.msk.f32.mxu1 %vm2351_vm10, %v2349_v32 }
 0x7b4   : > { %2799 = vmatmul.mubr.msk.f32.gmra.mrb[4].mxu1 %vm2351_vm10, %v2350_v62 }
 0x883   : > { %v2797_v57 = vpop.f32.mrb[2].mxu1 }
 0x884   : > { %v2674_v61 = vmul.f32 -1.442695, %v2797_v57  ;;  %v2430_v4 = vpop.f32.mrb[3].mxu1 }
 0x886   : > { %3160 = vpow2.f32 %v2674_v61 }
 0x887   : > { %v2800_v9 = vpop.f32.mrb[4].mxu1 }
 0x888   : > { %v2676_v5 = vmul.f32 -1.442695, %v2800_v9  ;;  %v2440_v3 = vpop.f32.mrb[5].mxu1 }
 0x889   : > { %v2675_v7 = vmul.f32 -1.442695, %v2440_v3 }
 0x88a   : > { %3162 = vpow2.f32 %v2676_v5 }
 0x88b   : > { %3164 = vpow2.f32 %v2675_v7 }
 0x890   : > { %v3161_v36 = vpop.eup %3160 }
 0x891   : > { %v2452_v39 = vadd.f32 1.0, %v3161_v36 }
 0x893   : > { %3166 = vrcp.f32 %v2452_v39 }
 0x894   : > { %v3163_v35 = vpop.eup %3162 }
 0x895   : > { %v3165_v40 = vpop.eup %3164  ;;  %v2466_v16 = vadd.f32 1.0, %v3163_v35 }
 0x896   : > { %v2459_v58 = vadd.f32 1.0, %v3165_v40 }
 0x897   : > { %3168 = vrcp.f32 %v2466_v16 }
 0x898   : > { %3170 = vrcp.f32 %v2459_v58 }
 0x89d   : > { %v3167_v31 = vpop.eup %3166 }
 0x89e   : > { %v2455_v29 = vmul.f32 %v3167_v31, %v2797_v57 }
 0x8a1   : > { %v3169_v30 = vpop.eup %3168 }
 0x8a2   : > { %v3171_v8 = vpop.eup %3170  ;;  %v2469_v28 = vmul.f32 %v3169_v30, %v2800_v9 }
 0x8a3   : > { %v2462_v2 = vmul.f32 %v3171_v8, %v2440_v3 }
 0x8a4   : > { %v2471_v43 = vmul.f32 %v2469_v28, %v2455_v29 }
 0x8a5   : > { %v2470_v63 = vmul.f32 %v2462_v2, %v2455_v29 }
 0x8a7   : > { %v2472_v0 = vadd.f32 %v2471_v43, %v2470_v63 }
 0x8a9   : > { %v2473_v48 = vadd.f32 %v2472_v0, %v2430_v4 }
 0x8ab   : > { %2474 = vst.msk [vmem:[%s529_s17] sm:$0xff] %vm532_vm0, %v2473_v48 }
 0x8ac   : > { %3412 = shalt.err (!%p3409_p11)
}
 0x8ad   : > { %s3413_s14 = scalar_lea.hbm %s4619_s18, 128  ;;  %s3417_s15 = scalar_lea.hbm %s4746_s8, 256 }
 0x8ae   : > { %p3414_p12 = scmp.ne.s32.totalorder %s4619_s18, %s3413_s14  ;;  %p3418_p9 = scmp.lt.u32.totalorder %s4619_s18, %s4746_s8 }
 0x8af   : > { %p3419_p7 = scmp.lt.u32.totalorder %s3417_s15, %s3413_s14  ;;  %p3421_p4 = scmp.lt.u32.totalorder %s3413_s14, %s4619_s18 }
 0x8b0   : > { %p3415_p0 = pnand %p3414_p12, %p4747_p13 }
 0x8b1   : > { %p3420_p10 = por %p3419_p7, %p3418_p9 }
 0x8b2   : > { %p3416_p5 = pneg %p3415_p0 }
 0x8b3   : > { %p3422_p1 = por %p3421_p4, %p3420_p10 }
 0x8b5   : > { %p3423_p3 = pnand %p3422_p1, %p3416_p5 }
 0x8b7   : > { %3426 = shalt.err (!%p3423_p3)
}
 0x8b8   : > { %2887 = dma.vmem_to_hbm [thread:$0]  (%p4747_p13), %s4621_s30, 128, %s4619_s18, %s2476_s5  }
 0x8b9 PF: > { %s2501_s2 = sand.u32 1, %s3469_s21   ;;  %p4748_p2 = scmp.ne.s32.totalorder %s4700_s26, 0 }
 0x8ba   : > { %p4749_p8 = scmp.ge.s32.totalorder %s3481_s24, 2  ;;  %s2502_s19 = scalar_lea.sflag [#allocation5], %s2501_s2 }
 0x8bc   : > { %p2916_p6 = pnand %p4749_p8, %p4748_p2 }
 0x8be   : > { %3464 = dma.done.wait (!%p2916_p6), %s2502_s19, 128  }
 0x8bf   : > { %3466 = vsyncadd (!%p2916_p6), %s2502_s19, 4294967168  ;;  %p29_p11 = scmp.ge.s32.totalorder %s3786_s25, 4   ;;  %s4750_s21 = smov %s3473_s22 }
 0x8c0   : > { %s4751_s22 = smov %s3477_s23  ;;  %s4752_s23 = smov %s3798_s6 }
 0x8c1   : > { %s4753_s24 = smov %s3786_s25  ;;  %31 = sbr.rel (!%p29_p11) target bundleno = 15 (0xf), region = 147 }
 0x8c8   :  { %2507 = vsyncpa [#allocation4], 1 }
 0x8c9   :  { %2509 = vsyncpa [#allocation4 + $0x1], 1 }
 0x8ca   :  { %2510 = vsyncpa [#allocation7], 1 }
 0x8cb   :  { %2511 = vsyncpa [#allocation10], 1 }
 0x8cc   :  { %2512 = vsyncpa [#allocation13], 1 }
 0x8cd   :  { %2513 = vsyncpa [#allocation16], 1 }
 0x8ce   :  { %2514 = vsyncpa [#allocation5], 1 }
 0x8cf   :  { %2516 = vsyncpa [#allocation5 + $0x1], 1 }

</bundles_post_ra>
